<compile_context>
chip_gen: v5e
topology: v5e:2x2
jax: 0.10.0
libtpu: 0.0.40
codegen_flags: <defaults>
</compile_context>

<pallas_src>
import functools

import jax
import jax.numpy as jnp
from jax.experimental import pallas as pl
from jax.experimental.pallas import tpu as pltpu


# ----------------------------- config ---------------------------------------
CFG = dict(
    vocab_size=128,
    context_length=16,
    d_model=32,
    num_heads=4,
    d_ff=64,
    num_layers=2,
    dropout=0.0,
)

LN_EPS = 1e-5


# --------------------------- math helpers ------------------------------------
def _layernorm(x, gamma, beta):
    # Single-pass LayerNorm: E[x] and E[x^2] computed together,
    # var = E[x^2] - E[x]^2 (halves the XLU lane-reduce traffic).
    mean = jnp.mean(x, axis=-1, keepdims=True)
    mean_sq = jnp.mean(x * x, axis=-1, keepdims=True)
    var = mean_sq - mean * mean
    inv = jax.lax.rsqrt(var + LN_EPS)
    return (x - mean) * inv * gamma + beta


def _gelu_tanh(x):
    c = 0.7978845608028654  # sqrt(2/pi)
    return 0.5 * x * (1.0 + jnp.tanh(c * (x + 0.044715 * x * x * x)))


# --------------------------- fused forward kernel ----------------------------
def gpt_fused_kernel(ids_ref, tok_emb_ref, pos_emb_ref,
                     ln1_g_ref, ln1_b_ref,
                     wqkv_ref, bqkv_ref, wo_ref, bo_ref,
                     ln2_g_ref, ln2_b_ref,
                     w1_ref, b1_ref, w2_ref, b2_ref,
                     lnf_g_ref, lnf_b_ref, wout_ref,
                     out_ref,
                     *, num_layers, num_heads, batch, seq_len):
    B, S, H = batch, seq_len, num_heads
    BS = B * S
    V, D = tok_emb_ref.shape
    hd = D // H
    scale = 1.0 / (hd ** 0.5)

    # ---- embeddings: scalar-driven row gather (ids live in SMEM) -------------
    rows = [tok_emb_ref[pl.ds(ids_ref[i], 1), :] for i in range(BS)]   # (1, D) each
    x = jnp.concatenate(rows, axis=0)                                  # (BS, D)
    pos = pos_emb_ref[pl.ds(0, S), :]                                  # (S, D)
    x = (x.reshape(B, S, D) + pos[None]).reshape(BS, D)                # broadcast add
    # dropout = identity (eval mode)

    # ---- causal mask: built once, reused for every layer & batch element -----
    row_i = jax.lax.broadcasted_iota(jnp.int32, (S, S), 0)
    col_i = jax.lax.broadcasted_iota(jnp.int32, (S, S), 1)
    causal = (row_i >= col_i)[None]                                    # (1, S, S)

    for l in range(num_layers):                                        # static unroll
        # -------- attention sub-block (pre-LN) --------------------------------
        h1 = _layernorm(x, ln1_g_ref[l], ln1_b_ref[l])                 # (BS, D)
        # Fused, lane-dense QKV projection: one matmul, contraction D, width 3D.
        qkv = jnp.dot(h1, wqkv_ref[l],
                      preferred_element_type=jnp.float32) + bqkv_ref[l]  # (BS, 3D)

        def heads(z):                                                  # (BS, D) -> (B*H, S, hd)
            return (z.reshape(B, S, H, hd)
                     .transpose(0, 2, 1, 3)
                     .reshape(B * H, S, hd))

        q = heads(qkv[:, 0 * D:1 * D])
        k = heads(qkv[:, 1 * D:2 * D])
        v = heads(qkv[:, 2 * D:3 * D])

        # Single batched einsum over all B*H heads (no per-batch Python loop).
        s = jnp.einsum('nqf,nkf->nqk', q, k,
                       preferred_element_type=jnp.float32) * scale     # (B*H, S, S)
        s = jnp.where(causal, s, -1e30)
        m = jnp.max(s, axis=-1, keepdims=True)                         # XLU lane max (free slot)
        p = jnp.exp(s - m)                                             # masked -> exact 0
        denom = jnp.sum(p, axis=-1, keepdims=True)
        p = p * pl.reciprocal(denom, approx=True)                      # EUP reciprocal
        ctx = jnp.einsum('nqk,nkf->nqf', p, v,
                         preferred_element_type=jnp.float32)           # (B*H, S, hd)

        # Re-assemble heads -> (BS, D) and apply the full (D, D) out projection.
        ctx = (ctx.reshape(B, H, S, hd)
                  .transpose(0, 2, 1, 3)
                  .reshape(BS, D))
        attn = jnp.dot(ctx, wo_ref[l],
                       preferred_element_type=jnp.float32) + bo_ref[l]  # (BS, D)
        x = x + attn

        # -------- MLP sub-block (pre-LN), flattened over B*S rows -------------
        h2 = _layernorm(x, ln2_g_ref[l], ln2_b_ref[l])
        ff = jnp.dot(h2, w1_ref[l], preferred_element_type=jnp.float32) + b1_ref[l]
        ff = _gelu_tanh(ff)
        ff = jnp.dot(ff, w2_ref[l], preferred_element_type=jnp.float32) + b2_ref[l]
        x = x + ff

    # ---- final LayerNorm + logits (lane-dense (BS, V=128) store) --------------
    hf = _layernorm(x, lnf_g_ref[...], lnf_b_ref[...])
    out_ref[...] = jnp.dot(hf, wout_ref[...], preferred_element_type=jnp.float32)


# --------------------------- parameter packing --------------------------------
def pack_params(params, cfg):
    """Stack per-layer params along a leading L axis.  No per-head splitting —
    the kernel consumes the original lane-dense (D, 3D) / (D, D) weights."""
    del cfg  # layout no longer depends on head count

    def per_layer(name):
        return jnp.stack([blk[name] for blk in params["blocks"]])

    return dict(
        tok_emb=params["tok_emb"], pos_emb=params["pos_emb"],
        ln1_g=per_layer("ln1_g"), ln1_b=per_layer("ln1_b"),
        wqkv=per_layer("wqkv"), bqkv=per_layer("bqkv"),
        wo=per_layer("wo"), bo=per_layer("bo"),
        ln2_g=per_layer("ln2_g"), ln2_b=per_layer("ln2_b"),
        w1=per_layer("w1"), b1=per_layer("b1"),
        w2=per_layer("w2"), b2=per_layer("b2"),
        lnf_g=params["final"]["ln_g"], lnf_b=params["final"]["ln_b"],
        wout=params["final"]["w_out"],
    )


# --------------------------- pallas_call wrapper -------------------------------
def gpt_forward(input_ids, packed, cfg):
    B, S = input_ids.shape
    V, D, F, H, L = (cfg["vocab_size"], cfg["d_model"], cfg["d_ff"],
                     cfg["num_heads"], cfg["num_layers"])
    hd = D // H
    BS = B * S
    ids = input_ids.reshape(BS).astype(jnp.int32)      # SMEM scalars, no VMEM padding

    kernel = functools.partial(
        gpt_fused_kernel,
        num_layers=L, num_heads=H, batch=B, seq_len=S)

    operands = (ids, packed["tok_emb"], packed["pos_emb"],
                packed["ln1_g"], packed["ln1_b"],
                packed["wqkv"], packed["bqkv"], packed["wo"], packed["bo"],
                packed["ln2_g"], packed["ln2_b"],
                packed["w1"], packed["b1"], packed["w2"], packed["b2"],
                packed["lnf_g"], packed["lnf_b"], packed["wout"])

    vmem_spec = pl.BlockSpec(memory_space=pltpu.MemorySpace.VMEM)
    smem_spec = pl.BlockSpec(memory_space=pltpu.MemorySpace.SMEM)
    in_specs = [smem_spec] + [vmem_spec] * (len(operands) - 1)

    # Advisory cost estimate for XLA's scheduler around the custom call.
    flops_per_layer = (
        2 * BS * D * (3 * D)          # fused qkv projection
        + 2 * (B * H) * S * S * hd    # scores
        + 2 * (B * H) * S * S * hd    # context
        + 2 * BS * D * D              # output projection
        + 2 * BS * D * F              # mlp up
        + 2 * BS * F * D              # mlp down
    )
    flops = L * flops_per_layer + 2 * BS * D * V
    transcendentals = L * (B * H * S * S + BS * F) + (2 * L + 1) * BS
    bytes_accessed = (sum(int(a.size) * a.dtype.itemsize for a in operands)
                      + BS * V * 4)

    logits_flat = pl.pallas_call(
        kernel,
        out_shape=jax.ShapeDtypeStruct((BS, V), jnp.float32),
        in_specs=in_specs,
        out_specs=vmem_spec,
        cost_estimate=pl.CostEstimate(flops=flops,
                                      transcendentals=transcendentals,
                                      bytes_accessed=bytes_accessed),
        compiler_params=pltpu.CompilerParams(vmem_limit_bytes=16 * 1024 * 1024),
        # grid-less: single invocation, every operand resident in VMEM/SMEM
    )(*operands)
    return logits_flat.reshape(B, S, V)


# --------------------------- parameter init -----------------------------------
def init_params(key, cfg):
    D, F, V, C, L = (cfg["d_model"], cfg["d_ff"], cfg["vocab_size"],
                     cfg["context_length"], cfg["num_layers"])
    keys = iter(jax.random.split(key, 4 + 6 * L))
    p = dict(
        tok_emb=0.02 * jax.random.normal(next(keys), (V, D), jnp.float32),
        pos_emb=0.02 * jax.random.normal(next(keys), (C, D), jnp.float32),
        blocks=[],
        final=dict(
            ln_g=jnp.ones((1, D), jnp.float32),
            ln_b=jnp.zeros((1, D), jnp.float32),
            w_out=0.02 * jax.random.normal(next(keys), (D, V), jnp.float32),
        ),
    )
    for _ in range(L):
        blk = dict(
            ln1_g=jnp.ones((1, D), jnp.float32),
            ln1_b=jnp.zeros((1, D), jnp.float32),
            wqkv=0.02 * jax.random.normal(next(keys), (D, 3 * D), jnp.float32),
            bqkv=jnp.zeros((1, 3 * D), jnp.float32),
            wo=0.02 * jax.random.normal(next(keys), (D, D), jnp.float32),
            bo=jnp.zeros((1, D), jnp.float32),
            ln2_g=jnp.ones((1, D), jnp.float32),
            ln2_b=jnp.zeros((1, D), jnp.float32),
            w1=0.02 * jax.random.normal(next(keys), (D, F), jnp.float32),
            b1=jnp.zeros((1, F), jnp.float32),
            w2=0.02 * jax.random.normal(next(keys), (F, D), jnp.float32),
            b2=jnp.zeros((1, D), jnp.float32),
        )
        p["blocks"].append(blk)
    return p


# --------------------------- pure-JAX reference --------------------------------
def gpt_forward_ref(input_ids, params, cfg):
    B, S = input_ids.shape
    H = cfg["num_heads"]
    D = cfg["d_model"]
    hd = D // H
    x = jnp.take(params["tok_emb"], input_ids, axis=0) + params["pos_emb"][:S]
    causal = jnp.tril(jnp.ones((S, S), bool))
    for blk in params["blocks"]:
        h = _layernorm(x, blk["ln1_g"][0], blk["ln1_b"][0])
        qkv = h @ blk["wqkv"] + blk["bqkv"][0]
        q, k, v = jnp.split(qkv, 3, axis=-1)
        q = q.reshape(B, S, H, hd).transpose(0, 2, 1, 3)
        k = k.reshape(B, S, H, hd).transpose(0, 2, 1, 3)
        v = v.reshape(B, S, H, hd).transpose(0, 2, 1, 3)
        s = jnp.einsum("bhqd,bhkd->bhqk", q, k) / (hd ** 0.5)
        s = jnp.where(causal, s, -1e30)
        p = jax.nn.softmax(s, axis=-1)
        a = jnp.einsum("bhqk,bhkd->bhqd", p, v).transpose(0, 2, 1, 3).reshape(B, S, D)
        x = x + (a @ blk["wo"] + blk["bo"][0])
        h2 = _layernorm(x, blk["ln2_g"][0], blk["ln2_b"][0])
        ff = _gelu_tanh(h2 @ blk["w1"] + blk["b1"][0]) @ blk["w2"] + blk["b2"][0]
        x = x + ff
    h = _layernorm(x, params["final"]["ln_g"][0], params["final"]["ln_b"][0])
    return h @ params["final"]["w_out"]


# --------------------------- main ----------------------------------------------
if __name__ == "__main__":
    key = jax.random.PRNGKey(0)
    k_param, k_ids = jax.random.split(key)

    params = init_params(k_param, CFG)
    packed = pack_params(params, CFG)

    B, S = 2, 8
    input_ids = jax.random.randint(k_ids, (B, S), 0, CFG["vocab_size"], dtype=jnp.int32)

    logits = gpt_forward(input_ids, packed, CFG)
    logits = jax.block_until_ready(logits)

    ref = gpt_forward_ref(input_ids, params, CFG)
    assert logits.shape == (B, S, CFG["vocab_size"])
    # Tolerance loosened slightly vs. a pure-f32 check because the kernel uses
    # the EUP approximate reciprocal in the softmax denominator.
    assert jnp.allclose(logits, ref, rtol=5e-3, atol=5e-4), "mismatch vs reference"

    print("KERNEL_OK")
</pallas_src>

<mosaic_0001>
module attributes {stable_mosaic.version = 11 : i64} {
  func.func @gpt_fused_kernel(%arg0: memref<16xi32, #tpu.memory_space<smem>>, %arg1: memref<128x32xf32, #tpu.memory_space<vmem>>, %arg2: memref<16x32xf32, #tpu.memory_space<vmem>>, %arg3: memref<2x1x32xf32, #tpu.memory_space<vmem>>, %arg4: memref<2x1x32xf32, #tpu.memory_space<vmem>>, %arg5: memref<2x32x96xf32, #tpu.memory_space<vmem>>, %arg6: memref<2x1x96xf32, #tpu.memory_space<vmem>>, %arg7: memref<2x32x32xf32, #tpu.memory_space<vmem>>, %arg8: memref<2x1x32xf32, #tpu.memory_space<vmem>>, %arg9: memref<2x1x32xf32, #tpu.memory_space<vmem>>, %arg10: memref<2x1x32xf32, #tpu.memory_space<vmem>>, %arg11: memref<2x32x64xf32, #tpu.memory_space<vmem>>, %arg12: memref<2x1x64xf32, #tpu.memory_space<vmem>>, %arg13: memref<2x64x32xf32, #tpu.memory_space<vmem>>, %arg14: memref<2x1x32xf32, #tpu.memory_space<vmem>>, %arg15: memref<1x32xf32, #tpu.memory_space<vmem>>, %arg16: memref<1x32xf32, #tpu.memory_space<vmem>>, %arg17: memref<32x128xf32, #tpu.memory_space<vmem>>, %arg18: memref<16x128xf32, #tpu.memory_space<vmem>>) attributes {dimension_semantics = [], scalar_prefetch = 0 : i64, scratch_operands = 0 : i64, tpu.core_type = #tpu.core_type<tc>} {
    %c0 = arith.constant 0 : index
    %0 = memref.load %arg0[%c0] : memref<16xi32, #tpu.memory_space<smem>>
    %1 = arith.index_cast %0 : i32 to index
    %c0_0 = arith.constant 0 : index
    %2 = vector.load %arg1[%1, %c0_0] : memref<128x32xf32, #tpu.memory_space<vmem>>, vector<1x32xf32>
    %c1 = arith.constant 1 : index
    %3 = memref.load %arg0[%c1] : memref<16xi32, #tpu.memory_space<smem>>
    %4 = arith.index_cast %3 : i32 to index
    %c0_1 = arith.constant 0 : index
    %5 = vector.load %arg1[%4, %c0_1] : memref<128x32xf32, #tpu.memory_space<vmem>>, vector<1x32xf32>
    %c2 = arith.constant 2 : index
    %6 = memref.load %arg0[%c2] : memref<16xi32, #tpu.memory_space<smem>>
    %7 = arith.index_cast %6 : i32 to index
    %c0_2 = arith.constant 0 : index
    %8 = vector.load %arg1[%7, %c0_2] : memref<128x32xf32, #tpu.memory_space<vmem>>, vector<1x32xf32>
    %c3 = arith.constant 3 : index
    %9 = memref.load %arg0[%c3] : memref<16xi32, #tpu.memory_space<smem>>
    %10 = arith.index_cast %9 : i32 to index
    %c0_3 = arith.constant 0 : index
    %11 = vector.load %arg1[%10, %c0_3] : memref<128x32xf32, #tpu.memory_space<vmem>>, vector<1x32xf32>
    %c4 = arith.constant 4 : index
    %12 = memref.load %arg0[%c4] : memref<16xi32, #tpu.memory_space<smem>>
    %13 = arith.index_cast %12 : i32 to index
    %c0_4 = arith.constant 0 : index
    %14 = vector.load %arg1[%13, %c0_4] : memref<128x32xf32, #tpu.memory_space<vmem>>, vector<1x32xf32>
    %c5 = arith.constant 5 : index
    %15 = memref.load %arg0[%c5] : memref<16xi32, #tpu.memory_space<smem>>
    %16 = arith.index_cast %15 : i32 to index
    %c0_5 = arith.constant 0 : index
    %17 = vector.load %arg1[%16, %c0_5] : memref<128x32xf32, #tpu.memory_space<vmem>>, vector<1x32xf32>
    %c6 = arith.constant 6 : index
    %18 = memref.load %arg0[%c6] : memref<16xi32, #tpu.memory_space<smem>>
    %19 = arith.index_cast %18 : i32 to index
    %c0_6 = arith.constant 0 : index
    %20 = vector.load %arg1[%19, %c0_6] : memref<128x32xf32, #tpu.memory_space<vmem>>, vector<1x32xf32>
    %c7 = arith.constant 7 : index
    %21 = memref.load %arg0[%c7] : memref<16xi32, #tpu.memory_space<smem>>
    %22 = arith.index_cast %21 : i32 to index
    %c0_7 = arith.constant 0 : index
    %23 = vector.load %arg1[%22, %c0_7] : memref<128x32xf32, #tpu.memory_space<vmem>>, vector<1x32xf32>
    %c8 = arith.constant 8 : index
    %24 = memref.load %arg0[%c8] : memref<16xi32, #tpu.memory_space<smem>>
    %25 = arith.index_cast %24 : i32 to index
    %c0_8 = arith.constant 0 : index
    %26 = vector.load %arg1[%25, %c0_8] : memref<128x32xf32, #tpu.memory_space<vmem>>, vector<1x32xf32>
    %c9 = arith.constant 9 : index
    %27 = memref.load %arg0[%c9] : memref<16xi32, #tpu.memory_space<smem>>
    %28 = arith.index_cast %27 : i32 to index
    %c0_9 = arith.constant 0 : index
    %29 = vector.load %arg1[%28, %c0_9] : memref<128x32xf32, #tpu.memory_space<vmem>>, vector<1x32xf32>
    %c10 = arith.constant 10 : index
    %30 = memref.load %arg0[%c10] : memref<16xi32, #tpu.memory_space<smem>>
    %31 = arith.index_cast %30 : i32 to index
    %c0_10 = arith.constant 0 : index
    %32 = vector.load %arg1[%31, %c0_10] : memref<128x32xf32, #tpu.memory_space<vmem>>, vector<1x32xf32>
    %c11 = arith.constant 11 : index
    %33 = memref.load %arg0[%c11] : memref<16xi32, #tpu.memory_space<smem>>
    %34 = arith.index_cast %33 : i32 to index
    %c0_11 = arith.constant 0 : index
    %35 = vector.load %arg1[%34, %c0_11] : memref<128x32xf32, #tpu.memory_space<vmem>>, vector<1x32xf32>
    %c12 = arith.constant 12 : index
    %36 = memref.load %arg0[%c12] : memref<16xi32, #tpu.memory_space<smem>>
    %37 = arith.index_cast %36 : i32 to index
    %c0_12 = arith.constant 0 : index
    %38 = vector.load %arg1[%37, %c0_12] : memref<128x32xf32, #tpu.memory_space<vmem>>, vector<1x32xf32>
    %c13 = arith.constant 13 : index
    %39 = memref.load %arg0[%c13] : memref<16xi32, #tpu.memory_space<smem>>
    %40 = arith.index_cast %39 : i32 to index
    %c0_13 = arith.constant 0 : index
    %41 = vector.load %arg1[%40, %c0_13] : memref<128x32xf32, #tpu.memory_space<vmem>>, vector<1x32xf32>
    %c14 = arith.constant 14 : index
    %42 = memref.load %arg0[%c14] : memref<16xi32, #tpu.memory_space<smem>>
    %43 = arith.index_cast %42 : i32 to index
    %c0_14 = arith.constant 0 : index
    %44 = vector.load %arg1[%43, %c0_14] : memref<128x32xf32, #tpu.memory_space<vmem>>, vector<1x32xf32>
    %c15 = arith.constant 15 : index
    %45 = memref.load %arg0[%c15] : memref<16xi32, #tpu.memory_space<smem>>
    %46 = arith.index_cast %45 : i32 to index
    %c0_15 = arith.constant 0 : index
    %47 = vector.load %arg1[%46, %c0_15] : memref<128x32xf32, #tpu.memory_space<vmem>>, vector<1x32xf32>
    %48 = tpu.concatenate %2, %5, %8, %11, %14, %17, %20, %23, %26, %29, %32, %35, %38, %41, %44, %47 in 0 : vector<1x32xf32>, vector<1x32xf32>, vector<1x32xf32>, vector<1x32xf32>, vector<1x32xf32>, vector<1x32xf32>, vector<1x32xf32>, vector<1x32xf32>, vector<1x32xf32>, vector<1x32xf32>, vector<1x32xf32>, vector<1x32xf32>, vector<1x32xf32>, vector<1x32xf32>, vector<1x32xf32>, vector<1x32xf32> -> vector<16x32xf32>
    %c0_16 = arith.constant 0 : index
    %c0_17 = arith.constant 0 : index
    %49 = vector.load %arg2[%c0_16, %c0_17] : memref<16x32xf32, #tpu.memory_space<vmem>>, vector<8x32xf32>
    %50 = vector.shape_cast %48 : vector<16x32xf32> to vector<2x8x32xf32>
    %51 = vector.shape_cast %49 : vector<8x32xf32> to vector<1x8x32xf32>
    %52 = vector.broadcast %51 : vector<1x8x32xf32> to vector<2x8x32xf32>
    %53 = arith.addf %50, %52 : vector<2x8x32xf32>
    %54 = vector.shape_cast %53 : vector<2x8x32xf32> to vector<16x32xf32>
    %55 = tpu.iota {dimensions = array<i32: 0>} : vector<8x8xi32>
    %56 = tpu.iota {dimensions = array<i32: 1>} : vector<8x8xi32>
    %57 = arith.cmpi sge, %55, %56 : vector<8x8xi32>
    %58 = vector.shape_cast %57 : vector<8x8xi1> to vector<1x8x8xi1>
    %c0_18 = arith.constant 0 : index
    %c0_19 = arith.constant 0 : index
    %c0_20 = arith.constant 0 : index
    %59 = vector.load %arg3[%c0_18, %c0_19, %c0_20] : memref<2x1x32xf32, #tpu.memory_space<vmem>>, vector<1x1x32xf32>
    %60 = vector.shape_cast %59 : vector<1x1x32xf32> to vector<1x32xf32>
    %c0_21 = arith.constant 0 : index
    %c0_22 = arith.constant 0 : index
    %c0_23 = arith.constant 0 : index
    %61 = vector.load %arg4[%c0_21, %c0_22, %c0_23] : memref<2x1x32xf32, #tpu.memory_space<vmem>>, vector<1x1x32xf32>
    %62 = vector.shape_cast %61 : vector<1x1x32xf32> to vector<1x32xf32>
    %cst = arith.constant dense<0.000000e+00> : vector<16xf32>
    %63 = vector.multi_reduction <add>, %54, %cst [1] : vector<16x32xf32> to vector<16xf32>
    %64 = vector.shape_cast %63 : vector<16xf32> to vector<16x1xf32>
    %cst_24 = arith.constant 3.200000e+01 : f32
    %65 = vector.broadcast %cst_24 : f32 to vector<16x1xf32>
    %66 = arith.divf %64, %65 : vector<16x1xf32>
    %67 = arith.mulf %54, %54 : vector<16x32xf32>
    %cst_25 = arith.constant dense<0.000000e+00> : vector<16xf32>
    %68 = vector.multi_reduction <add>, %67, %cst_25 [1] : vector<16x32xf32> to vector<16xf32>
    %69 = vector.shape_cast %68 : vector<16xf32> to vector<16x1xf32>
    %cst_26 = arith.constant 3.200000e+01 : f32
    %70 = vector.broadcast %cst_26 : f32 to vector<16x1xf32>
    %71 = arith.divf %69, %70 : vector<16x1xf32>
    %72 = arith.mulf %66, %66 : vector<16x1xf32>
    %73 = arith.subf %71, %72 : vector<16x1xf32>
    %cst_27 = arith.constant 9.99999974E-6 : f32
    %74 = vector.broadcast %cst_27 : f32 to vector<16x1xf32>
    %75 = arith.addf %73, %74 : vector<16x1xf32>
    %76 = math.rsqrt %75 : vector<16x1xf32>
    %77 = vector.broadcast %66 : vector<16x1xf32> to vector<16x32xf32>
    %78 = arith.subf %54, %77 : vector<16x32xf32>
    %79 = vector.broadcast %76 : vector<16x1xf32> to vector<16x32xf32>
    %80 = arith.mulf %78, %79 : vector<16x32xf32>
    %81 = vector.broadcast %60 : vector<1x32xf32> to vector<16x32xf32>
    %82 = arith.mulf %80, %81 : vector<16x32xf32>
    %83 = vector.broadcast %62 : vector<1x32xf32> to vector<16x32xf32>
    %84 = arith.addf %82, %83 : vector<16x32xf32>
    %c0_28 = arith.constant 0 : index
    %c0_29 = arith.constant 0 : index
    %c0_30 = arith.constant 0 : index
    %85 = vector.load %arg5[%c0_28, %c0_29, %c0_30] : memref<2x32x96xf32, #tpu.memory_space<vmem>>, vector<1x32x96xf32>
    %86 = vector.shape_cast %85 : vector<1x32x96xf32> to vector<32x96xf32>
    %cst_31 = arith.constant dense<0.000000e+00> : vector<16x96xf32>
    %87 = tpu.matmul %84, %86, %cst_31 {dimension_numbers = #tpu.dot_dimension_numbers<[1], [0], [0], [1], [0, 0, 1, 1], [], []>} : vector<16x32xf32>, vector<32x96xf32>, vector<16x96xf32> -> vector<16x96xf32>
    %c0_32 = arith.constant 0 : index
    %c0_33 = arith.constant 0 : index
    %c0_34 = arith.constant 0 : index
    %88 = vector.load %arg6[%c0_32, %c0_33, %c0_34] : memref<2x1x96xf32, #tpu.memory_space<vmem>>, vector<1x1x96xf32>
    %89 = vector.shape_cast %88 : vector<1x1x96xf32> to vector<1x96xf32>
    %90 = vector.broadcast %89 : vector<1x96xf32> to vector<16x96xf32>
    %91 = arith.addf %87, %90 : vector<16x96xf32>
    %92 = vector.extract_strided_slice %91 {offsets = [0, 0], sizes = [16, 32], strides = [1, 1]} : vector<16x96xf32> to vector<16x32xf32>
    %93 = vector.shape_cast %92 : vector<16x32xf32> to vector<2x8x4x8xf32>
    %94 = tpu.transpose %93, [0, 2, 1, 3] : vector<2x8x4x8xf32> -> vector<2x4x8x8xf32>
    %95 = vector.shape_cast %94 : vector<2x4x8x8xf32> to vector<8x8x8xf32>
    %96 = vector.extract_strided_slice %91 {offsets = [0, 32], sizes = [16, 32], strides = [1, 1]} : vector<16x96xf32> to vector<16x32xf32>
    %97 = vector.shape_cast %96 : vector<16x32xf32> to vector<2x8x4x8xf32>
    %98 = tpu.transpose %97, [0, 2, 1, 3] : vector<2x8x4x8xf32> -> vector<2x4x8x8xf32>
    %99 = vector.shape_cast %98 : vector<2x4x8x8xf32> to vector<8x8x8xf32>
    %100 = vector.extract_strided_slice %91 {offsets = [0, 64], sizes = [16, 32], strides = [1, 1]} : vector<16x96xf32> to vector<16x32xf32>
    %101 = vector.shape_cast %100 : vector<16x32xf32> to vector<2x8x4x8xf32>
    %102 = tpu.transpose %101, [0, 2, 1, 3] : vector<2x8x4x8xf32> -> vector<2x4x8x8xf32>
    %103 = vector.shape_cast %102 : vector<2x4x8x8xf32> to vector<8x8x8xf32>
    "tpu.trace_start"() <{level = 10 : i32, message = "nqf,nkf->nqk"}> : () -> ()
    %cst_35 = arith.constant dense<0.000000e+00> : vector<8x8x8xf32>
    %104 = tpu.matmul %95, %99, %cst_35 {dimension_numbers = #tpu.dot_dimension_numbers<[2], [2], [1], [1], [0, 0, 0, 1, 1, 1], [0], [0]>} : vector<8x8x8xf32>, vector<8x8x8xf32>, vector<8x8x8xf32> -> vector<8x8x8xf32>
    "tpu.trace_stop"() : () -> ()
    %cst_36 = arith.constant 0.353553385 : f32
    %105 = vector.broadcast %cst_36 : f32 to vector<8x8x8xf32>
    %106 = arith.mulf %104, %105 : vector<8x8x8xf32>
    %cst_37 = arith.constant -1.000000e+30 : f32
    %107 = vector.shape_cast %58 : vector<1x8x8xi1> to vector<1x8x8xi1>
    %108 = vector.broadcast %107 : vector<1x8x8xi1> to vector<8x8x8xi1>
    %109 = vector.broadcast %cst_37 : f32 to vector<8x8x8xf32>
    %110 = arith.select %108, %106, %109 : vector<8x8x8xi1>, vector<8x8x8xf32>
    %cst_38 = arith.constant dense<0xFF800000> : vector<8x8xf32>
    %111 = vector.multi_reduction <maximumf>, %110, %cst_38 [2] : vector<8x8x8xf32> to vector<8x8xf32>
    %112 = vector.shape_cast %111 : vector<8x8xf32> to vector<8x8x1xf32>
    %113 = vector.broadcast %112 : vector<8x8x1xf32> to vector<8x8x8xf32>
    %114 = arith.subf %110, %113 : vector<8x8x8xf32>
    %115 = math.exp %114 : vector<8x8x8xf32>
    %cst_39 = arith.constant dense<0.000000e+00> : vector<8x8xf32>
    %116 = vector.multi_reduction <add>, %115, %cst_39 [2] : vector<8x8x8xf32> to vector<8x8xf32>
    %117 = vector.shape_cast %116 : vector<8x8xf32> to vector<8x8x1xf32>
    %118 = tpu.reciprocal %117 {approx = true} : vector<8x8x1xf32> -> vector<8x8x1xf32>
    %119 = vector.broadcast %118 : vector<8x8x1xf32> to vector<8x8x8xf32>
    %120 = arith.mulf %115, %119 : vector<8x8x8xf32>
    "tpu.trace_start"() <{level = 10 : i32, message = "nqk,nkf->nqf"}> : () -> ()
    %cst_40 = arith.constant dense<0.000000e+00> : vector<8x8x8xf32>
    %121 = tpu.matmul %120, %103, %cst_40 {dimension_numbers = #tpu.dot_dimension_numbers<[2], [1], [1], [2], [0, 0, 0, 1, 1, 2], [0], [0]>} : vector<8x8x8xf32>, vector<8x8x8xf32>, vector<8x8x8xf32> -> vector<8x8x8xf32>
    "tpu.trace_stop"() : () -> ()
    %122 = vector.shape_cast %121 : vector<8x8x8xf32> to vector<2x4x8x8xf32>
    %123 = tpu.transpose %122, [0, 2, 1, 3] : vector<2x4x8x8xf32> -> vector<2x8x4x8xf32>
    %124 = vector.shape_cast %123 : vector<2x8x4x8xf32> to vector<16x32xf32>
    %c0_41 = arith.constant 0 : index
    %c0_42 = arith.constant 0 : index
    %c0_43 = arith.constant 0 : index
    %125 = vector.load %arg7[%c0_41, %c0_42, %c0_43] : memref<2x32x32xf32, #tpu.memory_space<vmem>>, vector<1x32x32xf32>
    %126 = vector.shape_cast %125 : vector<1x32x32xf32> to vector<32x32xf32>
    %cst_44 = arith.constant dense<0.000000e+00> : vector<16x32xf32>
    %127 = tpu.matmul %124, %126, %cst_44 {dimension_numbers = #tpu.dot_dimension_numbers<[1], [0], [0], [1], [0, 0, 1, 1], [], []>} : vector<16x32xf32>, vector<32x32xf32>, vector<16x32xf32> -> vector<16x32xf32>
    %c0_45 = arith.constant 0 : index
    %c0_46 = arith.constant 0 : index
    %c0_47 = arith.constant 0 : index
    %128 = vector.load %arg8[%c0_45, %c0_46, %c0_47] : memref<2x1x32xf32, #tpu.memory_space<vmem>>, vector<1x1x32xf32>
    %129 = vector.shape_cast %128 : vector<1x1x32xf32> to vector<1x32xf32>
    %130 = vector.broadcast %129 : vector<1x32xf32> to vector<16x32xf32>
    %131 = arith.addf %127, %130 : vector<16x32xf32>
    %132 = arith.addf %54, %131 : vector<16x32xf32>
    %c0_48 = arith.constant 0 : index
    %c0_49 = arith.constant 0 : index
    %c0_50 = arith.constant 0 : index
    %133 = vector.load %arg9[%c0_48, %c0_49, %c0_50] : memref<2x1x32xf32, #tpu.memory_space<vmem>>, vector<1x1x32xf32>
    %134 = vector.shape_cast %133 : vector<1x1x32xf32> to vector<1x32xf32>
    %c0_51 = arith.constant 0 : index
    %c0_52 = arith.constant 0 : index
    %c0_53 = arith.constant 0 : index
    %135 = vector.load %arg10[%c0_51, %c0_52, %c0_53] : memref<2x1x32xf32, #tpu.memory_space<vmem>>, vector<1x1x32xf32>
    %136 = vector.shape_cast %135 : vector<1x1x32xf32> to vector<1x32xf32>
    %cst_54 = arith.constant dense<0.000000e+00> : vector<16xf32>
    %137 = vector.multi_reduction <add>, %132, %cst_54 [1] : vector<16x32xf32> to vector<16xf32>
    %138 = vector.shape_cast %137 : vector<16xf32> to vector<16x1xf32>
    %cst_55 = arith.constant 3.200000e+01 : f32
    %139 = vector.broadcast %cst_55 : f32 to vector<16x1xf32>
    %140 = arith.divf %138, %139 : vector<16x1xf32>
    %141 = arith.mulf %132, %132 : vector<16x32xf32>
    %cst_56 = arith.constant dense<0.000000e+00> : vector<16xf32>
    %142 = vector.multi_reduction <add>, %141, %cst_56 [1] : vector<16x32xf32> to vector<16xf32>
    %143 = vector.shape_cast %142 : vector<16xf32> to vector<16x1xf32>
    %cst_57 = arith.constant 3.200000e+01 : f32
    %144 = vector.broadcast %cst_57 : f32 to vector<16x1xf32>
    %145 = arith.divf %143, %144 : vector<16x1xf32>
    %146 = arith.mulf %140, %140 : vector<16x1xf32>
    %147 = arith.subf %145, %146 : vector<16x1xf32>
    %cst_58 = arith.constant 9.99999974E-6 : f32
    %148 = vector.broadcast %cst_58 : f32 to vector<16x1xf32>
    %149 = arith.addf %147, %148 : vector<16x1xf32>
    %150 = math.rsqrt %149 : vector<16x1xf32>
    %151 = vector.broadcast %140 : vector<16x1xf32> to vector<16x32xf32>
    %152 = arith.subf %132, %151 : vector<16x32xf32>
    %153 = vector.broadcast %150 : vector<16x1xf32> to vector<16x32xf32>
    %154 = arith.mulf %152, %153 : vector<16x32xf32>
    %155 = vector.broadcast %134 : vector<1x32xf32> to vector<16x32xf32>
    %156 = arith.mulf %154, %155 : vector<16x32xf32>
    %157 = vector.broadcast %136 : vector<1x32xf32> to vector<16x32xf32>
    %158 = arith.addf %156, %157 : vector<16x32xf32>
    %c0_59 = arith.constant 0 : index
    %c0_60 = arith.constant 0 : index
    %c0_61 = arith.constant 0 : index
    %159 = vector.load %arg11[%c0_59, %c0_60, %c0_61] : memref<2x32x64xf32, #tpu.memory_space<vmem>>, vector<1x32x64xf32>
    %160 = vector.shape_cast %159 : vector<1x32x64xf32> to vector<32x64xf32>
    %cst_62 = arith.constant dense<0.000000e+00> : vector<16x64xf32>
    %161 = tpu.matmul %158, %160, %cst_62 {dimension_numbers = #tpu.dot_dimension_numbers<[1], [0], [0], [1], [0, 0, 1, 1], [], []>} : vector<16x32xf32>, vector<32x64xf32>, vector<16x64xf32> -> vector<16x64xf32>
    %c0_63 = arith.constant 0 : index
    %c0_64 = arith.constant 0 : index
    %c0_65 = arith.constant 0 : index
    %162 = vector.load %arg12[%c0_63, %c0_64, %c0_65] : memref<2x1x64xf32, #tpu.memory_space<vmem>>, vector<1x1x64xf32>
    %163 = vector.shape_cast %162 : vector<1x1x64xf32> to vector<1x64xf32>
    %164 = vector.broadcast %163 : vector<1x64xf32> to vector<16x64xf32>
    %165 = arith.addf %161, %164 : vector<16x64xf32>
    %cst_66 = arith.constant 5.000000e-01 : f32
    %166 = vector.broadcast %cst_66 : f32 to vector<16x64xf32>
    %167 = arith.mulf %166, %165 : vector<16x64xf32>
    %cst_67 = arith.constant 4.471500e-02 : f32
    %168 = vector.broadcast %cst_67 : f32 to vector<16x64xf32>
    %169 = arith.mulf %168, %165 : vector<16x64xf32>
    %170 = arith.mulf %169, %165 : vector<16x64xf32>
    %171 = arith.mulf %170, %165 : vector<16x64xf32>
    %172 = arith.addf %165, %171 : vector<16x64xf32>
    %cst_68 = arith.constant 0.797884583 : f32
    %173 = vector.broadcast %cst_68 : f32 to vector<16x64xf32>
    %174 = arith.mulf %173, %172 : vector<16x64xf32>
    %175 = math.tanh %174 : vector<16x64xf32>
    %cst_69 = arith.constant 1.000000e+00 : f32
    %176 = vector.broadcast %cst_69 : f32 to vector<16x64xf32>
    %177 = arith.addf %176, %175 : vector<16x64xf32>
    %178 = arith.mulf %167, %177 : vector<16x64xf32>
    %c0_70 = arith.constant 0 : index
    %c0_71 = arith.constant 0 : index
    %c0_72 = arith.constant 0 : index
    %179 = vector.load %arg13[%c0_70, %c0_71, %c0_72] : memref<2x64x32xf32, #tpu.memory_space<vmem>>, vector<1x64x32xf32>
    %180 = vector.shape_cast %179 : vector<1x64x32xf32> to vector<64x32xf32>
    %cst_73 = arith.constant dense<0.000000e+00> : vector<16x32xf32>
    %181 = tpu.matmul %178, %180, %cst_73 {dimension_numbers = #tpu.dot_dimension_numbers<[1], [0], [0], [1], [0, 0, 1, 1], [], []>} : vector<16x64xf32>, vector<64x32xf32>, vector<16x32xf32> -> vector<16x32xf32>
    %c0_74 = arith.constant 0 : index
    %c0_75 = arith.constant 0 : index
    %c0_76 = arith.constant 0 : index
    %182 = vector.load %arg14[%c0_74, %c0_75, %c0_76] : memref<2x1x32xf32, #tpu.memory_space<vmem>>, vector<1x1x32xf32>
    %183 = vector.shape_cast %182 : vector<1x1x32xf32> to vector<1x32xf32>
    %184 = vector.broadcast %183 : vector<1x32xf32> to vector<16x32xf32>
    %185 = arith.addf %181, %184 : vector<16x32xf32>
    %186 = arith.addf %132, %185 : vector<16x32xf32>
    %c1_77 = arith.constant 1 : index
    %c0_78 = arith.constant 0 : index
    %c0_79 = arith.constant 0 : index
    %187 = vector.load %arg3[%c1_77, %c0_78, %c0_79] : memref<2x1x32xf32, #tpu.memory_space<vmem>>, vector<1x1x32xf32>
    %188 = vector.shape_cast %187 : vector<1x1x32xf32> to vector<1x32xf32>
    %c1_80 = arith.constant 1 : index
    %c0_81 = arith.constant 0 : index
    %c0_82 = arith.constant 0 : index
    %189 = vector.load %arg4[%c1_80, %c0_81, %c0_82] : memref<2x1x32xf32, #tpu.memory_space<vmem>>, vector<1x1x32xf32>
    %190 = vector.shape_cast %189 : vector<1x1x32xf32> to vector<1x32xf32>
    %cst_83 = arith.constant dense<0.000000e+00> : vector<16xf32>
    %191 = vector.multi_reduction <add>, %186, %cst_83 [1] : vector<16x32xf32> to vector<16xf32>
    %192 = vector.shape_cast %191 : vector<16xf32> to vector<16x1xf32>
    %cst_84 = arith.constant 3.200000e+01 : f32
    %193 = vector.broadcast %cst_84 : f32 to vector<16x1xf32>
    %194 = arith.divf %192, %193 : vector<16x1xf32>
    %195 = arith.mulf %186, %186 : vector<16x32xf32>
    %cst_85 = arith.constant dense<0.000000e+00> : vector<16xf32>
    %196 = vector.multi_reduction <add>, %195, %cst_85 [1] : vector<16x32xf32> to vector<16xf32>
    %197 = vector.shape_cast %196 : vector<16xf32> to vector<16x1xf32>
    %cst_86 = arith.constant 3.200000e+01 : f32
    %198 = vector.broadcast %cst_86 : f32 to vector<16x1xf32>
    %199 = arith.divf %197, %198 : vector<16x1xf32>
    %200 = arith.mulf %194, %194 : vector<16x1xf32>
    %201 = arith.subf %199, %200 : vector<16x1xf32>
    %cst_87 = arith.constant 9.99999974E-6 : f32
    %202 = vector.broadcast %cst_87 : f32 to vector<16x1xf32>
    %203 = arith.addf %201, %202 : vector<16x1xf32>
    %204 = math.rsqrt %203 : vector<16x1xf32>
    %205 = vector.broadcast %194 : vector<16x1xf32> to vector<16x32xf32>
    %206 = arith.subf %186, %205 : vector<16x32xf32>
    %207 = vector.broadcast %204 : vector<16x1xf32> to vector<16x32xf32>
    %208 = arith.mulf %206, %207 : vector<16x32xf32>
    %209 = vector.broadcast %188 : vector<1x32xf32> to vector<16x32xf32>
    %210 = arith.mulf %208, %209 : vector<16x32xf32>
    %211 = vector.broadcast %190 : vector<1x32xf32> to vector<16x32xf32>
    %212 = arith.addf %210, %211 : vector<16x32xf32>
    %c1_88 = arith.constant 1 : index
    %c0_89 = arith.constant 0 : index
    %c0_90 = arith.constant 0 : index
    %213 = vector.load %arg5[%c1_88, %c0_89, %c0_90] : memref<2x32x96xf32, #tpu.memory_space<vmem>>, vector<1x32x96xf32>
    %214 = vector.shape_cast %213 : vector<1x32x96xf32> to vector<32x96xf32>
    %cst_91 = arith.constant dense<0.000000e+00> : vector<16x96xf32>
    %215 = tpu.matmul %212, %214, %cst_91 {dimension_numbers = #tpu.dot_dimension_numbers<[1], [0], [0], [1], [0, 0, 1, 1], [], []>} : vector<16x32xf32>, vector<32x96xf32>, vector<16x96xf32> -> vector<16x96xf32>
    %c1_92 = arith.constant 1 : index
    %c0_93 = arith.constant 0 : index
    %c0_94 = arith.constant 0 : index
    %216 = vector.load %arg6[%c1_92, %c0_93, %c0_94] : memref<2x1x96xf32, #tpu.memory_space<vmem>>, vector<1x1x96xf32>
    %217 = vector.shape_cast %216 : vector<1x1x96xf32> to vector<1x96xf32>
    %218 = vector.broadcast %217 : vector<1x96xf32> to vector<16x96xf32>
    %219 = arith.addf %215, %218 : vector<16x96xf32>
    %220 = vector.extract_strided_slice %219 {offsets = [0, 0], sizes = [16, 32], strides = [1, 1]} : vector<16x96xf32> to vector<16x32xf32>
    %221 = vector.shape_cast %220 : vector<16x32xf32> to vector<2x8x4x8xf32>
    %222 = tpu.transpose %221, [0, 2, 1, 3] : vector<2x8x4x8xf32> -> vector<2x4x8x8xf32>
    %223 = vector.shape_cast %222 : vector<2x4x8x8xf32> to vector<8x8x8xf32>
    %224 = vector.extract_strided_slice %219 {offsets = [0, 32], sizes = [16, 32], strides = [1, 1]} : vector<16x96xf32> to vector<16x32xf32>
    %225 = vector.shape_cast %224 : vector<16x32xf32> to vector<2x8x4x8xf32>
    %226 = tpu.transpose %225, [0, 2, 1, 3] : vector<2x8x4x8xf32> -> vector<2x4x8x8xf32>
    %227 = vector.shape_cast %226 : vector<2x4x8x8xf32> to vector<8x8x8xf32>
    %228 = vector.extract_strided_slice %219 {offsets = [0, 64], sizes = [16, 32], strides = [1, 1]} : vector<16x96xf32> to vector<16x32xf32>
    %229 = vector.shape_cast %228 : vector<16x32xf32> to vector<2x8x4x8xf32>
    %230 = tpu.transpose %229, [0, 2, 1, 3] : vector<2x8x4x8xf32> -> vector<2x4x8x8xf32>
    %231 = vector.shape_cast %230 : vector<2x4x8x8xf32> to vector<8x8x8xf32>
    "tpu.trace_start"() <{level = 10 : i32, message = "nqf,nkf->nqk"}> : () -> ()
    %cst_95 = arith.constant dense<0.000000e+00> : vector<8x8x8xf32>
    %232 = tpu.matmul %223, %227, %cst_95 {dimension_numbers = #tpu.dot_dimension_numbers<[2], [2], [1], [1], [0, 0, 0, 1, 1, 1], [0], [0]>} : vector<8x8x8xf32>, vector<8x8x8xf32>, vector<8x8x8xf32> -> vector<8x8x8xf32>
    "tpu.trace_stop"() : () -> ()
    %cst_96 = arith.constant 0.353553385 : f32
    %233 = vector.broadcast %cst_96 : f32 to vector<8x8x8xf32>
    %234 = arith.mulf %232, %233 : vector<8x8x8xf32>
    %cst_97 = arith.constant -1.000000e+30 : f32
    %235 = vector.shape_cast %58 : vector<1x8x8xi1> to vector<1x8x8xi1>
    %236 = vector.broadcast %235 : vector<1x8x8xi1> to vector<8x8x8xi1>
    %237 = vector.broadcast %cst_97 : f32 to vector<8x8x8xf32>
    %238 = arith.select %236, %234, %237 : vector<8x8x8xi1>, vector<8x8x8xf32>
    %cst_98 = arith.constant dense<0xFF800000> : vector<8x8xf32>
    %239 = vector.multi_reduction <maximumf>, %238, %cst_98 [2] : vector<8x8x8xf32> to vector<8x8xf32>
    %240 = vector.shape_cast %239 : vector<8x8xf32> to vector<8x8x1xf32>
    %241 = vector.broadcast %240 : vector<8x8x1xf32> to vector<8x8x8xf32>
    %242 = arith.subf %238, %241 : vector<8x8x8xf32>
    %243 = math.exp %242 : vector<8x8x8xf32>
    %cst_99 = arith.constant dense<0.000000e+00> : vector<8x8xf32>
    %244 = vector.multi_reduction <add>, %243, %cst_99 [2] : vector<8x8x8xf32> to vector<8x8xf32>
    %245 = vector.shape_cast %244 : vector<8x8xf32> to vector<8x8x1xf32>
    %246 = tpu.reciprocal %245 {approx = true} : vector<8x8x1xf32> -> vector<8x8x1xf32>
    %247 = vector.broadcast %246 : vector<8x8x1xf32> to vector<8x8x8xf32>
    %248 = arith.mulf %243, %247 : vector<8x8x8xf32>
    "tpu.trace_start"() <{level = 10 : i32, message = "nqk,nkf->nqf"}> : () -> ()
    %cst_100 = arith.constant dense<0.000000e+00> : vector<8x8x8xf32>
    %249 = tpu.matmul %248, %231, %cst_100 {dimension_numbers = #tpu.dot_dimension_numbers<[2], [1], [1], [2], [0, 0, 0, 1, 1, 2], [0], [0]>} : vector<8x8x8xf32>, vector<8x8x8xf32>, vector<8x8x8xf32> -> vector<8x8x8xf32>
    "tpu.trace_stop"() : () -> ()
    %250 = vector.shape_cast %249 : vector<8x8x8xf32> to vector<2x4x8x8xf32>
    %251 = tpu.transpose %250, [0, 2, 1, 3] : vector<2x4x8x8xf32> -> vector<2x8x4x8xf32>
    %252 = vector.shape_cast %251 : vector<2x8x4x8xf32> to vector<16x32xf32>
    %c1_101 = arith.constant 1 : index
    %c0_102 = arith.constant 0 : index
    %c0_103 = arith.constant 0 : index
    %253 = vector.load %arg7[%c1_101, %c0_102, %c0_103] : memref<2x32x32xf32, #tpu.memory_space<vmem>>, vector<1x32x32xf32>
    %254 = vector.shape_cast %253 : vector<1x32x32xf32> to vector<32x32xf32>
    %cst_104 = arith.constant dense<0.000000e+00> : vector<16x32xf32>
    %255 = tpu.matmul %252, %254, %cst_104 {dimension_numbers = #tpu.dot_dimension_numbers<[1], [0], [0], [1], [0, 0, 1, 1], [], []>} : vector<16x32xf32>, vector<32x32xf32>, vector<16x32xf32> -> vector<16x32xf32>
    %c1_105 = arith.constant 1 : index
    %c0_106 = arith.constant 0 : index
    %c0_107 = arith.constant 0 : index
    %256 = vector.load %arg8[%c1_105, %c0_106, %c0_107] : memref<2x1x32xf32, #tpu.memory_space<vmem>>, vector<1x1x32xf32>
    %257 = vector.shape_cast %256 : vector<1x1x32xf32> to vector<1x32xf32>
    %258 = vector.broadcast %257 : vector<1x32xf32> to vector<16x32xf32>
    %259 = arith.addf %255, %258 : vector<16x32xf32>
    %260 = arith.addf %186, %259 : vector<16x32xf32>
    %c1_108 = arith.constant 1 : index
    %c0_109 = arith.constant 0 : index
    %c0_110 = arith.constant 0 : index
    %261 = vector.load %arg9[%c1_108, %c0_109, %c0_110] : memref<2x1x32xf32, #tpu.memory_space<vmem>>, vector<1x1x32xf32>
    %262 = vector.shape_cast %261 : vector<1x1x32xf32> to vector<1x32xf32>
    %c1_111 = arith.constant 1 : index
    %c0_112 = arith.constant 0 : index
    %c0_113 = arith.constant 0 : index
    %263 = vector.load %arg10[%c1_111, %c0_112, %c0_113] : memref<2x1x32xf32, #tpu.memory_space<vmem>>, vector<1x1x32xf32>
    %264 = vector.shape_cast %263 : vector<1x1x32xf32> to vector<1x32xf32>
    %cst_114 = arith.constant dense<0.000000e+00> : vector<16xf32>
    %265 = vector.multi_reduction <add>, %260, %cst_114 [1] : vector<16x32xf32> to vector<16xf32>
    %266 = vector.shape_cast %265 : vector<16xf32> to vector<16x1xf32>
    %cst_115 = arith.constant 3.200000e+01 : f32
    %267 = vector.broadcast %cst_115 : f32 to vector<16x1xf32>
    %268 = arith.divf %266, %267 : vector<16x1xf32>
    %269 = arith.mulf %260, %260 : vector<16x32xf32>
    %cst_116 = arith.constant dense<0.000000e+00> : vector<16xf32>
    %270 = vector.multi_reduction <add>, %269, %cst_116 [1] : vector<16x32xf32> to vector<16xf32>
    %271 = vector.shape_cast %270 : vector<16xf32> to vector<16x1xf32>
    %cst_117 = arith.constant 3.200000e+01 : f32
    %272 = vector.broadcast %cst_117 : f32 to vector<16x1xf32>
    %273 = arith.divf %271, %272 : vector<16x1xf32>
    %274 = arith.mulf %268, %268 : vector<16x1xf32>
    %275 = arith.subf %273, %274 : vector<16x1xf32>
    %cst_118 = arith.constant 9.99999974E-6 : f32
    %276 = vector.broadcast %cst_118 : f32 to vector<16x1xf32>
    %277 = arith.addf %275, %276 : vector<16x1xf32>
    %278 = math.rsqrt %277 : vector<16x1xf32>
    %279 = vector.broadcast %268 : vector<16x1xf32> to vector<16x32xf32>
    %280 = arith.subf %260, %279 : vector<16x32xf32>
    %281 = vector.broadcast %278 : vector<16x1xf32> to vector<16x32xf32>
    %282 = arith.mulf %280, %281 : vector<16x32xf32>
    %283 = vector.broadcast %262 : vector<1x32xf32> to vector<16x32xf32>
    %284 = arith.mulf %282, %283 : vector<16x32xf32>
    %285 = vector.broadcast %264 : vector<1x32xf32> to vector<16x32xf32>
    %286 = arith.addf %284, %285 : vector<16x32xf32>
    %c1_119 = arith.constant 1 : index
    %c0_120 = arith.constant 0 : index
    %c0_121 = arith.constant 0 : index
    %287 = vector.load %arg11[%c1_119, %c0_120, %c0_121] : memref<2x32x64xf32, #tpu.memory_space<vmem>>, vector<1x32x64xf32>
    %288 = vector.shape_cast %287 : vector<1x32x64xf32> to vector<32x64xf32>
    %cst_122 = arith.constant dense<0.000000e+00> : vector<16x64xf32>
    %289 = tpu.matmul %286, %288, %cst_122 {dimension_numbers = #tpu.dot_dimension_numbers<[1], [0], [0], [1], [0, 0, 1, 1], [], []>} : vector<16x32xf32>, vector<32x64xf32>, vector<16x64xf32> -> vector<16x64xf32>
    %c1_123 = arith.constant 1 : index
    %c0_124 = arith.constant 0 : index
    %c0_125 = arith.constant 0 : index
    %290 = vector.load %arg12[%c1_123, %c0_124, %c0_125] : memref<2x1x64xf32, #tpu.memory_space<vmem>>, vector<1x1x64xf32>
    %291 = vector.shape_cast %290 : vector<1x1x64xf32> to vector<1x64xf32>
    %292 = vector.broadcast %291 : vector<1x64xf32> to vector<16x64xf32>
    %293 = arith.addf %289, %292 : vector<16x64xf32>
    %cst_126 = arith.constant 5.000000e-01 : f32
    %294 = vector.broadcast %cst_126 : f32 to vector<16x64xf32>
    %295 = arith.mulf %294, %293 : vector<16x64xf32>
    %cst_127 = arith.constant 4.471500e-02 : f32
    %296 = vector.broadcast %cst_127 : f32 to vector<16x64xf32>
    %297 = arith.mulf %296, %293 : vector<16x64xf32>
    %298 = arith.mulf %297, %293 : vector<16x64xf32>
    %299 = arith.mulf %298, %293 : vector<16x64xf32>
    %300 = arith.addf %293, %299 : vector<16x64xf32>
    %cst_128 = arith.constant 0.797884583 : f32
    %301 = vector.broadcast %cst_128 : f32 to vector<16x64xf32>
    %302 = arith.mulf %301, %300 : vector<16x64xf32>
    %303 = math.tanh %302 : vector<16x64xf32>
    %cst_129 = arith.constant 1.000000e+00 : f32
    %304 = vector.broadcast %cst_129 : f32 to vector<16x64xf32>
    %305 = arith.addf %304, %303 : vector<16x64xf32>
    %306 = arith.mulf %295, %305 : vector<16x64xf32>
    %c1_130 = arith.constant 1 : index
    %c0_131 = arith.constant 0 : index
    %c0_132 = arith.constant 0 : index
    %307 = vector.load %arg13[%c1_130, %c0_131, %c0_132] : memref<2x64x32xf32, #tpu.memory_space<vmem>>, vector<1x64x32xf32>
    %308 = vector.shape_cast %307 : vector<1x64x32xf32> to vector<64x32xf32>
    %cst_133 = arith.constant dense<0.000000e+00> : vector<16x32xf32>
    %309 = tpu.matmul %306, %308, %cst_133 {dimension_numbers = #tpu.dot_dimension_numbers<[1], [0], [0], [1], [0, 0, 1, 1], [], []>} : vector<16x64xf32>, vector<64x32xf32>, vector<16x32xf32> -> vector<16x32xf32>
    %c1_134 = arith.constant 1 : index
    %c0_135 = arith.constant 0 : index
    %c0_136 = arith.constant 0 : index
    %310 = vector.load %arg14[%c1_134, %c0_135, %c0_136] : memref<2x1x32xf32, #tpu.memory_space<vmem>>, vector<1x1x32xf32>
    %311 = vector.shape_cast %310 : vector<1x1x32xf32> to vector<1x32xf32>
    %312 = vector.broadcast %311 : vector<1x32xf32> to vector<16x32xf32>
    %313 = arith.addf %309, %312 : vector<16x32xf32>
    %314 = arith.addf %260, %313 : vector<16x32xf32>
    %c0_137 = arith.constant 0 : index
    %c0_138 = arith.constant 0 : index
    %315 = vector.load %arg15[%c0_137, %c0_138] : memref<1x32xf32, #tpu.memory_space<vmem>>, vector<1x32xf32>
    %c0_139 = arith.constant 0 : index
    %c0_140 = arith.constant 0 : index
    %316 = vector.load %arg16[%c0_139, %c0_140] : memref<1x32xf32, #tpu.memory_space<vmem>>, vector<1x32xf32>
    %cst_141 = arith.constant dense<0.000000e+00> : vector<16xf32>
    %317 = vector.multi_reduction <add>, %314, %cst_141 [1] : vector<16x32xf32> to vector<16xf32>
    %318 = vector.shape_cast %317 : vector<16xf32> to vector<16x1xf32>
    %cst_142 = arith.constant 3.200000e+01 : f32
    %319 = vector.broadcast %cst_142 : f32 to vector<16x1xf32>
    %320 = arith.divf %318, %319 : vector<16x1xf32>
    %321 = arith.mulf %314, %314 : vector<16x32xf32>
    %cst_143 = arith.constant dense<0.000000e+00> : vector<16xf32>
    %322 = vector.multi_reduction <add>, %321, %cst_143 [1] : vector<16x32xf32> to vector<16xf32>
    %323 = vector.shape_cast %322 : vector<16xf32> to vector<16x1xf32>
    %cst_144 = arith.constant 3.200000e+01 : f32
    %324 = vector.broadcast %cst_144 : f32 to vector<16x1xf32>
    %325 = arith.divf %323, %324 : vector<16x1xf32>
    %326 = arith.mulf %320, %320 : vector<16x1xf32>
    %327 = arith.subf %325, %326 : vector<16x1xf32>
    %cst_145 = arith.constant 9.99999974E-6 : f32
    %328 = vector.broadcast %cst_145 : f32 to vector<16x1xf32>
    %329 = arith.addf %327, %328 : vector<16x1xf32>
    %330 = math.rsqrt %329 : vector<16x1xf32>
    %331 = vector.broadcast %320 : vector<16x1xf32> to vector<16x32xf32>
    %332 = arith.subf %314, %331 : vector<16x32xf32>
    %333 = vector.broadcast %330 : vector<16x1xf32> to vector<16x32xf32>
    %334 = arith.mulf %332, %333 : vector<16x32xf32>
    %335 = vector.broadcast %315 : vector<1x32xf32> to vector<16x32xf32>
    %336 = arith.mulf %334, %335 : vector<16x32xf32>
    %337 = vector.broadcast %316 : vector<1x32xf32> to vector<16x32xf32>
    %338 = arith.addf %336, %337 : vector<16x32xf32>
    %c0_146 = arith.constant 0 : index
    %c0_147 = arith.constant 0 : index
    %339 = vector.load %arg17[%c0_146, %c0_147] : memref<32x128xf32, #tpu.memory_space<vmem>>, vector<32x128xf32>
    %cst_148 = arith.constant dense<0.000000e+00> : vector<16x128xf32>
    %340 = tpu.matmul %338, %339, %cst_148 {dimension_numbers = #tpu.dot_dimension_numbers<[1], [0], [0], [1], [0, 0, 1, 1], [], []>} : vector<16x32xf32>, vector<32x128xf32>, vector<16x128xf32> -> vector<16x128xf32>
    %c0_149 = arith.constant 0 : index
    %c0_150 = arith.constant 0 : index
    %341 = vector.load %arg18[%c0_149, %c0_150] : memref<16x128xf32, #tpu.memory_space<vmem>>, vector<16x128xf32>
    tpu.vector_store %arg18[%c0_149, %c0_150], %340 {strides = array<i32>} : memref<16x128xf32, #tpu.memory_space<vmem>>, vector<16x128xf32>,
    return
  }
}

</mosaic_0001>

<bundles_post_ra>
// kernel: tpu_custom_call.1
= control target key start
LH: loop header
LB: loop body
LE: loop exit
PB: predicated region body
PF: predicated region fallthrough
CT: control target
= control target key end

     0   :  { %s5767_s0 = inlined_call_operand.vmem [shape: s32[16], index: 0, kind: input, shape index: {}]   ;;  %s5768_s1 = inlined_call_operand.vmem [shape: f32[128,32], index: 1, kind: input, shape index: {}]   ;;  %s5769_s2 = inlined_call_operand.vmem [shape: f32[16,32], index: 2, kind: input, shape index: {}]   ;;  %s5770_s3 = inlined_call_operand.vmem [shape: f32[2,1,32], index: 3, kind: input, shape index: {}]   ;;  %s5771_s4 = inlined_call_operand.vmem [shape: f32[2,1,32], index: 4, kind: input, shape index: {}]   ;;  %s5772_s5 = inlined_call_operand.vmem [shape: f32[2,32,96], index: 5, kind: input, shape index: {}]   ;;  %s5773_s6 = inlined_call_operand.vmem [shape: f32[2,1,96], index: 6, kind: input, shape index: {}]   ;;  %s5774_s7 = inlined_call_operand.vmem [shape: f32[2,32,32], index: 7, kind: input, shape index: {}]   ;;  %s5775_s8 = inlined_call_operand.vmem [shape: f32[2,1,32], index: 8, kind: input, shape index: {}]   ;;  %s5776_s9 = inlined_call_operand.vmem [shape: f32[2,1,32], index: 9, kind: input, shape index: {}]   ;;  %s5777_s10 = inlined_call_operand.vmem [shape: f32[2,1,32], index: 10, kind: input, shape index: {}]   ;;  %s5778_s11 = inlined_call_operand.vmem [shape: f32[2,32,64], index: 11, kind: input, shape index: {}]   ;;  %s5779_s12 = inlined_call_operand.vmem [shape: f32[2,1,64], index: 12, kind: input, shape index: {}]   ;;  %s5780_s13 = inlined_call_operand.vmem [shape: f32[2,64,32], index: 13, kind: input, shape index: {}]   ;;  %s5781_s14 = inlined_call_operand.vmem [shape: f32[2,1,32], index: 14, kind: input, shape index: {}]   ;;  %s5782_s15 = inlined_call_operand.vmem [shape: f32[1,32], index: 15, kind: input, shape index: {}]   ;;  %s5783_s16 = inlined_call_operand.vmem [shape: f32[1,32], index: 16, kind: input, shape index: {}]   ;;  %s5784_s17 = inlined_call_operand.vmem [shape: f32[32,128], index: 17, kind: input, shape index: {}]   ;;  %s5785_s18 = inlined_call_operand.hbm [shape: f32[16,128], index: 18, kind: output, shape index: {}]  }
   0x1   :  { %5789 = sst [smem:[#allocation8_spill]] %s5767_s0 }
   0x2   :  { %5790 = sst [smem:[#allocation9_spill]] %s5768_s1 }
   0x3   :  { %5791 = sst [smem:[#allocation10_spill]] %s5769_s2 }
   0x4   :  { %5792 = sst [smem:[#allocation11_spill]] %s5781_s14 }
   0x5   :  { %5793 = sst [smem:[#allocation12_spill]] %s5782_s15 }
   0x6   :  { %5794 = sst [smem:[#allocation13_spill]] %s5783_s16 }
   0x7   :  { %5795 = sst [smem:[#allocation14_spill]] %s5784_s17 }
   0x8   :  { %5796 = sst [smem:[#allocation15_spill]] %s5785_s18 }
   0x9   :  { %23 = vsyncpa [#allocation4], 0 }
   0xa   :  { %24 = vsyncpa [#allocation3], 0  ;;  %s5797_s29 = sld [smem:[#allocation8_spill]]  ;;  %s4200_s0 = smov [#allocation2]  }
  0x10   :  { %s30_s30 = sshll.u32 %s5797_s29, 4  ;;  %s31_s30 = int_to_ptr.vmem [resolvable:$true] %s30_s30 }
  0x11   :  { %33 = dma.vmem_to_smem %s31_s30, 16, %s4200_s0, [#allocation4]  }
  0x12   :  { %4196 = dma.done.wait [#allocation4], 16  }
  0x13   :  { %4197 = vsyncadd [#allocation4], 4294967280 }
  0x14   :  { %72 = sfence }
  0x15   :  { %s73_s19 = sld [smem:[#allocation2]]  ;;  %vm163_vm0 = vcmask 1040384   ;;  %vm165_vm1 = vcmask 1041408   ;;  %vm167_vm2 = vcmask 1042432   ;;  %vm169_vm3 = vcmask 1043456   ;;  %v263_v62 = vld [vmem:[%s5772_s5 + $0x18] sm:$0xff] }
  0x16   :  { %s3885_s1 = sld [smem:[#allocation2 + $0x1]]  ;;  %vm171_vm4 = vcmask 1044480   ;;  %vm173_vm5 = vcmask 1045504   ;;  %vm175_vm6 = vcmask 1046528   ;;  %vm194_vm7 = vcmask 261120   ;;  %v262_v63 = vld [vmem:[%s5772_s5 + $0x10] sm:$0xff]  ;;  %286 = vmatpush.msra.mxu0 %v263_v62 }
  0x17   :  { %s3886_s20 = sld [smem:[#allocation2 + $0x2]]  ;;  %v4201_v53 = vmov 32.0   ;;  %vm318_vm15 = vcmask 1047556  }
  0x18   :  { %s3887_s21 = sld [smem:[#allocation2 + $0x3]]  ;;  %4066 = vrcp.f32 %v4201_v53  ;;  %287 = vmatpush.msra.mxu0 %v262_v63 }
  0x19   :  { %s3888_s22 = sld [smem:[#allocation2 + $0x4]] }
  0x1a   :  { %s3889_s2 = sld [smem:[#allocation2 + $0x5]] }
  0x1b   :  { %s5798_s25 = sld [smem:[#allocation9_spill]] }
  0x1c   :  { %s4315_s18 = sld [smem:[#allocation2 + $0x6]] }
  0x1d   :  { %s4320_s30 = sld [smem:[#allocation2 + $0x7]] }
  0x1e   :  { %s4325_s17 = sld [smem:[#allocation2 + $0x8]]  ;;  %v4067_v54 = vpop.eup %4066 }
  0x1f   :  { %s4330_s24 = sld [smem:[#allocation2 + $0x9]]  ;;  %v202_v55 = vmul.f32 32.0, %v4067_v54  ;;  %vm206_vm8 = vweird.f32 %v4067_v54 }
  0x20   :  { %s4335_s16 = sld [smem:[#allocation2 + $0xa]] }
  0x21   :  { %s74_s26 = scalar_lea.vmem %s5798_s25, %s73_s19  ;;  %s77_s29 = scalar_lea.vmem %s5798_s25, %s3885_s1  ;;  %v203_v56 = vsub.f32 1.0, %v202_v55  ;;  %v4207_v55 = vmov 1934713408  }
  0x22   :  { %v75_v0 = vld [vmem:[%s74_s26] sm:$0x1]  ;;  %s80_s15 = scalar_lea.vmem %s5798_s25, %s3886_s20  ;;  %s83_s19 = scalar_lea.vmem %s5798_s25, %s3887_s21 }
  0x23   :  { %v78_v1 = vld [vmem:[%s77_s29] sm:$0x1]  ;;  %s86_s27 = scalar_lea.vmem %s5798_s25, %s3888_s22  ;;  %s89_s14 = scalar_lea.vmem %s5798_s25, %s3889_s2  ;;  %v204_v57 = vmul.f32 %v4067_v54, %v203_v56  ;;  %v347_v56 = vunpack.c.l.s4 %v4207_v55 }
  0x24   :  { %v81_v2 = vld [vmem:[%s80_s15] sm:$0x1]  ;;  %v122_v3 = vrot.slane %v78_v1, 7  ;;  %s4341_s21 = sld [smem:[#allocation2 + $0xb]]  ;;  %s92_s22 = scalar_lea.vmem %s5798_s25, %s4315_s18 }
  0x25   :  { %v84_v4 = vld [vmem:[%s83_s19] sm:$0x1]  ;;  %v125_v5 = vrot.slane %v81_v2, 6  ;;  %s4348_s0 = sld [smem:[#allocation2 + $0xc]]  ;;  %s95_s19 = scalar_lea.vmem %s5798_s25, %s4320_s30  ;;  %v205_v58 = vadd.f32 %v4067_v54, %v204_v57  ;;  %v261_v2 = vld [vmem:[%s5772_s5 + $0x8] sm:$0xff] }
  0x26   :  { %v87_v6 = vld [vmem:[%s86_s27] sm:$0x1]  ;;  %v128_v7 = vrot.slane %v84_v4, 5  ;;  %v164_v8 = vsel %vm163_vm0, %v75_v0, %v122_v3  ;;  %s4355_s1 = sld [smem:[#allocation2 + $0xd]]  ;;  %s98_s27 = scalar_lea.vmem %s5798_s25, %s4325_s17  ;;  %288 = vmatpush.msra.mxu0 %v261_v2  ;;  %v4498_v2 = vunpack.c.0.s8 %v347_v56 }
  0x27   :  { %v90_v9 = vld [vmem:[%s89_s14] sm:$0x1]  ;;  %v131_v10 = vrot.slane %v87_v6, 4  ;;  %v166_v11 = vsel %vm165_vm1, %v164_v8, %v125_v5  ;;  %s4362_s15 = sld [smem:[#allocation2 + $0xe]]  ;;  %v4418_v60 = vsel %vm206_vm8, %v4067_v54, %v205_v58  ;;  %s4203_s29 = smov 120  }
  0x28   :  { %v93_v12 = vld [vmem:[%s92_s22] sm:$0x1]  ;;  %v134_v13 = vrot.slane %v90_v9, 3  ;;  %v168_v14 = vsel %vm167_vm2, %v166_v11, %v128_v7  ;;  %s5799_s14 = sld [smem:[#allocation10_spill]]  ;;  %s101_s22 = scalar_lea.vmem %s5798_s25, %s4330_s24 }
  0x29   :  { %v96_v15 = vld [vmem:[%s95_s19] sm:$0x1]  ;;  %v137_v16 = vrot.slane %v93_v12, 2  ;;  %v170_v17 = vsel %vm169_vm3, %v168_v14, %v131_v10  ;;  %s3899_s2 = sld [smem:[#allocation2 + $0xf]]  ;;  %s104_s19 = scalar_lea.vmem %s5798_s25, %s4335_s16 }
  0x2a   :  { %v140_v18 = vrot.slane %v96_v15, 1  ;;  %v172_v19 = vsel %vm171_vm4, %v170_v17, %v134_v13  ;;  %v99_v21 = vld [vmem:[%s98_s27] sm:$0x1]  ;;  %s107_s27 = scalar_lea.vmem %s5798_s25, %s4341_s21  ;;  %s4202_s21 = smov 104  }
  0x2b   :  { %v174_v22 = vsel %vm173_vm5, %v172_v19, %v137_v16  ;;  %v102_v23 = vld [vmem:[%s101_s22] sm:$0x1]  ;;  %s110_s20 = scalar_lea.vmem %s5798_s25, %s4348_s0  ;;  %s4205_s0 = smov 96  }
  0x2c   :  { %v176_v24 = vsel %vm175_vm6, %v174_v22, %v140_v18  ;;  %v105_v25 = vld [vmem:[%s104_s19] sm:$0x1]  ;;  %v143_v26 = vrot.slane %v102_v23, 7  ;;  %s113_s28 = scalar_lea.vmem %s5798_s25, %s4355_s1  ;;  %s4208_s17 = smov 64  }
  0x2d   :  { %v108_v28 = vld [vmem:[%s107_s27] sm:$0x1]  ;;  %v146_v29 = vrot.slane %v105_v25, 6  ;;  %s116_s22 = scalar_lea.vmem %s5798_s25, %s4362_s15  ;;  %s4211_s15 = smov 8  }
  0x2e   :  { %v184_v20 = vld [vmem:[%s5799_s14] sm:$0xff]  ;;  %v149_v31 = vrot.slane %v108_v28, 5  ;;  %v177_v32 = vsel %vm163_vm0, %v99_v21, %v143_v26  ;;  %vm1026_vm0 = vcmask 64512   ;;  %s5802_s24 = sld [smem:[#allocation11_spill]] }
  0x2f   :  { %v4382_v27 = vadd.f32 %v184_v20, %v176_v24  ;;  %v111_v30 = vld [vmem:[%s110_s20] sm:$0x1]  ;;  %v178_v36 = vsel %vm165_vm1, %v177_v32, %v146_v29  ;;  %s119_s1 = scalar_lea.vmem %s5798_s25, %s3899_s2  ;;  %s4210_s25 = smov 16  }
  0x30   :  { %v114_v34 = vld [vmem:[%s113_s28] sm:$0x1]  ;;  %v152_v35 = vrot.slane %v111_v30, 4  ;;  %v179_v39 = vsel %vm167_vm2, %v178_v36, %v149_v31  ;;  %vm1771_vm2 = vcmask 130048   ;;  %s5803_s28 = sld [smem:[#allocation14_spill]] }
  0x31   :  { %v195_v33 = vsel %vm194_vm7, %v4382_v27, 0.0  ;;  %v117_v37 = vld [vmem:[%s116_s22] sm:$0x1]  ;;  %v155_v38 = vrot.slane %v114_v34, 3  ;;  %v210_v43 = vmul.f32 %v4382_v27, %v4382_v27  ;;  %s4204_s22 = smov 112  }
  0x32   :  { %196 = vadd.xlane.f32.xlu0 %v195_v33  ;;  %v120_v40 = vld [vmem:[%s119_s1] sm:$0x1]  ;;  %v158_v41 = vrot.slane %v117_v37, 2  ;;  %v180_v42 = vsel %vm169_vm3, %v179_v39, %v152_v35  ;;  %s4209_s1 = smov 24   ;;  %vm1774_vm3 = vcmask 195584  }
  0x33   :  { %v161_v44 = vrot.slane %v120_v40, 1  ;;  %v181_v45 = vsel %vm171_vm4, %v180_v42, %v155_v38  ;;  %v212_v49 = vsel %vm194_vm7, %v210_v43, 0.0  ;;  %v260_v5 = vld [vmem:[%s5772_s5] sm:$0xff] }
  0x34   :  { %v182_v46 = vsel %vm173_vm5, %v181_v45, %v158_v41  ;;  %289 = vmatpush.msra.mxu0 %v260_v5  ;;  %v4048_v23 = vld [vmem:[%s5770_s3] ss:$0 sm:$0xff] }
  0x35   :  { %v183_v47 = vsel %vm175_vm6, %v182_v46, %v161_v44  ;;  %v4049_v28 = vld [vmem:[%s5771_s4] ss:$0 sm:$0xff]  ;;  %v4206_v46 = vmov 1983009808  }
  0x36   :  { %v4410_v48 = vadd.f32 %v184_v20, %v183_v47  ;;  %v4050_v39 = vld [vmem:[%s5773_s6] ss:$0 sm:$0xff]  ;;  %v323_v47 = vunpack.c.l.s4 %v4206_v46 }
  0x38   :  { %v198_v50 = vsel %vm194_vm7, %v4410_v48, 0.0  ;;  %v211_v51 = vmul.f32 %v4410_v48, %v4410_v48 }
  0x39   :  { %199 = vadd.xlane.f32.xlu1 %v198_v50 }
  0x3a   :  { %213 = vadd.xlane.f32.xlu0 %v212_v49  ;;  %v215_v52 = vsel %vm194_vm7, %v211_v51, 0.0 }
  0x41   :  { %216 = vadd.xlane.f32.xlu1 %v215_v52  ;;  %v4481_v52 = vunpack.c.0.s8 %v323_v47 }
  0xa5   :  { %v197_v59 = vpop.xlane.xlu0 %196 }
  0xa6   :  { %v208_v61 = vmul.f32 %v4418_v60, %v197_v59 }
  0xa8   :  { %v220_v3 = vmul.f32 %v208_v61, %v208_v61  ;;  %v246_v22 = vsub.f32 %v4382_v27, %v208_v61 }
  0xac   :  { %v200_v0 = vpop.xlane.xlu1 %199 }
  0xad   :  { %v214_v1 = vpop.xlane.xlu0 %213  ;;  %v209_v6 = vmul.f32 %v4418_v60, %v200_v0 }
  0xae   :  { %v218_v4 = vmul.f32 %v214_v1, %v4418_v60 }
  0xaf   :  { %v221_v9 = vmul.f32 %v209_v6, %v209_v6  ;;  %v247_v34 = vsub.f32 %v4410_v48, %v209_v6 }
  0xb0   :  { %v222_v7 = vsub.f32 %v218_v4, %v220_v3 }
  0xb2   :  { %v224_v8 = vadd.f32 1e-05, %v222_v7 }
  0xb4   :  { %4068 = vrsqrt.f32 %v224_v8  ;;  %v217_v10 = vpop.xlane.xlu1 %216  ;;  %vm232_vm10 = vweird.f32 %v224_v8 }
  0xb5   :  { %v219_v11 = vmul.f32 %v217_v10, %v4418_v60 }
  0xb7   :  { %v223_v12 = vsub.f32 %v219_v11, %v221_v9 }
  0xb9   :  { %v225_v14 = vadd.f32 1e-05, %v223_v12 }
  0xba   :  { %v4069_v13 = vpop.eup %4068 }
  0xbb   :  { %v227_v15 = vmul.f32 %v4069_v13, %v224_v8  ;;  %4070 = vrsqrt.f32 %v225_v14  ;;  %vm233_vm9 = vweird.f32 %v4069_v13  ;;  %vm242_vm12 = vweird.f32 %v225_v14 }
  0xbc   :  { %vm234_vm11 = vmor %vm232_vm10, %vm233_vm9 }
  0xbd   :  { %v228_v16 = vmul.f32 %v4069_v13, %v227_v15 }
  0xbf   :  { %v229_v17 = vmul.f32 0.5, %v228_v16 }
  0xc1   :  { %v230_v18 = vsub.f32 1.5, %v229_v17  ;;  %v4071_v19 = vpop.eup %4070 }
  0xc2   :  { %v237_v21 = vmul.f32 %v4071_v19, %v225_v14  ;;  %vm243_vm13 = vweird.f32 %v4071_v19 }
  0xc3   :  { %v231_v20 = vmul.f32 %v4069_v13, %v230_v18  ;;  %vm244_vm14 = vmor %vm242_vm12, %vm243_vm13 }
  0xc4   :  { %v238_v24 = vmul.f32 %v4071_v19, %v237_v21 }
  0xc5   :  { %v235_v25 = vsel %vm234_vm11, %v4069_v13, %v231_v20  ;;  %vm1943_vm11 = vcmask 523264  }
  0xc6   :  { %v248_v26 = vmul.f32 %v246_v22, %v235_v25  ;;  %v239_v29 = vmul.f32 0.5, %v238_v24 }
  0xc8   :  { %v253_v30 = vmul.f32 %v4048_v23, %v248_v26  ;;  %v240_v31 = vsub.f32 1.5, %v239_v29 }
  0xca   :  { %v258_v32 = vadd.f32 %v4049_v28, %v253_v30  ;;  %v241_v33 = vmul.f32 %v4071_v19, %v240_v31 }
  0xcc   :  { %3900 = vmatmul.msk.f32.vlgmr.msra.gmra.mxu0 %vm194_vm7, %v258_v32  ;;  %v245_v35 = vsel %vm244_vm14, %v4071_v19, %v241_v33 }
  0xcd   :  { %v249_v36 = vmul.f32 %v247_v34, %v245_v35 }
  0xcf   :  { %v254_v37 = vmul.f32 %v4048_v23, %v249_v36 }
  0xd1   :  { %v259_v38 = vadd.f32 %v4049_v28, %v254_v37 }
  0xd4   :  { %3901 = vmatmul.msk.f32.gmra.mxu0 %vm194_vm7, %v259_v38 }
 0x149   :  { %v291_v40 = vpop.f32.mrf.mxu0 }
 0x14a   :  { %v4449_v41 = vadd.f32 %v4050_v39, %v291_v40 }
 0x14c   :  { %311 = vrot.lane.b32.xlu0 %v4449_v41, %s4202_s21  ;;  %299 = vrot.lane.b32.xlu2 %v4449_v41, %s4203_s29  ;;  %v320_v51 = vrot.slane %v4449_v41, 4 }
 0x151   :  { %v294_v42 = vpop.f32.mrf.mxu0 }
 0x152   :  { %v4455_v43 = vadd.f32 %v4050_v39, %v294_v42 }
 0x154   :  { %301 = vrot.lane.b32.xlu1 %v4455_v43, %s4203_s29  ;;  %305 = vrot.lane.b32.xlu2 %v4449_v41, %s4204_s22  ;;  %v376_v61 = vrot.slane %v4455_v43, 4 }
 0x15c   :  { %307 = vrot.lane.b32.xlu2 %v4455_v43, %s4204_s22 }
 0x164   :  { %313 = vrot.lane.b32.xlu2 %v4455_v43, %s4202_s21 }
 0x16c   :  { %538 = vrot.lane.b32.xlu2 %v4449_v41, %s4205_s0 }
 0x1a6   :  { %v4467_v44 = vpop.permute.xlu2 %299 }
 0x1a7   :  { %542 = vrot.lane.b32.xlu0 %v4467_v44, %s4205_s0  ;;  %v332_v58 = vrot.slane %v4467_v44, 4 }
 0x1ae   :  { %v4471_v45 = vpop.permute.xlu2 %305 }
 0x1af   :  { %540 = vrot.lane.b32.xlu0 %v4455_v43, %s4205_s0  ;;  %546 = vrot.lane.b32.xlu2 %v4471_v45, %s4205_s0  ;;  %v317_v49 = vrot.slane %v4471_v45, 4  ;;  %v321_v53 = vsel %vm318_vm15, %v4471_v45, %v320_v51 }
 0x1b0   :  { %v329_v57 = vperm.slane %v321_v53, %v4481_v52 }
 0x1b1   :  { %v319_v54 = vsel %vm318_vm15, %v317_v49, %v4449_v41 }
 0x1b2   :  { %v325_v59 = vperm.slane %v319_v54, %v4481_v52  ;;  %v356_v5 = vrot.slane %v329_v57, 4 }
 0x1b4   :  { %v344_v8 = vrot.slane %v325_v59, 4 }
 0x1b6   :  { %v4478_v50 = vpop.permute.xlu2 %307 }
 0x1b7   :  { %v374_v62 = vrot.slane %v4478_v50, 4  ;;  %v377_v1 = vsel %vm318_vm15, %v4478_v50, %v376_v61 }
 0x1b8   :  { %v385_v11 = vperm.slane %v377_v1, %v4481_v52 }
 0x1b9   :  { %v375_v9 = vsel %vm318_vm15, %v374_v62, %v4455_v43 }
 0x1ba   :  { %v381_v16 = vperm.slane %v375_v9, %v4481_v52  ;;  %v412_v23 = vrot.slane %v385_v11, 4 }
 0x1bc   :  { %v400_v32 = vrot.slane %v381_v16, 4 }
 0x1be   :  { %v4492_v63 = vpop.permute.xlu0 %311  ;;  %v4494_v0 = vpop.permute.xlu2 %313 }
 0x1bf   :  { %v330_v3 = vrot.slane %v4492_v63, 4  ;;  %v333_v4 = vsel %vm318_vm15, %v4492_v63, %v332_v58  ;;  %550 = vrot.lane.b32.xlu1 %v4492_v63, %s4205_s0  ;;  %552 = vrot.lane.b32.xlu0 %v4494_v0, %s4205_s0  ;;  %v4023_v7 = vpack.i.bf16 %v4494_v0, %v4478_v50  ;;  %v386_v25 = vrot.slane %v4494_v0, 4 }
 0x1c0   :  { %v341_v6 = vperm.slane %v333_v4, %v4481_v52 }
 0x1c1   :  { %v331_v10 = vsel %vm318_vm15, %v330_v3, %v4467_v44 }
 0x1c2   :  { %v337_v12 = vperm.slane %v331_v10, %v4481_v52  ;;  %v354_v13 = vrot.slane %v341_v6, 4  ;;  %v357_v14 = vsel %vm318_vm15, %v341_v6, %v356_v5 }
 0x1c3   :  { %v365_v15 = vperm.slane %v357_v14, %v4498_v2 }
 0x1c4   :  { %v342_v17 = vrot.slane %v337_v12, 4  ;;  %v345_v18 = vsel %vm318_vm15, %v337_v12, %v344_v8  ;;  %v355_v19 = vsel %vm318_vm15, %v354_v13, %v329_v57 }
 0x1c5   :  { %v353_v20 = vperm.slane %v345_v18, %v4498_v2  ;;  %v361_v21 = vperm.slane %v355_v19, %v4498_v2  ;;  %v372_v22 = vrot.slane %v365_v15, 4 }
 0x1c6   :  { %v343_v24 = vsel %vm318_vm15, %v342_v17, %v325_v59  ;;  %v4525_v26 = vpop.permute.xlu1 %301 }
 0x1c7   :  { %v349_v28 = vperm.slane %v343_v24, %v4498_v2  ;;  %v368_v29 = vrot.slane %v353_v20, 4  ;;  %v370_v30 = vrot.slane %v361_v21, 4  ;;  %v373_v31 = vsel %vm318_vm15, 0.0, %v372_v22  ;;  %544 = vrot.lane.b32.xlu2 %v4525_v26, %s4205_s0  ;;  %548 = vrot.lane.b32.xlu1 %v4478_v50, %s4205_s0 }
 0x1c8   :  { %v446_v33 = vrot.slane %v373_v31, 4  ;;  %v387_v34 = vsel %vm318_vm15, %v386_v25, %v4525_v26  ;;  %v388_v35 = vrot.slane %v4525_v26, 4  ;;  %v441_v47 = vsel %vm318_vm15, %v372_v22, %v361_v21 }
 0x1c9   :  { %v393_v36 = vperm.slane %v387_v34, %v4481_v52  ;;  %v366_v37 = vrot.slane %v349_v28, 4  ;;  %v369_v38 = vsel %vm318_vm15, 0.0, %v368_v29  ;;  %v371_v39 = vsel %vm318_vm15, 0.0, %v370_v30 }
 0x1ca   :  { %v389_v40 = vsel %vm318_vm15, %v4494_v0, %v388_v35  ;;  %v430_v42 = vsel %vm318_vm15, %v368_v29, %v349_v28  ;;  %v435_v46 = vrot.slane %v369_v38, 4  ;;  %v445_v58 = vperm.slane %v441_v47, %v4481_v52 }
 0x1cb   :  { %v397_v49 = vperm.slane %v389_v40, %v4481_v52  ;;  %v398_v51 = vrot.slane %v393_v36, 4  ;;  %v401_v53 = vsel %vm318_vm15, %v393_v36, %v400_v32  ;;  %v367_v54 = vsel %vm318_vm15, 0.0, %v366_v37 }
 0x1cc   :  { %v409_v55 = vperm.slane %v401_v53, %v4498_v2  ;;  %v434_v56 = vperm.slane %v430_v42, %v4481_v52  ;;  %v436_v57 = vsel %vm318_vm15, %v435_v46, %v367_v54  ;;  %v447_v6 = vsel %vm318_vm15, %v446_v33, %v371_v39 }
 0x1cd   :  { %v399_v59 = vsel %vm318_vm15, %v398_v51, %v381_v16  ;;  %v410_v61 = vrot.slane %v397_v49, 4  ;;  %v413_v62 = vsel %vm318_vm15, %v397_v49, %v412_v23  ;;  %v440_v1 = vperm.slane %v436_v57, %v4481_v52 }
 0x1ce   :  { %v405_v3 = vperm.slane %v399_v59, %v4498_v2  ;;  %v421_v4 = vperm.slane %v413_v62, %v4498_v2  ;;  %v424_v5 = vrot.slane %v409_v55, 4  ;;  %v451_v9 = vperm.slane %v447_v6, %v4481_v52 }
 0x1cf   :  { %v411_v8 = vsel %vm318_vm15, %v410_v61, %v385_v11  ;;  %v454_v10 = vrot.slane %v434_v56, 4  ;;  %v466_v12 = vrot.slane %v445_v58, 4  ;;  %v452_v20 = vrot.slane %v440_v1, 4 }
 0x1d0   :  { %v417_v13 = vperm.slane %v411_v8, %v4498_v2  ;;  %v422_v14 = vrot.slane %v405_v3, 4  ;;  %v425_v15 = vsel %vm318_vm15, 0.0, %v424_v5  ;;  %v428_v16 = vrot.slane %v421_v4, 4 }
 0x1d1   :  { %v489_v17 = vrot.slane %v425_v15, 4  ;;  %v455_v18 = vsel %vm318_vm15, %v440_v1, %v454_v10  ;;  %v467_v19 = vsel %vm318_vm15, %v451_v9, %v466_v12  ;;  %v453_v25 = vsel %vm318_vm15, %v452_v20, %v434_v56 }
 0x1d2   :  { %v426_v21 = vrot.slane %v417_v13, 4  ;;  %v429_v22 = vsel %vm318_vm15, 0.0, %v428_v16  ;;  %v463_v11 = vperm.slane %v455_v18, %v4498_v2  ;;  %v475_v23 = vperm.slane %v467_v19, %v4498_v2  ;;  %v539_v19 = vpop.permute.xlu2 %538 }
 0x1d3   :  { %v500_v24 = vrot.slane %v429_v22, 4  ;;  %v464_v28 = vrot.slane %v451_v9, 4  ;;  %v423_v29 = vsel %vm318_vm15, 0.0, %v422_v14  ;;  %v459_v31 = vperm.slane %v453_v25, %v4498_v2 }
 0x1d4   :  { %v480_v30 = vrot.slane %v475_v23, 4  ;;  %v482_v32 = vrot.slane %v463_v11, 4  ;;  %v427_v33 = vsel %vm318_vm15, 0.0, %v426_v21  ;;  %v484_v35 = vsel %vm318_vm15, %v424_v5, %v405_v3 }
 0x1d5   :  { %v465_v34 = vsel %vm318_vm15, %v464_v28, %v445_v58  ;;  %v490_v36 = vsel %vm318_vm15, %v489_v17, %v423_v29  ;;  %v495_v37 = vsel %vm318_vm15, %v428_v16, %v417_v13  ;;  %v478_v40 = vrot.slane %v459_v31, 4 }
 0x1d6   :  { %v4574_v38 = vsel %vm318_vm15, %v480_v30, %v463_v11  ;;  %v471_v39 = vperm.slane %v465_v34, %v4498_v2  ;;  %v4578_v42 = vsel %vm318_vm15, %v475_v23, %v482_v32  ;;  %v488_v46 = vperm.slane %v484_v35, %v4481_v52 }
 0x1d7   :  { %v494_v47 = vperm.slane %v490_v36, %v4481_v52  ;;  %v499_v49 = vperm.slane %v495_v37, %v4481_v52  ;;  %v501_v51 = vsel %vm318_vm15, %v500_v24, %v427_v33  ;;  %v564_v23 = vrot.slane %v539_v19, 4 }
 0x1d8   :  { %v476_v53 = vrot.slane %v471_v39, 4  ;;  %v4585_v54 = vsel %vm318_vm15, %v471_v39, %v478_v40  ;;  %v505_v55 = vperm.slane %v501_v51, %v4481_v52  ;;  %v508_v57 = vrot.slane %v488_v46, 4 }
 0x1d9   :  { %v506_v56 = vrot.slane %v494_v47, 4  ;;  %v520_v58 = vrot.slane %v499_v49, 4 }
 0x1da   :  { %v4589_v59 = vsel %vm318_vm15, %v476_v53, %v459_v31  ;;  %v518_v61 = vrot.slane %v505_v55, 4  ;;  %v509_v1 = vsel %vm318_vm15, %v494_v47, %v508_v57 }
 0x1db   :  { %v507_v62 = vsel %vm318_vm15, %v506_v56, %v488_v46  ;;  %v521_v3 = vsel %vm318_vm15, %v505_v55, %v520_v58  ;;  %v517_v6 = vperm.slane %v509_v1, %v4498_v2 }
 0x1dc   :  { %v513_v4 = vperm.slane %v507_v62, %v4498_v2  ;;  %v519_v5 = vsel %vm318_vm15, %v518_v61, %v499_v49  ;;  %v529_v8 = vperm.slane %v521_v3, %v4498_v2 }
 0x1dd   :  { %v525_v9 = vperm.slane %v519_v5, %v4498_v2  ;;  %v536_v13 = vrot.slane %v517_v6, 4 }
 0x1de   :  { %v532_v10 = vrot.slane %v513_v4, 4  ;;  %v534_v12 = vrot.slane %v529_v8, 4 }
 0x1df   :  { %v530_v14 = vrot.slane %v525_v9, 4  ;;  %v4606_v17 = vsel %vm318_vm15, %v529_v8, %v536_v13 }
 0x1e0   :  { %v4600_v15 = vsel %vm318_vm15, %v525_v9, %v532_v10  ;;  %v4603_v16 = vsel %vm318_vm15, %v534_v12, %v517_v6 }
 0x1e1   :  { %v4609_v18 = vsel %vm318_vm15, %v530_v14, %v513_v4 }
 0x209   :  { %v547_v21 = vpop.permute.xlu2 %546 }
 0x20a   :  { %v562_v22 = vrot.slane %v547_v21, 4  ;;  %v565_v24 = vsel %vm318_vm15, %v547_v21, %v564_v23 }
 0x20b   :  { %v573_v29 = vperm.slane %v565_v24, %v4481_v52 }
 0x20c   :  { %v563_v25 = vsel %vm318_vm15, %v562_v22, %v539_v19 }
 0x20d   :  { %v569_v30 = vperm.slane %v563_v25, %v4481_v52  ;;  %v600_v40 = vrot.slane %v573_v29, 4 }
 0x20f   :  { %v588_v47 = vrot.slane %v569_v30, 4 }
 0x219   :  { %v543_v20 = vpop.permute.xlu0 %542 }
 0x21a   :  { %v576_v31 = vrot.slane %v543_v20, 4 }
 0x221   :  { %v541_v11 = vpop.permute.xlu0 %540  ;;  %v545_v28 = vpop.permute.xlu2 %544 }
 0x222   :  { %v632_v32 = vrot.slane %v545_v28, 4  ;;  %v620_v8 = vrot.slane %v541_v11, 4 }
 0x231   :  { %v551_v33 = vpop.permute.xlu1 %550  ;;  %v553_v34 = vpop.permute.xlu0 %552 }
 0x232   :  { %v574_v35 = vrot.slane %v551_v33, 4  ;;  %v577_v36 = vsel %vm318_vm15, %v551_v33, %v576_v31  ;;  %v630_v37 = vrot.slane %v553_v34, 4  ;;  %v633_v39 = vsel %vm318_vm15, %v553_v34, %v632_v32 }
 0x233   :  { %v585_v46 = vperm.slane %v577_v36, %v4481_v52  ;;  %v641_v53 = vperm.slane %v633_v39, %v4481_v52 }
 0x234   :  { %v575_v49 = vsel %vm318_vm15, %v574_v35, %v543_v20  ;;  %v631_v51 = vsel %vm318_vm15, %v630_v37, %v545_v28 }
 0x235   :  { %v581_v55 = vperm.slane %v575_v49, %v4481_v52  ;;  %v598_v56 = vrot.slane %v585_v46, 4  ;;  %v601_v57 = vsel %vm318_vm15, %v585_v46, %v600_v40  ;;  %v637_v58 = vperm.slane %v631_v51, %v4481_v52 }
 0x236   :  { %v609_v61 = vperm.slane %v601_v57, %v4498_v2  ;;  %v654_v12 = vrot.slane %v641_v53, 4 }
 0x237   :  { %v586_v62 = vrot.slane %v581_v55, 4  ;;  %v589_v1 = vsel %vm318_vm15, %v581_v55, %v588_v47  ;;  %v599_v3 = vsel %vm318_vm15, %v598_v56, %v573_v29  ;;  %v642_v10 = vrot.slane %v637_v58, 4 }
 0x238   :  { %v597_v4 = vperm.slane %v589_v1, %v4498_v2  ;;  %v605_v5 = vperm.slane %v599_v3, %v4498_v2  ;;  %v616_v6 = vrot.slane %v609_v61, 4 }
 0x239   :  { %v587_v9 = vsel %vm318_vm15, %v586_v62, %v569_v30  ;;  %v549_v13 = vpop.permute.xlu1 %548 }
 0x23a   :  { %v593_v14 = vperm.slane %v587_v9, %v4498_v2  ;;  %v612_v19 = vrot.slane %v597_v4, 4  ;;  %v614_v20 = vrot.slane %v605_v5, 4  ;;  %v617_v21 = vsel %vm318_vm15, 0.0, %v616_v6 }
 0x23b   :  { %v685_v22 = vsel %vm318_vm15, %v616_v6, %v605_v5  ;;  %v690_v23 = vrot.slane %v617_v21, 4  ;;  %v618_v24 = vrot.slane %v549_v13, 4  ;;  %v621_v25 = vsel %vm318_vm15, %v549_v13, %v620_v8 }
 0x23c   :  { %v613_v28 = vsel %vm318_vm15, 0.0, %v612_v19  ;;  %v615_v29 = vsel %vm318_vm15, 0.0, %v614_v20  ;;  %v689_v30 = vperm.slane %v685_v22, %v4481_v52  ;;  %v629_v31 = vperm.slane %v621_v25, %v4481_v52 }
 0x23d   :  { %v679_v32 = vrot.slane %v613_v28, 4  ;;  %v619_v33 = vsel %vm318_vm15, %v618_v24, %v541_v11  ;;  %v610_v34 = vrot.slane %v593_v14, 4  ;;  %v674_v35 = vsel %vm318_vm15, %v612_v19, %v593_v14 }
 0x23e   :  { %v625_v36 = vperm.slane %v619_v33, %v4481_v52  ;;  %v655_v37 = vsel %vm318_vm15, %v654_v12, %v629_v31  ;;  %v656_v39 = vrot.slane %v629_v31, 4  ;;  %v678_v40 = vperm.slane %v674_v35, %v4481_v52 }
 0x23f   :  { %v661_v46 = vperm.slane %v655_v37, %v4498_v2  ;;  %v611_v47 = vsel %vm318_vm15, 0.0, %v610_v34  ;;  %v691_v49 = vsel %vm318_vm15, %v690_v23, %v615_v29  ;;  %v710_v51 = vrot.slane %v689_v30, 4 }
 0x240   :  { %v643_v55 = vsel %vm318_vm15, %v642_v10, %v625_v36  ;;  %v644_v11 = vrot.slane %v625_v36, 4  ;;  %v657_v56 = vsel %vm318_vm15, %v641_v53, %v656_v39  ;;  %v680_v57 = vsel %vm318_vm15, %v679_v32, %v611_v47 }
 0x241   :  { %v649_v61 = vperm.slane %v643_v55, %v4498_v2  ;;  %v665_v62 = vperm.slane %v657_v56, %v4498_v2  ;;  %v670_v1 = vrot.slane %v661_v46, 4  ;;  %v684_v3 = vperm.slane %v680_v57, %v4481_v52 }
 0x242   :  { %v645_v4 = vsel %vm318_vm15, %v637_v58, %v644_v11  ;;  %v695_v5 = vperm.slane %v691_v49, %v4481_v52  ;;  %v698_v6 = vrot.slane %v678_v40, 4 }
 0x243   :  { %v653_v8 = vperm.slane %v645_v4, %v4498_v2  ;;  %v666_v9 = vrot.slane %v649_v61, 4  ;;  %v671_v53 = vsel %vm318_vm15, 0.0, %v670_v1  ;;  %v672_v10 = vrot.slane %v665_v62, 4 }
 0x244   :  { %v699_v12 = vsel %vm318_vm15, %v684_v3, %v698_v6  ;;  %v711_v13 = vsel %vm318_vm15, %v695_v5, %v710_v51  ;;  %v696_v14 = vrot.slane %v684_v3, 4  ;;  %v708_v19 = vrot.slane %v695_v5, 4 }
 0x245   :  { %v667_v20 = vsel %vm318_vm15, 0.0, %v666_v9  ;;  %v668_v21 = vrot.slane %v653_v8, 4  ;;  %v673_v58 = vsel %vm318_vm15, 0.0, %v672_v10  ;;  %v739_v22 = vsel %vm318_vm15, %v672_v10, %v661_v46 }
 0x246   :  { %v743_v23 = vperm.slane %v739_v22, %v4481_v52  ;;  %v744_v24 = vrot.slane %v673_v58, 4  ;;  %v707_v25 = vperm.slane %v699_v12, %v4498_v2  ;;  %v719_v28 = vperm.slane %v711_v13, %v4498_v2 }
 0x247   :  { %v669_v29 = vsel %vm318_vm15, 0.0, %v668_v21  ;;  %v728_v31 = vsel %vm318_vm15, %v668_v21, %v649_v61  ;;  %v697_v32 = vsel %vm318_vm15, %v696_v14, %v678_v40  ;;  %v709_v33 = vsel %vm318_vm15, %v708_v19, %v689_v30 }
 0x248   :  { %v733_v34 = vrot.slane %v669_v29, 4  ;;  %v745_v35 = vsel %vm318_vm15, %v744_v24, %v671_v53  ;;  %v764_v36 = vrot.slane %v743_v23, 4  ;;  %v724_v37 = vrot.slane %v719_v28, 4 }
 0x249   :  { %v749_v39 = vperm.slane %v745_v35, %v4481_v52  ;;  %v703_v46 = vperm.slane %v697_v32, %v4498_v2  ;;  %v715_v47 = vperm.slane %v709_v33, %v4498_v2  ;;  %v726_v49 = vrot.slane %v707_v25, 4 }
 0x24a   :  { %v725_v51 = vsel %vm318_vm15, %v724_v37, %v707_v25  ;;  %v732_v55 = vperm.slane %v728_v31, %v4481_v52  ;;  %v734_v40 = vsel %vm318_vm15, %v733_v34, %v667_v20 }
 0x24b   :  { %3906 = vmatpush.xpose.msk.msra.mxu3 %vm1026_vm0, %v725_v51  ;;  %v720_v30 = vrot.slane %v715_v47, 4  ;;  %v722_v11 = vrot.slane %v703_v46, 4  ;;  %v738_v56 = vperm.slane %v734_v40, %v4481_v52  ;;  %v727_v57 = vsel %vm318_vm15, %v719_v28, %v726_v49 }
 0x24c   :  { %v752_v61 = vrot.slane %v732_v55, 4  ;;  %v765_v62 = vsel %vm318_vm15, %v749_v39, %v764_v36  ;;  %v762_v1 = vrot.slane %v749_v39, 4 }
 0x24d   :  { %v721_v3 = vsel %vm318_vm15, %v720_v30, %v703_v46  ;;  %v723_v4 = vsel %vm318_vm15, %v715_v47, %v722_v11  ;;  %v773_v5 = vperm.slane %v765_v62, %v4498_v2  ;;  %v750_v6 = vrot.slane %v738_v56, 4 }
 0x24e   :  { %3902 = vmatpush.xpose.msk.msra.mxu1 %vm1026_vm0, %v721_v3  ;;  %3907 = vmatmul.msk.f32.vlgmr.msra.gmra.mxu3 %vm1026_vm0, %v4574_v38  ;;  %v753_v8 = vsel %vm318_vm15, %v738_v56, %v752_v61  ;;  %v763_v9 = vsel %vm318_vm15, %v762_v1, %v743_v23 }
 0x24f   :  { %3904 = vmatpush.xpose.msk.msrb.mxu0 %vm1026_vm0, %v723_v4  ;;  %v761_v53 = vperm.slane %v753_v8, %v4498_v2  ;;  %v778_v10 = vrot.slane %v773_v5, 4  ;;  %v751_v12 = vsel %vm318_vm15, %v750_v6, %v732_v55  ;;  %v769_v13 = vperm.slane %v763_v9, %v4498_v2 }
 0x250   :  { %v757_v14 = vperm.slane %v751_v12, %v4498_v2  ;;  %v4013_v8 = vpack.i.bf16 %v4492_v63, %v4471_v45  ;;  %v4008_v9 = vpack.i.bf16 %v4467_v44, %v4449_v41 }
 0x251   :  { %3903 = vmatmul.msk.f32.vlgmr.msra.gmra.mxu1 %vm1026_vm0, %v4589_v59  ;;  %v779_v38 = vsel %vm318_vm15, %v778_v10, %v761_v53  ;;  %v774_v19 = vrot.slane %v769_v13, 4  ;;  %v780_v20 = vrot.slane %v761_v53, 4  ;;  %v4018_v53 = vpack.i.bf16 %v4525_v26, %v4455_v43 }
 0x252   :  { %3908 = vmatpush.xpose.msk.msrb.mxu1 %vm1026_vm0, %v727_v57  ;;  %3905 = vmatmul.msk.f32.vlgmr.msrb.gmra.mxu0 %vm1026_vm0, %v4585_v54  ;;  %v776_v21 = vrot.slane %v757_v14, 4  ;;  %v187_v54 = vlaneseq }
 0x253   :  { %v775_v58 = vsel %vm318_vm15, %v774_v19, %v757_v14  ;;  %v781_v22 = vsel %vm318_vm15, %v773_v5, %v780_v20 }
 0x254   :  { %3910 = vmatpush.xpose.msk.msra.mxu2 %vm1026_vm0, %v775_v58  ;;  %v777_v23 = vsel %vm318_vm15, %v769_v13, %v776_v21  ;;  %v188_v59 = vshrl.u32 %v187_v54, 7  ;;  %v190_v24 = vand.u32 127, %v187_v54 }
 0x255   :  { %3912 = vmatpush.xpose.msk.msrb.mxu3 %vm1026_vm0, %v777_v23 }
 0x256   :  { %3914 = vmatpush.xpose.msk.msra.mxu1 %vm1026_vm0, %v779_v38  ;;  %vm4715_vm1 = vcmp.ge.s32.totalorder %v188_v59, %v190_v24 }
 0x257   :  { %3911 = vmatmul.msk.f32.vlgmr.msra.gmra.mxu2 %vm1026_vm0, %v4609_v18 }
 0x258   :  { %3916 = vmatpush.xpose.msk.msrb.mxu2 %vm1026_vm0, %v781_v22  ;;  %3913 = vmatmul.msk.f32.vlgmr.msrb.gmra.mxu3 %vm1026_vm0, %v4600_v15 }
 0x259   :  { %3909 = vmatmul.msk.f32.vlgmr.msrb.gmra.mxu1 %vm1026_vm0, %v4578_v42 }
 0x25f   :  { %3917 = vmatmul.msk.f32.vlgmr.msrb.gmra.mxu2 %vm1026_vm0, %v4606_v17 }
 0x261   :  { %3915 = vmatmul.msk.f32.vlgmr.msra.gmra.mxu1 %vm1026_vm0, %v4603_v16 }
 0x2ce   :  { %v1050_v25 = vpop.f32.mrf.mxu1 }
 0x2cf   :  { %v1235_v18 = vmul.f32 0.35355338, %v1050_v25  ;;  %v1076_v29 = vpop.f32.mrf.mxu0 }
 0x2d0   :  { %v1236_v32 = vmul.f32 0.35355338, %v1076_v29 }
 0x2d1   :  { %v1102_v15 = vpop.f32.mrf.mxu3  ;;  %v1245_v42 = vsel %vm4715_vm1, %v1235_v18, -1e+30 }
 0x2d2   :  { %v1237_v31 = vmul.f32 0.35355338, %v1102_v15  ;;  %v1253_v17 = vsel %vm1026_vm0, %v1245_v42, -inf  ;;  %v1246_v36 = vsel %vm4715_vm1, %v1236_v32, -1e+30 }
 0x2d3   :  { %1254 = vmax.xlane.f32.xlu2 %v1253_v17  ;;  %v1256_v39 = vsel %vm1026_vm0, %v1246_v36, -inf }
 0x2d4   :  { %v1247_v16 = vsel %vm4715_vm1, %v1237_v31, -1e+30 }
 0x2d5   :  { %v1259_v33 = vsel %vm1026_vm0, %v1247_v16, -inf }
 0x2d6   :  { %v1128_v34 = vpop.f32.mrf.mxu1  ;;  %1260 = vmax.xlane.f32.xlu0 %v1259_v33 }
 0x2d7   :  { %v1238_v35 = vmul.f32 0.35355338, %v1128_v34 }
 0x2d9   :  { %v1248_v37 = vsel %vm4715_vm1, %v1238_v35, -1e+30 }
 0x2da   :  { %v1262_v46 = vsel %vm1026_vm0, %v1248_v37, -inf  ;;  %v1154_v47 = vpop.f32.mrf.mxu2 }
 0x2db   :  { %1257 = vmax.xlane.f32.xlu2 %v1256_v39  ;;  %1263 = vmax.xlane.f32.xlu1 %v1262_v46  ;;  %v1239_v49 = vmul.f32 0.35355338, %v1154_v47  ;;  %v1180_v30 = vpop.f32.mrf.mxu3 }
 0x2dc   :  { %v1240_v62 = vmul.f32 0.35355338, %v1180_v30 }
 0x2dd   :  { %v1249_v51 = vsel %vm4715_vm1, %v1239_v49, -1e+30 }
 0x2de   :  { %v1206_v55 = vpop.f32.mrf.mxu1  ;;  %v1265_v11 = vsel %vm1026_vm0, %v1249_v51, -inf  ;;  %v1250_v5 = vsel %vm4715_vm1, %v1240_v62, -1e+30 }
 0x2df   :  { %v1241_v40 = vmul.f32 0.35355338, %v1206_v55  ;;  %v1268_v6 = vsel %vm1026_vm0, %v1250_v5, -inf }
 0x2e1   :  { %v1251_v56 = vsel %vm4715_vm1, %v1241_v40, -1e+30 }
 0x2e2   :  { %v1271_v57 = vsel %vm1026_vm0, %v1251_v56, -inf  ;;  %v1232_v61 = vpop.f32.mrf.mxu2 }
 0x2e3   :  { %1266 = vmax.xlane.f32.xlu1 %v1265_v11  ;;  %1272 = vmax.xlane.f32.xlu2 %v1271_v57  ;;  %v1242_v1 = vmul.f32 0.35355338, %v1232_v61 }
 0x2e5   :  { %v1252_v3 = vsel %vm4715_vm1, %v1242_v1, -1e+30 }
 0x2e6   :  { %v1274_v4 = vsel %vm1026_vm0, %v1252_v3, -inf }
 0x2e7   :  { %1275 = vmax.xlane.f32.xlu0 %v1274_v4 }
 0x2eb   :  { %1269 = vmax.xlane.f32.xlu1 %v1268_v6 }
 0x2fb   :  { %4014 = vrot.lane.b32.xlu2 %v4013_v8, %s4208_s17  ;;  %4009 = vrot.lane.b32.xlu0 %v4008_v9, %s4208_s17 }
 0x304   :  { %4019 = vrot.lane.b32.xlu1 %v4018_v53, %s4208_s17 }
 0x30c   :  { %4024 = vrot.lane.b32.xlu1 %v4023_v7, %s4208_s17 }
 0x346   :  { %v1255_v10 = vpop.xlane.xlu2 %1254 }
 0x347   :  { %v1277_v45 = vsub.f32 %v1245_v42, %v1255_v10 }
 0x349   :  { %v1285_v63 = vmul.f32 1.442695, %v1277_v45  ;;  %v1261_v12 = vpop.xlane.xlu0 %1260 }
 0x34a   :  { %v1279_v41 = vsub.f32 %v1247_v16, %v1261_v12 }
 0x34b   :  { %4072 = vpow2.f32 %v1285_v63 }
 0x34c   :  { %v1289_v44 = vmul.f32 1.442695, %v1279_v41 }
 0x34e   :  { %4074 = vpow2.f32 %v1289_v44  ;;  %v1258_v13 = vpop.xlane.xlu2 %1257  ;;  %v1264_v14 = vpop.xlane.xlu1 %1263 }
 0x34f   :  { %v1278_v38 = vsub.f32 %v1246_v36, %v1258_v13  ;;  %v1280_v19 = vsub.f32 %v1248_v37, %v1264_v14 }
 0x351   :  { %v4756_v43 = vpop.eup %4072  ;;  %v1287_v26 = vmul.f32 1.442695, %v1278_v38  ;;  %v1291_v20 = vmul.f32 1.442695, %v1280_v19 }
 0x352   :  { %v1301_v50 = vsel %vm1026_vm0, %v4756_v43, 0.0 }
 0x353   :  { %4076 = vpow2.f32 %v1287_v26  ;;  %1302 = vadd.xlane.f32.xlu0 %v1301_v50 }
 0x354   :  { %v4760_v0 = vpop.eup %4074  ;;  %4078 = vpow2.f32 %v1291_v20 }
 0x355   :  { %v1307_v7 = vsel %vm1026_vm0, %v4760_v0, 0.0 }
 0x356   :  { %v1267_v21 = vpop.xlane.xlu1 %1266  ;;  %1308 = vadd.xlane.f32.xlu1 %v1307_v7  ;;  %v1273_v22 = vpop.xlane.xlu2 %1272 }
 0x357   :  { %v1281_v58 = vsub.f32 %v1249_v51, %v1267_v21  ;;  %v1283_v24 = vsub.f32 %v1251_v56, %v1273_v22 }
 0x359   :  { %v4764_v23 = vpop.eup %4076  ;;  %v1293_v54 = vmul.f32 1.442695, %v1281_v58  ;;  %v1297_v31 = vmul.f32 1.442695, %v1283_v24 }
 0x35a   :  { %v4766_v59 = vpop.eup %4078  ;;  %v1304_v25 = vsel %vm1026_vm0, %v4764_v23, 0.0  ;;  %v1276_v18 = vpop.xlane.xlu0 %1275 }
 0x35b   :  { %4080 = vpow2.f32 %v1293_v54  ;;  %1305 = vadd.xlane.f32.xlu0 %v1304_v25  ;;  %v1310_v29 = vsel %vm1026_vm0, %v4766_v59, 0.0  ;;  %v1284_v15 = vsub.f32 %v1252_v3, %v1276_v18 }
 0x35c   :  { %1311 = vadd.xlane.f32.xlu2 %v1310_v29 }
 0x35d   :  { %v1299_v42 = vmul.f32 1.442695, %v1284_v15 }
 0x35e   :  { %v1270_v17 = vpop.xlane.xlu1 %1269  ;;  %v4015_v36 = vpop.permute.xlu2 %4014 }
 0x35f   :  { %4082 = vpow2.f32 %v1299_v42  ;;  %v1282_v32 = vsub.f32 %v1250_v5, %v1270_v17  ;;  %v4017_v46 = vunpack.i.h.bf16 %v4015_v36  ;;  %v4016_v47 = vunpack.i.l.bf16 %v4015_v36 }
 0x360   :  { %4084 = vpow2.f32 %v1297_v31 }
 0x361   :  { %v4772_v16 = vpop.eup %4080  ;;  %v1295_v33 = vmul.f32 1.442695, %v1282_v32  ;;  %v818_v55 = vrot.slane %v4017_v46, 4  ;;  %v806_v30 = vrot.slane %v4016_v47, 4 }
 0x362   :  { %v1313_v34 = vsel %vm1026_vm0, %v4772_v16, 0.0 }
 0x363   :  { %4086 = vpow2.f32 %v1295_v33 }
 0x364   :  { %1314 = vadd.xlane.f32.xlu2 %v1313_v34 }
 0x365   :  { %v4776_v35 = vpop.eup %4082 }
 0x366   :  { %v1322_v37 = vsel %vm1026_vm0, %v4776_v35, 0.0  ;;  %v4780_v39 = vpop.eup %4084 }
 0x367   :  { %1323 = vadd.xlane.f32.xlu0 %v1322_v37  ;;  %v1319_v51 = vsel %vm1026_vm0, %v4780_v39, 0.0 }
 0x369   :  { %v4782_v49 = vpop.eup %4086 }
 0x36a   :  { %v1316_v57 = vsel %vm1026_vm0, %v4782_v49, 0.0 }
 0x36c   :  { %1320 = vadd.xlane.f32.xlu2 %v1319_v51 }
 0x36d   :  { %v4010_v40 = vpop.permute.xlu0 %4009 }
 0x36e   :  { %v4012_v11 = vunpack.i.h.bf16 %v4010_v40  ;;  %v4011_v56 = vunpack.i.l.bf16 %v4010_v40 }
 0x36f   :  { %1317 = vadd.xlane.f32.xlu0 %v1316_v57 }
 0x370   :  { %v820_v61 = vrot.slane %v4012_v11, 4  ;;  %v807_v62 = vsel %vm318_vm15, %v806_v30, %v4011_v56  ;;  %v808_v1 = vrot.slane %v4011_v56, 4  ;;  %v819_v3 = vsel %vm318_vm15, %v818_v55, %v4012_v11 }
 0x371   :  { %v813_v4 = vperm.slane %v807_v62, %v4481_v52  ;;  %v825_v5 = vperm.slane %v819_v3, %v4481_v52 }
 0x372   :  { %v809_v6 = vsel %vm318_vm15, %v4016_v47, %v808_v1  ;;  %v821_v8 = vsel %vm318_vm15, %v4017_v46, %v820_v61 }
 0x373   :  { %v817_v9 = vperm.slane %v809_v6, %v4481_v52  ;;  %v829_v53 = vperm.slane %v821_v8, %v4481_v52  ;;  %v830_v10 = vrot.slane %v825_v5, 4  ;;  %v832_v45 = vrot.slane %v813_v4, 4 }
 0x375   :  { %v831_v63 = vsel %vm318_vm15, %v830_v10, %v813_v4  ;;  %v833_v12 = vsel %vm318_vm15, %v825_v5, %v832_v45  ;;  %v842_v41 = vrot.slane %v829_v53, 4  ;;  %v844_v44 = vrot.slane %v817_v9, 4 }
 0x376   :  { %v837_v13 = vperm.slane %v831_v63, %v4498_v2  ;;  %v841_v14 = vperm.slane %v833_v12, %v4498_v2  ;;  %v4020_v38 = vpop.permute.xlu1 %4019 }
 0x377   :  { %v843_v19 = vsel %vm318_vm15, %v842_v41, %v817_v9  ;;  %v845_v26 = vsel %vm318_vm15, %v829_v53, %v844_v44  ;;  %v4022_v58 = vunpack.i.h.bf16 %v4020_v38  ;;  %v4021_v25 = vunpack.i.l.bf16 %v4020_v38 }
 0x378   :  { %v849_v20 = vperm.slane %v843_v19, %v4498_v2  ;;  %v853_v50 = vperm.slane %v845_v26, %v4498_v2  ;;  %v854_v7 = vrot.slane %v837_v13, 4  ;;  %v856_v21 = vrot.slane %v841_v14, 4 }
 0x379   :  { %v876_v33 = vrot.slane %v4022_v58, 4  ;;  %v864_v37 = vrot.slane %v4021_v25, 4 }
 0x37a   :  { %v857_v22 = vsel %vm318_vm15, 0.0, %v856_v21  ;;  %v858_v54 = vrot.slane %v849_v20, 4  ;;  %v860_v24 = vrot.slane %v853_v50, 4  ;;  %v918_v18 = vsel %vm318_vm15, %v856_v21, %v837_v13 }
 0x37b   :  { %v923_v29 = vrot.slane %v857_v22, 4  ;;  %v855_v15 = vsel %vm318_vm15, 0.0, %v854_v7  ;;  %v922_v31 = vperm.slane %v918_v18, %v4481_v52 }
 0x37c   :  { %v861_v42 = vsel %vm318_vm15, 0.0, %v860_v24  ;;  %v929_v17 = vsel %vm318_vm15, %v860_v24, %v849_v20  ;;  %v859_v47 = vsel %vm318_vm15, 0.0, %v858_v54 }
 0x37d   :  { %v934_v32 = vrot.slane %v861_v42, 4  ;;  %v924_v34 = vsel %vm318_vm15, %v923_v29, %v855_v15  ;;  %v933_v36 = vperm.slane %v929_v17, %v4481_v52  ;;  %v942_v55 = vrot.slane %v922_v31, 4 }
 0x37e   :  { %v4025_v46 = vpop.permute.xlu1 %4024  ;;  %v928_v51 = vperm.slane %v924_v34, %v4481_v52 }
 0x37f   :  { %v4027_v40 = vunpack.i.h.bf16 %v4025_v46  ;;  %v4026_v30 = vunpack.i.l.bf16 %v4025_v46  ;;  %v935_v11 = vsel %vm318_vm15, %v934_v32, %v859_v47  ;;  %v954_v56 = vrot.slane %v933_v36, 4 }
 0x380   :  { %v939_v57 = vperm.slane %v935_v11, %v4481_v52  ;;  %v943_v61 = vsel %vm318_vm15, %v928_v51, %v942_v55  ;;  %v940_v62 = vrot.slane %v928_v51, 4 }
 0x381   :  { %v874_v1 = vrot.slane %v4027_v40, 4  ;;  %v862_v3 = vrot.slane %v4026_v30, 4  ;;  %v865_v4 = vsel %vm318_vm15, %v4026_v30, %v864_v37  ;;  %v877_v5 = vsel %vm318_vm15, %v4027_v40, %v876_v33 }
 0x382   :  { %v873_v6 = vperm.slane %v865_v4, %v4481_v52  ;;  %v885_v8 = vperm.slane %v877_v5, %v4481_v52  ;;  %v951_v9 = vperm.slane %v943_v61, %v4498_v2  ;;  %v955_v53 = vsel %vm318_vm15, %v939_v57, %v954_v56 }
 0x383   :  { %v863_v10 = vsel %vm318_vm15, %v862_v3, %v4021_v25  ;;  %v875_v45 = vsel %vm318_vm15, %v874_v1, %v4022_v58  ;;  %v963_v63 = vperm.slane %v955_v53, %v4498_v2  ;;  %v941_v12 = vsel %vm318_vm15, %v940_v62, %v922_v31 }
 0x384   :  { %v869_v41 = vperm.slane %v863_v10, %v4481_v52  ;;  %v881_v44 = vperm.slane %v875_v45, %v4481_v52  ;;  %v898_v13 = vrot.slane %v885_v8, 4  ;;  %v900_v14 = vrot.slane %v873_v6, 4 }
 0x385   :  { %v970_v38 = vrot.slane %v951_v9, 4  ;;  %v947_v19 = vperm.slane %v941_v12, %v4498_v2  ;;  %v952_v26 = vrot.slane %v939_v57, 4  ;;  %v968_v20 = vrot.slane %v963_v63, 4 }
 0x386   :  { %v886_v50 = vrot.slane %v881_v44, 4  ;;  %v888_v7 = vrot.slane %v869_v41, 4  ;;  %v899_v21 = vsel %vm318_vm15, %v898_v13, %v873_v6  ;;  %v901_v58 = vsel %vm318_vm15, %v885_v8, %v900_v14 }
 0x387   :  { %v905_v22 = vperm.slane %v899_v21, %v4498_v2  ;;  %v909_v54 = vperm.slane %v901_v58, %v4498_v2  ;;  %v971_v24 = vsel %vm318_vm15, %v963_v63, %v970_v38  ;;  %v953_v25 = vsel %vm318_vm15, %v952_v26, %v933_v36 }
 0x388   :  { %v887_v18 = vsel %vm318_vm15, %v886_v50, %v869_v41  ;;  %v889_v29 = vsel %vm318_vm15, %v881_v44, %v888_v7  ;;  %1428 = vmatpush.msra.mxu2 %v971_v24  ;;  %v959_v15 = vperm.slane %v953_v25, %v4498_v2  ;;  %v966_v42 = vrot.slane %v947_v19, 4 }
 0x389   :  { %v893_v31 = vperm.slane %v887_v18, %v4498_v2  ;;  %v897_v17 = vperm.slane %v889_v29, %v4498_v2  ;;  %v914_v32 = vrot.slane %v905_v22, 4  ;;  %v916_v33 = vrot.slane %v909_v54, 4 }
 0x38a   :  { %v967_v34 = vsel %vm318_vm15, %v959_v15, %v966_v42  ;;  %v969_v37 = vsel %vm318_vm15, %v968_v20, %v951_v9  ;;  %v964_v46 = vrot.slane %v959_v15, 4 }
 0x38b   :  { %v910_v36 = vrot.slane %v893_v31, 4  ;;  %v912_v47 = vrot.slane %v897_v17, 4  ;;  %v917_v51 = vsel %vm318_vm15, 0.0, %v916_v33  ;;  %1382 = vmatpush.msra.mxu0 %v967_v34  ;;  %1405 = vmatpush.msrb.mxu1 %v969_v37  ;;  %v983_v55 = vsel %vm318_vm15, %v916_v33, %v905_v22 }
 0x38c   :  { %v988_v40 = vrot.slane %v917_v51, 4  ;;  %v965_v30 = vsel %vm318_vm15, %v964_v46, %v947_v19  ;;  %v915_v56 = vsel %vm318_vm15, 0.0, %v914_v32  ;;  %v987_v61 = vperm.slane %v983_v55, %v4481_v52 }
 0x38d   :  { %v913_v11 = vsel %vm318_vm15, 0.0, %v912_v47  ;;  %1359 = vmatpush.msra.mxu3 %v965_v30  ;;  %v972_v57 = vsel %vm318_vm15, %v912_v47, %v893_v31  ;;  %v911_v4 = vsel %vm318_vm15, 0.0, %v910_v36 }
 0x38e   :  { %v977_v62 = vrot.slane %v913_v11, 4  ;;  %v976_v1 = vperm.slane %v972_v57, %v4481_v52  ;;  %v989_v3 = vsel %vm318_vm15, %v988_v40, %v915_v56  ;;  %v1008_v6 = vrot.slane %v987_v61, 4 }
 0x38f   :  { %v993_v5 = vperm.slane %v989_v3, %v4481_v52 }
 0x390   :  { %v978_v8 = vsel %vm318_vm15, %v977_v62, %v911_v4  ;;  %v996_v9 = vrot.slane %v976_v1, 4 }
 0x391   :  { %v982_v53 = vperm.slane %v978_v8, %v4481_v52  ;;  %v1009_v10 = vsel %vm318_vm15, %v993_v5, %v1008_v6  ;;  %v1006_v45 = vrot.slane %v993_v5, 4 }
 0x392   :  { %v1017_v63 = vperm.slane %v1009_v10, %v4498_v2 }
 0x393   :  { %v997_v12 = vsel %vm318_vm15, %v982_v53, %v996_v9  ;;  %v994_v41 = vrot.slane %v982_v53, 4  ;;  %v1007_v44 = vsel %vm318_vm15, %v1006_v45, %v987_v61 }
 0x394   :  { %v1005_v13 = vperm.slane %v997_v12, %v4498_v2  ;;  %v1022_v14 = vrot.slane %v1017_v63, 4  ;;  %v1013_v38 = vperm.slane %v1007_v44, %v4498_v2 }
 0x395   :  { %v995_v19 = vsel %vm318_vm15, %v994_v41, %v976_v1 }
 0x396   :  { %v1023_v26 = vsel %vm318_vm15, %v1022_v14, %v1005_v13  ;;  %v1001_v20 = vperm.slane %v995_v19, %v4498_v2  ;;  %v1018_v50 = vrot.slane %v1013_v38, 4  ;;  %v1024_v7 = vrot.slane %v1005_v13, 4 }
 0x397   :  { %1497 = vmatpush.msra.mxu1 %v1023_v26 }
 0x398   :  { %v1019_v21 = vsel %vm318_vm15, %v1018_v50, %v1001_v20  ;;  %v1025_v58 = vsel %vm318_vm15, %v1017_v63, %v1024_v7  ;;  %v1020_v22 = vrot.slane %v1001_v20, 4 }
 0x399   :  { %1451 = vmatpush.msrb.mxu3 %v1019_v21  ;;  %1520 = vmatpush.msrb.mxu2 %v1025_v58 }
 0x39a   :  { %v1021_v54 = vsel %vm318_vm15, %v1013_v38, %v1020_v22 }
 0x39b   :  { %1474 = vmatpush.msrb.mxu0 %v1021_v54 }
 0x3c6   :  { %v1303_v24 = vpop.xlane.xlu0 %1302 }
 0x3c7   :  { %4088 = vrcp.f32 %v1303_v24 }
 0x3c9   :  { %v1309_v25 = vpop.xlane.xlu1 %1308 }
 0x3ca   :  { %4090 = vrcp.f32 %v1309_v25 }
 0x3cd   :  { %v4089_v18 = vpop.eup %4088 }
 0x3ce   :  { %v1333_v29 = vmul.f32 %v4089_v18, %v4756_v43  ;;  %v1306_v15 = vpop.xlane.xlu0 %1305 }
 0x3cf   :  { %4092 = vrcp.f32 %v1306_v15  ;;  %v1312_v42 = vpop.xlane.xlu2 %1311 }
 0x3d0   :  { %v4091_v31 = vpop.eup %4090  ;;  %4094 = vrcp.f32 %v1312_v42  ;;  %3918 = vmatmul.msk.f32.vlgmr.msra.gmra.mxu3 %vm1026_vm0, %v1333_v29 }
 0x3d1   :  { %v1335_v17 = vmul.f32 %v4091_v31, %v4760_v0 }
 0x3d3   :  { %3920 = vmatmul.msk.f32.vlgmr.msrb.gmra.mxu1 %vm1026_vm0, %v1335_v17 }
 0x3d5   :  { %v4093_v32 = vpop.eup %4092 }
 0x3d6   :  { %v4095_v33 = vpop.eup %4094  ;;  %v1334_v34 = vmul.f32 %v4093_v32, %v4764_v23 }
 0x3d7   :  { %v1336_v37 = vmul.f32 %v4095_v33, %v4766_v59  ;;  %v1315_v46 = vpop.xlane.xlu2 %1314 }
 0x3d8   :  { %4096 = vrcp.f32 %v1315_v46  ;;  %3919 = vmatmul.msk.f32.vlgmr.msra.gmra.mxu0 %vm1026_vm0, %v1334_v34 }
 0x3d9   :  { %3921 = vmatmul.msk.f32.vlgmr.msra.gmra.mxu2 %vm1026_vm0, %v1336_v37 }
 0x3da   :  { %v1324_v43 = vpop.xlane.xlu0 %1323 }
 0x3db   :  { %4098 = vrcp.f32 %v1324_v43 }
 0x3de   :  { %v4097_v36 = vpop.eup %4096 }
 0x3df   :  { %v1337_v47 = vmul.f32 %v4097_v36, %v4772_v16  ;;  %v1321_v0 = vpop.xlane.xlu2 %1320 }
 0x3e0   :  { %4100 = vrcp.f32 %v1321_v0 }
 0x3e1   :  { %v4099_v51 = vpop.eup %4098  ;;  %3922 = vmatmul.msk.f32.vlgmr.msrb.gmra.mxu3 %vm1026_vm0, %v1337_v47 }
 0x3e2   :  { %v1340_v23 = vmul.f32 %v4099_v51, %v4776_v35  ;;  %v1318_v55 = vpop.xlane.xlu0 %1317 }
 0x3e3   :  { %4102 = vrcp.f32 %v1318_v55 }
 0x3e4   :  { %3925 = vmatmul.msk.f32.vlgmr.msrb.gmra.mxu2 %vm1026_vm0, %v1340_v23 }
 0x3e6   :  { %v4101_v59 = vpop.eup %4100 }
 0x3e7   :  { %v1339_v40 = vmul.f32 %v4101_v59, %v4780_v39 }
 0x3e9   :  { %v4103_v30 = vpop.eup %4102  ;;  %3924 = vmatmul.msk.f32.vlgmr.msra.gmra.mxu1 %vm1026_vm0, %v1339_v40 }
 0x3ea   :  { %v1338_v11 = vmul.f32 %v4103_v30, %v4782_v49 }
 0x3ec   :  { %3923 = vmatmul.msk.f32.vlgmr.msrb.gmra.mxu0 %vm1026_vm0, %v1338_v11 }
 0x450   :  { %v1407_v16 = vpop.f32.mrf.mxu1 }
 0x451   :  { %v1525_v61 = vrot.slane %v1407_v16, 4 }
 0x453   :  { %v1361_v56 = vpop.f32.mrf.mxu3 }
 0x454   :  { %v1527_v57 = vrot.slane %v1361_v56, 4  ;;  %v1526_v1 = vsel %vm318_vm15, %v1525_v61, %v1361_v56 }
 0x455   :  { %v1384_v62 = vpop.f32.mrf.mxu0  ;;  %v1532_v39 = vperm.slane %v1526_v1, %v4481_v52 }
 0x456   :  { %v1528_v35 = vsel %vm318_vm15, %v1407_v16, %v1527_v57  ;;  %v1539_v4 = vrot.slane %v1384_v62, 4 }
 0x457   :  { %v1536_v3 = vperm.slane %v1528_v35, %v4481_v52  ;;  %v1551_v10 = vrot.slane %v1532_v39, 4 }
 0x459   :  { %v1563_v8 = vrot.slane %v1536_v3, 4 }
 0x45c   :  { %v1430_v5 = vpop.f32.mrf.mxu2 }
 0x45d   :  { %v1537_v6 = vrot.slane %v1430_v5, 4  ;;  %v1540_v49 = vsel %vm318_vm15, %v1430_v5, %v1539_v4 }
 0x45e   :  { %v1548_v9 = vperm.slane %v1540_v49, %v4481_v52 }
 0x45f   :  { %v1538_v53 = vsel %vm318_vm15, %v1537_v6, %v1384_v62 }
 0x460   :  { %v1544_v45 = vperm.slane %v1538_v53, %v4481_v52  ;;  %v1561_v63 = vrot.slane %v1548_v9, 4  ;;  %v1564_v12 = vsel %vm318_vm15, %v1548_v9, %v1563_v8 }
 0x461   :  { %v1572_v41 = vperm.slane %v1564_v12, %v4498_v2 }
 0x462   :  { %v1549_v44 = vrot.slane %v1544_v45, 4  ;;  %v1552_v13 = vsel %vm318_vm15, %v1544_v45, %v1551_v10  ;;  %v1562_v14 = vsel %vm318_vm15, %v1561_v63, %v1536_v3 }
 0x463   :  { %v1560_v38 = vperm.slane %v1552_v13, %v4498_v2  ;;  %v1568_v19 = vperm.slane %v1562_v14, %v4498_v2  ;;  %v1579_v26 = vrot.slane %v1572_v41, 4 }
 0x464   :  { %v1550_v20 = vsel %vm318_vm15, %v1549_v44, %v1532_v39  ;;  %v1453_v50 = vpop.f32.mrf.mxu3 }
 0x465   :  { %v1556_v7 = vperm.slane %v1550_v20, %v4498_v2  ;;  %v1575_v21 = vrot.slane %v1560_v38, 4  ;;  %v1577_v58 = vrot.slane %v1568_v19, 4  ;;  %v1580_v22 = vsel %vm318_vm15, 0.0, %v1579_v26 }
 0x466   :  { %v1648_v54 = vsel %vm318_vm15, %v1579_v26, %v1568_v19  ;;  %v1653_v24 = vrot.slane %v1580_v22, 4  ;;  %v1583_v25 = vrot.slane %v1453_v50, 4  ;;  %v1499_v18 = vpop.f32.mrf.mxu1 }
 0x467   :  { %v1573_v29 = vrot.slane %v1556_v7, 4  ;;  %v1576_v15 = vsel %vm318_vm15, 0.0, %v1575_v21  ;;  %v1578_v42 = vsel %vm318_vm15, 0.0, %v1577_v58  ;;  %v1652_v31 = vperm.slane %v1648_v54, %v4481_v52  ;;  %v1522_v17 = vpop.f32.mrf.mxu2 }
 0x468   :  { %v1642_v32 = vrot.slane %v1576_v15, 4  ;;  %v1581_v33 = vrot.slane %v1499_v18, 4  ;;  %v1584_v34 = vsel %vm318_vm15, %v1499_v18, %v1583_v25  ;;  %v1593_v37 = vrot.slane %v1522_v17, 4 }
 0x469   :  { %v1592_v46 = vperm.slane %v1584_v34, %v4481_v52  ;;  %v1476_v43 = vpop.f32.mrf.mxu0  ;;  %v1574_v36 = vsel %vm318_vm15, 0.0, %v1573_v29  ;;  %v1637_v47 = vsel %vm318_vm15, %v1575_v21, %v1556_v7  ;;  %v1654_v0 = vsel %vm318_vm15, %v1653_v24, %v1578_v42 }
 0x46a   :  { %v1582_v51 = vsel %vm318_vm15, %v1581_v33, %v1453_v50  ;;  %v1594_v23 = vsel %vm318_vm15, %v1593_v37, %v1476_v43  ;;  %v1595_v55 = vrot.slane %v1476_v43, 4  ;;  %v1641_v59 = vperm.slane %v1637_v47, %v4481_v52 }
 0x46b   :  { %v1588_v40 = vperm.slane %v1582_v51, %v4481_v52  ;;  %v1619_v30 = vrot.slane %v1592_v46, 4  ;;  %v1600_v11 = vperm.slane %v1594_v23, %v4481_v52  ;;  %v1643_v16 = vsel %vm318_vm15, %v1642_v32, %v1574_v36 }
 0x46c   :  { %v1596_v56 = vsel %vm318_vm15, %v1522_v17, %v1595_v55  ;;  %v1647_v57 = vperm.slane %v1643_v16, %v4481_v52  ;;  %v1658_v61 = vperm.slane %v1654_v0, %v4481_v52  ;;  %v1661_v35 = vrot.slane %v1641_v59, 4 }
 0x46d   :  { %v1607_v62 = vrot.slane %v1588_v40, 4  ;;  %v1604_v1 = vperm.slane %v1596_v56, %v4481_v52  ;;  %v1605_v3 = vrot.slane %v1600_v11, 4  ;;  %v1673_v4 = vrot.slane %v1652_v31, 4 }
 0x46e   :  { %v1662_v39 = vsel %vm318_vm15, %v1647_v57, %v1661_v35  ;;  %v1659_v5 = vrot.slane %v1647_v57, 4  ;;  %v1671_v6 = vrot.slane %v1658_v61, 4 }
 0x46f   :  { %v1606_v49 = vsel %vm318_vm15, %v1605_v3, %v1588_v40  ;;  %v1608_v8 = vsel %vm318_vm15, %v1600_v11, %v1607_v62  ;;  %v1617_v9 = vrot.slane %v1604_v1, 4  ;;  %v1620_v53 = vsel %vm318_vm15, %v1604_v1, %v1619_v30 }
 0x470   :  { %v1612_v10 = vperm.slane %v1606_v49, %v4498_v2  ;;  %v1616_v45 = vperm.slane %v1608_v8, %v4498_v2  ;;  %v1628_v63 = vperm.slane %v1620_v53, %v4498_v2  ;;  %v1670_v12 = vperm.slane %v1662_v39, %v4498_v2 }
 0x471   :  { %v1618_v41 = vsel %vm318_vm15, %v1617_v9, %v1592_v46  ;;  %v1674_v44 = vsel %vm318_vm15, %v1658_v61, %v1673_v4  ;;  %v1660_v13 = vsel %vm318_vm15, %v1659_v5, %v1641_v59  ;;  %v1672_v14 = vsel %vm318_vm15, %v1671_v6, %v1652_v31 }
 0x472   :  { %v1624_v38 = vperm.slane %v1618_v41, %v4498_v2  ;;  %v1629_v19 = vrot.slane %v1612_v10, 4  ;;  %v1631_v26 = vrot.slane %v1616_v45, 4  ;;  %v1635_v20 = vrot.slane %v1628_v63, 4  ;;  %v1779_v45 = vld [vmem:[%s5774_s7 + $0x10] sm:$0xff]  ;;  %v1778_v63 = vld [vmem:[%s5774_s7 + $0x8] sm:$0xff] }
 0x473   :  { %v1682_v50 = vperm.slane %v1674_v44, %v4498_v2  ;;  %v1689_v7 = vrot.slane %v1670_v12, 4  ;;  %v1666_v21 = vperm.slane %v1660_v13, %v4498_v2  ;;  %v1678_v58 = vperm.slane %v1672_v14, %v4498_v2 }
 0x474   :  { %v1630_v22 = vsel %vm318_vm15, 0.0, %v1629_v19  ;;  %v1632_v54 = vsel %vm318_vm15, 0.0, %v1631_v26  ;;  %v1633_v24 = vrot.slane %v1624_v38, 4  ;;  %v1636_v25 = vsel %vm318_vm15, 0.0, %v1635_v20 }
 0x475   :  { %v1691_v18 = vsel %vm318_vm15, %v1631_v26, %v1612_v10  ;;  %v1696_v29 = vrot.slane %v1632_v54, 4  ;;  %v1707_v15 = vrot.slane %v1636_v25, 4  ;;  %v1687_v42 = vrot.slane %v1682_v50, 4  ;;  %v1780_v10 = vld [vmem:[%s5774_s7 + $0x18] sm:$0xff] }
 0x476   :  { %v1695_v31 = vperm.slane %v1691_v18, %v4481_v52  ;;  %v1690_v17 = vsel %vm318_vm15, %v1682_v50, %v1689_v7  ;;  %v1683_v32 = vrot.slane %v1678_v58, 4  ;;  %v1685_v33 = vrot.slane %v1666_v21, 4  ;;  %1803 = vmatpush.msra.mxu3 %v1780_v10  ;;  %v4053_v10 = vld [vmem:[%s5777_s10] ss:$0 sm:$0xff] }
 0x477   :  { %v1688_v34 = vsel %vm318_vm15, %v1687_v42, %v1670_v12  ;;  %1763 = vrot.lane.b32.xlu0 %v1690_v17, %s4209_s1  ;;  %v1634_v37 = vsel %vm318_vm15, 0.0, %v1633_v24  ;;  %v1697_v46 = vsel %vm318_vm15, %v1696_v29, %v1630_v22  ;;  %v1702_v43 = vsel %vm318_vm15, %v1635_v20, %v1624_v38  ;;  %v1777_v12 = vld [vmem:[%s5774_s7] sm:$0xff] }
 0x478   :  { %1755 = vrot.lane.b32.xlu2 %v1688_v34, %s4210_s25  ;;  %v1686_v36 = vsel %vm318_vm15, %v1678_v58, %v1685_v33  ;;  %v1701_v47 = vperm.slane %v1697_v46, %v4481_v52  ;;  %v1706_v0 = vperm.slane %v1702_v43, %v4481_v52  ;;  %v1708_v51 = vsel %vm318_vm15, %v1707_v15, %v1634_v37  ;;  %v4051_v22 = vld [vmem:[%s5775_s8] ss:$0 sm:$0xff]  ;;  %v1879_v34 = vld [vmem:[%s5778_s11 + $0x18] sm:$0xff]  ;;  %v1877_v43 = vld [vmem:[%s5778_s11 + $0x8] sm:$0xff] }
 0x479   :  { %1747 = vrot.lane.b32.xlu1 %v1686_v36, %s4211_s15  ;;  %v1712_v23 = vperm.slane %v1708_v51, %v4481_v52  ;;  %v1715_v55 = vrot.slane %v1695_v31, 4  ;;  %v1684_v59 = vsel %vm318_vm15, %v1683_v32, %v1666_v21  ;;  %1804 = vmatpush.msra.mxu3 %v1779_v45  ;;  %v1876_v51 = vld [vmem:[%s5778_s11] sm:$0xff] }
 0x47a   :  { %v1727_v40 = vrot.slane %v1706_v0, 4  ;;  %v1713_v30 = vrot.slane %v1701_v47, 4  ;;  %1902 = vmatpush.msra.mxu0 %v1879_v34 }
 0x47b   :  { %v1716_v11 = vsel %vm318_vm15, %v1701_v47, %v1715_v55  ;;  %v1725_v16 = vrot.slane %v1712_v23, 4  ;;  %1805 = vmatpush.msra.mxu3 %v1778_v63 }
 0x47c   :  { %v1724_v56 = vperm.slane %v1716_v11, %v4498_v2  ;;  %v1728_v57 = vsel %vm318_vm15, %v1712_v23, %v1727_v40  ;;  %v1714_v61 = vsel %vm318_vm15, %v1713_v30, %v1695_v31 }
 0x47d   :  { %v1736_v35 = vperm.slane %v1728_v57, %v4498_v2  ;;  %v1720_v62 = vperm.slane %v1714_v61, %v4498_v2  ;;  %v1726_v1 = vsel %vm318_vm15, %v1725_v16, %v1706_v0  ;;  %1806 = vmatpush.msra.mxu3 %v1777_v12 }
 0x47e   :  { %v1743_v3 = vrot.slane %v1724_v56, 4  ;;  %v1732_v4 = vperm.slane %v1726_v1, %v4498_v2 }
 0x47f   :  { %v1741_v39 = vrot.slane %v1736_v35, 4  ;;  %v1739_v5 = vrot.slane %v1720_v62, 4 }
 0x480   :  { %v1744_v6 = vsel %vm318_vm15, %v1736_v35, %v1743_v3  ;;  %v1737_v49 = vrot.slane %v1732_v4, 4 }
 0x481   :  { %1765 = vrot.lane.b32.xlu2 %v1744_v6, %s4209_s1  ;;  %v1742_v8 = vsel %vm318_vm15, %v1741_v39, %v1724_v56  ;;  %v1740_v9 = vsel %vm318_vm15, %v1732_v4, %v1739_v5  ;;  %v4052_v6 = vld [vmem:[%s5776_s9] ss:$0 sm:$0xff] }
 0x482   :  { %1757 = vrot.lane.b32.xlu0 %v1742_v8, %s4210_s25  ;;  %1749 = vrot.lane.b32.xlu1 %v1740_v9, %s4211_s15  ;;  %v1738_v53 = vsel %vm318_vm15, %v1737_v49, %v1720_v62 }
 0x4d2   :  { %v1756_v44 = vpop.permute.xlu2 %1755 }
 0x4db   :  { %v1766_v7 = vpop.permute.xlu2 %1765 }
 0x4e9   :  { %v1764_v13 = vpop.permute.xlu0 %1763 }
 0x4eb   :  { %v1748_v41 = vpop.permute.xlu1 %1747 }
 0x4ec   :  { %v1769_v14 = vsel %vm1026_vm0, %v1684_v59, %v1748_v41 }
 0x4ed   :  { %v1772_v38 = vsel %vm1771_vm2, %v1769_v14, %v1756_v44 }
 0x4ee   :  { %v1775_v19 = vsel %vm1774_vm3, %v1772_v38, %v1764_v13 }
 0x4ef   :  { %3926 = vmatmul.msk.f32.vlgmr.msra.gmra.mxu3 %vm194_vm7, %v1775_v19 }
 0x4f4   :  { %v1758_v26 = vpop.permute.xlu0 %1757  ;;  %v1750_v20 = vpop.permute.xlu1 %1749 }
 0x4f5   :  { %v1770_v50 = vsel %vm1026_vm0, %v1738_v53, %v1750_v20  ;;  %v1938_v20 = vld [vmem:[%s5780_s13 + $0x38] sm:$0xff] }
 0x4f6   :  { %v1773_v21 = vsel %vm1771_vm2, %v1770_v50, %v1758_v26  ;;  %v1937_v50 = vld [vmem:[%s5780_s13 + $0x30] sm:$0xff]  ;;  %1958 = vmatpush.msrb.mxu1 %v1938_v20 }
 0x4f7   :  { %v1776_v58 = vsel %vm1774_vm3, %v1773_v21, %v1766_v7  ;;  %v1936_v7 = vld [vmem:[%s5780_s13 + $0x28] sm:$0xff]  ;;  %v1935_v21 = vld [vmem:[%s5780_s13 + $0x20] sm:$0xff] }
 0x4f8   :  { %3927 = vmatmul.msk.f32.gmra.mxu3 %vm194_vm7, %v1776_v58  ;;  %1959 = vmatpush.msrb.mxu1 %v1937_v50  ;;  %v1934_v58 = vld [vmem:[%s5780_s13 + $0x18] sm:$0xff] }
 0x4fa   :  { %1960 = vmatpush.msrb.mxu1 %v1936_v7 }
 0x4fc   :  { %1961 = vmatpush.msrb.mxu1 %v1935_v21 }
 0x4fe   :  { %1962 = vmatpush.msrb.mxu1 %v1934_v58 }
 0x572   :  { %v1808_v54 = vpop.f32.mrf.mxu3 }
 0x573   :  { %v1809_v24 = vadd.f32 %v4051_v22, %v1808_v54  ;;  %v1932_v54 = vld [vmem:[%s5780_s13 + $0x8] sm:$0xff] }
 0x575   :  { %v4994_v25 = vadd.f32 %v1809_v24, %v4382_v27  ;;  %v1931_v24 = vld [vmem:[%s5780_s13] sm:$0xff] }
 0x577   :  { %v1818_v18 = vsel %vm194_vm7, %v4994_v25, 0.0  ;;  %v1826_v29 = vmul.f32 %v4994_v25, %v4994_v25 }
 0x578   :  { %1819 = vadd.xlane.f32.xlu1 %v1818_v18  ;;  %v4054_v18 = vld [vmem:[%s5779_s12] ss:$0 sm:$0xff] }
 0x579   :  { %v1828_v15 = vsel %vm194_vm7, %v1826_v29, 0.0 }
 0x57a   :  { %1829 = vadd.xlane.f32.xlu0 %v1828_v15 }
 0x57b   :  { %v1811_v42 = vpop.f32.mrf.mxu3 }
 0x57c   :  { %v1812_v31 = vadd.f32 %v4051_v22, %v1811_v42  ;;  %v1933_v22 = vld [vmem:[%s5780_s13 + $0x10] sm:$0xff] }
 0x57d   :  { %1963 = vmatpush.msrb.mxu1 %v1933_v22 }
 0x57e   :  { %v5002_v17 = vadd.f32 %v1812_v31, %v4410_v48  ;;  %v1878_v48 = vld [vmem:[%s5778_s11 + $0x10] sm:$0xff] }
 0x57f   :  { %1903 = vmatpush.msra.mxu0 %v1878_v48  ;;  %1964 = vmatpush.msrb.mxu1 %v1932_v54 }
 0x580   :  { %v1821_v32 = vsel %vm194_vm7, %v5002_v17, 0.0  ;;  %v1827_v27 = vmul.f32 %v5002_v17, %v5002_v17 }
 0x581   :  { %1822 = vadd.xlane.f32.xlu2 %v1821_v32  ;;  %1904 = vmatpush.msra.mxu0 %v1877_v43 }
 0x582   :  { %v1831_v33 = vsel %vm194_vm7, %v1827_v27, 0.0  ;;  %1965 = vmatpush.msrb.mxu1 %v1931_v24 }
 0x583   :  { %1832 = vadd.xlane.f32.xlu1 %v1831_v33  ;;  %1905 = vmatpush.msra.mxu0 %v1876_v51 }
 0x5eb   :  { %v1820_v37 = vpop.xlane.xlu1 %1819 }
 0x5ec   :  { %v1824_v46 = vmul.f32 %v1820_v37, %v4418_v60 }
 0x5ed   :  { %v1830_v36 = vpop.xlane.xlu0 %1829 }
 0x5ee   :  { %v1836_v47 = vmul.f32 %v1824_v46, %v1824_v46  ;;  %v1834_v0 = vmul.f32 %v1830_v36, %v4418_v60  ;;  %v1862_v5 = vsub.f32 %v4994_v25, %v1824_v46 }
 0x5f0   :  { %v1838_v23 = vsub.f32 %v1834_v0, %v1836_v47 }
 0x5f2   :  { %v1840_v55 = vadd.f32 1e-05, %v1838_v23 }
 0x5f4   :  { %4104 = vrsqrt.f32 %v1840_v55  ;;  %v1823_v59 = vpop.xlane.xlu2 %1822  ;;  %vm1848_vm5 = vweird.f32 %v1840_v55 }
 0x5f5   :  { %v1825_v40 = vmul.f32 %v1823_v59, %v4418_v60 }
 0x5f6   :  { %v1833_v30 = vpop.xlane.xlu1 %1832 }
 0x5f7   :  { %v1837_v11 = vmul.f32 %v1825_v40, %v1825_v40  ;;  %v1835_v16 = vmul.f32 %v1833_v30, %v4418_v60  ;;  %v1863_v13 = vsub.f32 %v5002_v17, %v1825_v40 }
 0x5f9   :  { %v1839_v56 = vsub.f32 %v1835_v16, %v1837_v11  ;;  %v4055_v16 = vld [vmem:[%s5802_s24] ss:$0 sm:$0xff] }
 0x5fa   :  { %v4105_v57 = vpop.eup %4104 }
 0x5fb   :  { %v1843_v61 = vmul.f32 %v4105_v57, %v1840_v55  ;;  %v1841_v35 = vadd.f32 1e-05, %v1839_v56  ;;  %vm1849_vm4 = vweird.f32 %v4105_v57 }
 0x5fc   :  { %vm1850_vm6 = vmor %vm1848_vm5, %vm1849_vm4 }
 0x5fd   :  { %v1844_v62 = vmul.f32 %v4105_v57, %v1843_v61  ;;  %4106 = vrsqrt.f32 %v1841_v35  ;;  %vm1858_vm9 = vweird.f32 %v1841_v35 }
 0x5ff   :  { %v1845_v1 = vmul.f32 0.5, %v1844_v62 }
 0x601   :  { %v1846_v3 = vsub.f32 1.5, %v1845_v1 }
 0x603   :  { %v4107_v4 = vpop.eup %4106  ;;  %v1847_v39 = vmul.f32 %v4105_v57, %v1846_v3 }
 0x604   :  { %v1853_v49 = vmul.f32 %v4107_v4, %v1841_v35  ;;  %vm1859_vm8 = vweird.f32 %v4107_v4 }
 0x605   :  { %v1851_v8 = vsel %vm1850_vm6, %v4105_v57, %v1847_v39  ;;  %vm1860_vm10 = vmor %vm1858_vm9, %vm1859_vm8 }
 0x606   :  { %v1864_v9 = vmul.f32 %v1862_v5, %v1851_v8  ;;  %v1854_v53 = vmul.f32 %v4107_v4, %v1853_v49  ;;  %v3937_v49 = vld [vmem:[%s5772_s5 + $0x38] sm:$0xff] }
 0x607   :  { %2065 = vmatpush.msra.mxu2 %v3937_v49 }
 0x608   :  { %v1869_v45 = vmul.f32 %v4052_v6, %v1864_v9  ;;  %v1855_v63 = vmul.f32 0.5, %v1854_v53  ;;  %v3935_v53 = vld [vmem:[%s5772_s5 + $0x28] sm:$0xff] }
 0x60a   :  { %v1856_v12 = vsub.f32 1.5, %v1855_v63  ;;  %v1874_v41 = vadd.f32 %v4053_v10, %v1869_v45 }
 0x60c   :  { %v1857_v44 = vmul.f32 %v4107_v4, %v1856_v12  ;;  %3928 = vmatmul.msk.f32.vlgmr.msra.gmra.mxu0 %vm194_vm7, %v1874_v41  ;;  %v3934_v12 = vld [vmem:[%s5772_s5 + $0x20] sm:$0xff] }
 0x60e   :  { %v1861_v14 = vsel %vm1860_vm10, %v4107_v4, %v1857_v44 }
 0x60f   :  { %v1865_v38 = vmul.f32 %v1863_v13, %v1861_v14 }
 0x611   :  { %v1870_v19 = vmul.f32 %v4052_v6, %v1865_v38 }
 0x613   :  { %v1875_v26 = vadd.f32 %v4053_v10, %v1870_v19 }
 0x615   :  { %3929 = vmatmul.msk.f32.gmra.mxu0 %vm194_vm7, %v1875_v26 }
 0x689   :  { %v1907_v29 = vpop.f32.mrf.mxu0 }
 0x68a   :  { %v1908_v15 = vadd.f32 %v4054_v18, %v1907_v29 }
 0x68c   :  { %v1915_v42 = vmul.f32 0.044715, %v1908_v15  ;;  %v1913_v0 = vmul.f32 0.5, %v1908_v15 }
 0x68e   :  { %v1917_v31 = vmul.f32 %v1915_v42, %v1908_v15 }
 0x690   :  { %v1919_v32 = vmul.f32 %v1917_v31, %v1908_v15 }
 0x692   :  { %v1921_v27 = vadd.f32 %v1919_v32, %v1908_v15  ;;  %v1910_v33 = vpop.f32.mrf.mxu0  ;;  %v4056_v15 = vld [vmem:[%s5770_s3 + $0x1] ss:$0 sm:$0xff] }
 0x693   :  { %v1911_v34 = vadd.f32 %v4054_v18, %v1910_v33  ;;  %v4057_v33 = vld [vmem:[%s5771_s4 + $0x1] ss:$0 sm:$0xff]  ;;  %s5805_s4 = sld [smem:[#allocation13_spill]] }
 0x694   :  { %v1923_v37 = vmul.f32 0.7978846, %v1921_v27 }
 0x695   :  { %v1916_v46 = vmul.f32 0.044715, %v1911_v34  ;;  %v1914_v40 = vmul.f32 0.5, %v1911_v34 }
 0x696   :  { %4108 = vtanh.f32 %v1923_v37 }
 0x697   :  { %v1918_v48 = vmul.f32 %v1916_v46, %v1911_v34 }
 0x699   :  { %v1920_v43 = vmul.f32 %v1918_v48, %v1911_v34 }
 0x69b   :  { %v1922_v36 = vadd.f32 %v1920_v43, %v1911_v34 }
 0x69c   :  { %v4109_v47 = vpop.eup %4108 }
 0x69d   :  { %v1927_v51 = vadd.f32 1.0, %v4109_v47  ;;  %v1924_v23 = vmul.f32 0.7978846, %v1922_v36 }
 0x69f   :  { %v1929_v55 = vmul.f32 %v1927_v51, %v1913_v0  ;;  %4110 = vtanh.f32 %v1924_v23 }
 0x6a1   :  { %3930 = vmatmul.msk.f32.vlgmr.msrb.gmra.mxu1 %vm1943_vm11, %v1929_v55  ;;  %v4058_v55 = vld [vmem:[%s5773_s6 + $0x1] ss:$0 sm:$0xff] }
 0x6a5   :  { %v4111_v59 = vpop.eup %4110 }
 0x6a6   :  { %v1928_v30 = vadd.f32 1.0, %v4111_v59 }
 0x6a8   :  { %v1930_v11 = vmul.f32 %v1928_v30, %v1914_v40 }
 0x6aa   :  { %3931 = vmatmul.msk.f32.gmra.mxu1 %vm1943_vm11, %v1930_v11 }
 0x71e   :  { %v1967_v56 = vpop.f32.mrf.mxu1 }
 0x71f   :  { %v1968_v57 = vadd.f32 %v4055_v16, %v1967_v56 }
 0x721   :  { %v5068_v61 = vadd.f32 %v1968_v57, %v4994_v25 }
 0x723   :  { %v1979_v35 = vsel %vm194_vm7, %v5068_v61, 0.0  ;;  %v1987_v62 = vmul.f32 %v5068_v61, %v5068_v61 }
 0x724   :  { %1980 = vadd.xlane.f32.xlu0 %v1979_v35 }
 0x725   :  { %v1989_v1 = vsel %vm194_vm7, %v1987_v62, 0.0 }
 0x726   :  { %1990 = vadd.xlane.f32.xlu2 %v1989_v1 }
 0x727   :  { %v1970_v3 = vpop.f32.mrf.mxu1 }
 0x728   :  { %v1971_v4 = vadd.f32 %v4055_v16, %v1970_v3 }
 0x72a   :  { %v5076_v39 = vadd.f32 %v1971_v4, %v5002_v17  ;;  %v3936_v17 = vld [vmem:[%s5772_s5 + $0x30] sm:$0xff] }
 0x72b   :  { %2066 = vmatpush.msra.mxu2 %v3936_v17 }
 0x72c   :  { %v1982_v5 = vsel %vm194_vm7, %v5076_v39, 0.0  ;;  %v1988_v25 = vmul.f32 %v5076_v39, %v5076_v39 }
 0x72d   :  { %1983 = vadd.xlane.f32.xlu1 %v1982_v5  ;;  %2067 = vmatpush.msra.mxu2 %v3935_v53 }
 0x72e   :  { %v1992_v6 = vsel %vm194_vm7, %v1988_v25, 0.0 }
 0x72f   :  { %1993 = vadd.xlane.f32.xlu0 %v1992_v6  ;;  %2068 = vmatpush.msra.mxu2 %v3934_v12 }
 0x797   :  { %v1981_v8 = vpop.xlane.xlu0 %1980 }
 0x798   :  { %v1985_v9 = vmul.f32 %v1981_v8, %v4418_v60 }
 0x799   :  { %v1991_v10 = vpop.xlane.xlu2 %1990 }
 0x79a   :  { %v1997_v45 = vmul.f32 %v1985_v9, %v1985_v9  ;;  %v1995_v63 = vmul.f32 %v1991_v10, %v4418_v60  ;;  %v2023_v29 = vsub.f32 %v5068_v61, %v1985_v9 }
 0x79c   :  { %v1999_v41 = vsub.f32 %v1995_v63, %v1997_v45 }
 0x79e   :  { %v2001_v44 = vadd.f32 1e-05, %v1999_v41 }
 0x7a0   :  { %4112 = vrsqrt.f32 %v2001_v44  ;;  %v1984_v13 = vpop.xlane.xlu1 %1983  ;;  %vm2009_vm13 = vweird.f32 %v2001_v44 }
 0x7a1   :  { %v1986_v14 = vmul.f32 %v1984_v13, %v4418_v60 }
 0x7a2   :  { %v1994_v38 = vpop.xlane.xlu0 %1993 }
 0x7a3   :  { %v1998_v19 = vmul.f32 %v1986_v14, %v1986_v14  ;;  %v1996_v26 = vmul.f32 %v1994_v38, %v4418_v60  ;;  %v2024_v36 = vsub.f32 %v5076_v39, %v1986_v14 }
 0x7a5   :  { %v2000_v20 = vsub.f32 %v1996_v26, %v1998_v19 }
 0x7a6   :  { %v4113_v50 = vpop.eup %4112 }
 0x7a7   :  { %v2004_v7 = vmul.f32 %v4113_v50, %v2001_v44  ;;  %v2002_v21 = vadd.f32 1e-05, %v2000_v20  ;;  %vm2010_vm12 = vweird.f32 %v4113_v50 }
 0x7a8   :  { %vm2011_vm14 = vmor %vm2009_vm13, %vm2010_vm12 }
 0x7a9   :  { %v2005_v58 = vmul.f32 %v4113_v50, %v2004_v7  ;;  %4114 = vrsqrt.f32 %v2002_v21  ;;  %vm2019_vm5 = vweird.f32 %v2002_v21 }
 0x7ab   :  { %v2006_v22 = vmul.f32 0.5, %v2005_v58 }
 0x7ad   :  { %v2007_v54 = vsub.f32 1.5, %v2006_v22 }
 0x7af   :  { %v4115_v24 = vpop.eup %4114  ;;  %v2008_v18 = vmul.f32 %v4113_v50, %v2007_v54 }
 0x7b0   :  { %v2014_v42 = vmul.f32 %v4115_v24, %v2002_v21  ;;  %vm2020_vm4 = vweird.f32 %v4115_v24 }
 0x7b1   :  { %v2012_v31 = vsel %vm2011_vm14, %v4113_v50, %v2008_v18  ;;  %vm2021_vm6 = vmor %vm2019_vm5, %vm2020_vm4 }
 0x7b2   :  { %v2025_v32 = vmul.f32 %v2023_v29, %v2012_v31  ;;  %v2015_v27 = vmul.f32 %v4115_v24, %v2014_v42 }
 0x7b4   :  { %v2030_v34 = vmul.f32 %v4056_v15, %v2025_v32  ;;  %v2016_v37 = vmul.f32 0.5, %v2015_v27 }
 0x7b6   :  { %v2017_v46 = vsub.f32 1.5, %v2016_v37  ;;  %v2035_v48 = vadd.f32 %v4057_v33, %v2030_v34 }
 0x7b8   :  { %v2018_v43 = vmul.f32 %v4115_v24, %v2017_v46  ;;  %3939 = vmatmul.msk.f32.vlgmr.msra.gmra.mxu2 %vm194_vm7, %v2035_v48 }
 0x7ba   :  { %v2022_v47 = vsel %vm2021_vm6, %v4115_v24, %v2018_v43 }
 0x7bb   :  { %v2026_v0 = vmul.f32 %v2024_v36, %v2022_v47 }
 0x7bd   :  { %v2031_v51 = vmul.f32 %v4056_v15, %v2026_v0 }
 0x7bf   :  { %v2036_v23 = vadd.f32 %v4057_v33, %v2031_v51 }
 0x7c1   :  { %3940 = vmatmul.msk.f32.gmra.mxu2 %vm194_vm7, %v2036_v23 }
 0x83b   :  { %v2070_v59 = vpop.f32.mrf.mxu2 }
 0x83c   :  { %v5112_v40 = vadd.f32 %v4058_v55, %v2070_v59 }
 0x83e   :  { %2090 = vrot.lane.b32.xlu0 %v5112_v40, %s4202_s21  ;;  %2084 = vrot.lane.b32.xlu1 %v5112_v40, %s4204_s22  ;;  %v2098_v57 = vrot.slane %v5112_v40, 4 }
 0x83f   :  { %2078 = vrot.lane.b32.xlu2 %v5112_v40, %s4203_s29 }
 0x844   :  { %v2073_v30 = vpop.f32.mrf.mxu2 }
 0x845   :  { %v5120_v11 = vadd.f32 %v4058_v55, %v2073_v30 }
 0x847   :  { %2086 = vrot.lane.b32.xlu0 %v5120_v11, %s4204_s22  ;;  %2092 = vrot.lane.b32.xlu1 %v5120_v11, %s4202_s21 }
 0x848   :  { %2080 = vrot.lane.b32.xlu2 %v5120_v11, %s4203_s29  ;;  %s5806_s29 = sld [smem:[#allocation15_spill]] }
 0x84e   :  { %s3856_s22 = sshll.u32 %s5806_s29, 4  ;;  %s3857_s22 = int_to_ptr.hbm [resolvable:$true] %s3856_s22 }
 0x850   :  { %2316 = vrot.lane.b32.xlu2 %v5112_v40, %s4205_s0 }
 0x899   :  { %v2079_v16 = vpop.permute.xlu2 %2078 }
 0x89a   :  { %2320 = vrot.lane.b32.xlu0 %v2079_v16, %s4205_s0  ;;  %v2110_v56 = vrot.slane %v2079_v16, 4  ;;  %v4028_v37 = vpack.i.bf16 %v2079_v16, %v5112_v40 }
 0x8a2   :  { %2318 = vrot.lane.b32.xlu0 %v5120_v11, %s4205_s0  ;;  %v5161_v38 = vpop.permute.xlu2 %2080 }
 0x8b0   :  { %v5134_v35 = vpop.permute.xlu0 %2090  ;;  %v5136_v62 = vpop.permute.xlu1 %2084 }
 0x8b1   :  { %v2108_v1 = vrot.slane %v5134_v35, 4  ;;  %v2111_v3 = vsel %vm318_vm15, %v5134_v35, %v2110_v56  ;;  %v2096_v4 = vrot.slane %v5136_v62, 4  ;;  %v2099_v5 = vsel %vm318_vm15, %v5136_v62, %v2098_v57  ;;  %2324 = vrot.lane.b32.xlu1 %v5136_v62, %s4205_s0  ;;  %2328 = vrot.lane.b32.xlu2 %v5134_v35, %s4205_s0 }
 0x8b2   :  { %v2119_v25 = vperm.slane %v2111_v3, %v4481_v52  ;;  %v2107_v6 = vperm.slane %v2099_v5, %v4481_v52  ;;  %v4033_v49 = vpack.i.bf16 %v5134_v35, %v5136_v62 }
 0x8b3   :  { %v2109_v8 = vsel %vm318_vm15, %v2108_v1, %v2079_v16  ;;  %v2097_v9 = vsel %vm318_vm15, %v2096_v4, %v5112_v40 }
 0x8b4   :  { %v2115_v17 = vperm.slane %v2109_v8, %v4481_v52  ;;  %v2132_v53 = vrot.slane %v2119_v25, 4  ;;  %v2103_v10 = vperm.slane %v2097_v9, %v4481_v52  ;;  %v2134_v45 = vrot.slane %v2107_v6, 4 }
 0x8b6   :  { %v2120_v63 = vrot.slane %v2115_v17, 4  ;;  %v2122_v12 = vrot.slane %v2103_v10, 4  ;;  %v2133_v41 = vsel %vm318_vm15, %v2132_v53, %v2107_v6  ;;  %v2135_v44 = vsel %vm318_vm15, %v2119_v25, %v2134_v45 }
 0x8b7   :  { %v2139_v13 = vperm.slane %v2133_v41, %v4498_v2  ;;  %v2143_v14 = vperm.slane %v2135_v44, %v4498_v2  ;;  %v2154_v45 = vrot.slane %v5120_v11, 4 }
 0x8b8   :  { %v2121_v19 = vsel %vm318_vm15, %v2120_v63, %v2103_v10  ;;  %v2123_v26 = vsel %vm318_vm15, %v2115_v17, %v2122_v12 }
 0x8b9   :  { %v2127_v20 = vperm.slane %v2121_v19, %v4498_v2  ;;  %v2131_v50 = vperm.slane %v2123_v26, %v4498_v2  ;;  %v2148_v7 = vrot.slane %v2139_v13, 4  ;;  %v2150_v21 = vrot.slane %v2143_v14, 4  ;;  %2322 = vrot.lane.b32.xlu1 %v5161_v38, %s4205_s0  ;;  %v5169_v58 = vpop.permute.xlu0 %2086  ;;  %v5171_v22 = vpop.permute.xlu1 %2092 }
 0x8ba   :  { %2326 = vrot.lane.b32.xlu2 %v5169_v58, %s4205_s0  ;;  %2330 = vrot.lane.b32.xlu0 %v5171_v22, %s4205_s0  ;;  %v2152_v10 = vrot.slane %v5169_v58, 4  ;;  %v2155_v12 = vsel %vm318_vm15, %v5169_v58, %v2154_v45  ;;  %v2164_v41 = vrot.slane %v5171_v22, 4  ;;  %v2166_v14 = vrot.slane %v5161_v38, 4  ;;  %v2317_v19 = vpop.permute.xlu2 %2316  ;;  %s4212_s0 = smov [#allocation5]  }
 0x8bb   :  { %v2146_v54 = vrot.slane %v2131_v50, 4  ;;  %v2151_v24 = vsel %vm318_vm15, 0.0, %v2150_v21  ;;  %v2144_v18 = vrot.slane %v2127_v20, 4  ;;  %v2219_v29 = vsel %vm318_vm15, %v2150_v21, %v2139_v13 }
 0x8bc   :  { %v2224_v15 = vrot.slane %v2151_v24, 4  ;;  %v2149_v31 = vsel %vm318_vm15, 0.0, %v2148_v7  ;;  %v2223_v34 = vperm.slane %v2219_v29, %v4481_v52  ;;  %v2153_v63 = vsel %vm318_vm15, %v2152_v10, %v5120_v11 }
 0x8bd   :  { %v2147_v42 = vsel %vm318_vm15, 0.0, %v2146_v54  ;;  %v2208_v27 = vsel %vm318_vm15, %v2146_v54, %v2127_v20  ;;  %v2145_v46 = vsel %vm318_vm15, 0.0, %v2144_v18  ;;  %v2159_v44 = vperm.slane %v2153_v63, %v4481_v52 }
 0x8be   :  { %v2225_v32 = vsel %vm318_vm15, %v2224_v15, %v2149_v31  ;;  %v2213_v33 = vrot.slane %v2147_v42, 4  ;;  %v2212_v48 = vperm.slane %v2208_v27, %v4481_v52  ;;  %v2244_v51 = vrot.slane %v2223_v34, 4 }
 0x8bf   :  { %v2229_v36 = vperm.slane %v2225_v32, %v4481_v52  ;;  %v2163_v13 = vperm.slane %v2155_v12, %v4481_v52  ;;  %v2165_v26 = vsel %vm318_vm15, %v2164_v41, %v5161_v38  ;;  %v2178_v20 = vrot.slane %v2159_v44, 4 }
 0x8c0   :  { %v2214_v43 = vsel %vm318_vm15, %v2213_v33, %v2145_v46  ;;  %v2232_v0 = vrot.slane %v2212_v48, 4  ;;  %v2167_v50 = vsel %vm318_vm15, %v5171_v22, %v2166_v14  ;;  %v2171_v21 = vperm.slane %v2165_v26, %v4481_v52 }
 0x8c1   :  { %v2218_v47 = vperm.slane %v2214_v43, %v4481_v52  ;;  %v2242_v55 = vrot.slane %v2229_v36, 4  ;;  %v2245_v30 = vsel %vm318_vm15, %v2229_v36, %v2244_v51  ;;  %v2190_v7 = vrot.slane %v2163_v13, 4 }
 0x8c2   :  { %4029 = vrot.lane.b32.xlu0 %v4028_v37, %s4208_s17  ;;  %v2253_v16 = vperm.slane %v2245_v30, %v4498_v2  ;;  %v2175_v54 = vperm.slane %v2167_v50, %v4481_v52  ;;  %v2179_v24 = vsel %vm318_vm15, %v2171_v21, %v2178_v20  ;;  %v2176_v18 = vrot.slane %v2171_v21, 4 }
 0x8c3   :  { %v2230_v23 = vrot.slane %v2218_v47, 4  ;;  %v2233_v59 = vsel %vm318_vm15, %v2218_v47, %v2232_v0  ;;  %v2243_v57 = vsel %vm318_vm15, %v2242_v55, %v2223_v34  ;;  %v2187_v15 = vperm.slane %v2179_v24, %v4498_v2 }
 0x8c4   :  { %v2241_v40 = vperm.slane %v2233_v59, %v4498_v2  ;;  %v2249_v3 = vperm.slane %v2243_v57, %v4498_v2  ;;  %v2258_v5 = vrot.slane %v2253_v16, 4  ;;  %v2191_v29 = vsel %vm318_vm15, %v2175_v54, %v2190_v7 }
 0x8c5   :  { %v2231_v56 = vsel %vm318_vm15, %v2230_v23, %v2212_v48  ;;  %v2188_v31 = vrot.slane %v2175_v54, 4  ;;  %v2199_v27 = vperm.slane %v2191_v29, %v4498_v2  ;;  %v2177_v33 = vsel %vm318_vm15, %v2176_v18, %v2159_v44 }
 0x8c6   :  { %v2237_v1 = vperm.slane %v2231_v56, %v4498_v2  ;;  %v2260_v4 = vrot.slane %v2241_v40, 4  ;;  %v2254_v25 = vrot.slane %v2249_v3, 4  ;;  %v5203_v9 = vsel %vm318_vm15, %v2258_v5, %v2241_v40 }
 0x8c7   :  { %v2202_v34 = vrot.slane %v2187_v15, 4  ;;  %v2189_v46 = vsel %vm318_vm15, %v2188_v31, %v2163_v13  ;;  %v2183_v48 = vperm.slane %v2177_v33, %v4498_v2  ;;  %v2206_v43 = vrot.slane %v2199_v27, 4 }
 0x8c8   :  { %v2256_v6 = vrot.slane %v2237_v1, 4  ;;  %v5200_v8 = vsel %vm318_vm15, %v2253_v16, %v2260_v4  ;;  %v5206_v17 = vsel %vm318_vm15, %v2254_v25, %v2237_v1  ;;  %v2195_v47 = vperm.slane %v2189_v46, %v4498_v2 }
 0x8c9   :  { %v2203_v0 = vsel %vm318_vm15, 0.0, %v2202_v34  ;;  %v2200_v55 = vrot.slane %v2183_v48, 4  ;;  %v2207_v59 = vsel %vm318_vm15, 0.0, %v2206_v43  ;;  %v2262_v45 = vsel %vm318_vm15, %v2202_v34, %v2183_v48 }
 0x8ca   :  { %v5209_v53 = vsel %vm318_vm15, %v2249_v3, %v2256_v6  ;;  %v2273_v40 = vsel %vm318_vm15, %v2206_v43, %v2195_v47  ;;  %v2267_v16 = vrot.slane %v2203_v0, 4  ;;  %v2342_v3 = vrot.slane %v2317_v19, 4 }
 0x8cb   :  { %v2204_v4 = vrot.slane %v2195_v47, 4  ;;  %v5242_v5 = vperm.slane %v2273_v40, %v4481_v52  ;;  %v2278_v25 = vrot.slane %v2207_v59, 4  ;;  %v2201_v44 = vsel %vm318_vm15, 0.0, %v2200_v55 }
 0x8cc   :  { %v2268_v20 = vsel %vm318_vm15, %v2267_v16, %v2201_v44  ;;  %v5255_v54 = vperm.slane %v2262_v45, %v4481_v52 }
 0x8cd   :  { %v2205_v50 = vsel %vm318_vm15, 0.0, %v2204_v4 }
 0x8ce   :  { %v2279_v27 = vsel %vm318_vm15, %v2278_v25, %v2205_v50 }
 0x8cf   :  { %v5272_v0 = vperm.slane %v2279_v27, %v4481_v52 }
 0x90b   :  { %v2329_v42 = vpop.permute.xlu2 %2328 }
 0x90c   :  { %v2321_v32 = vpop.permute.xlu0 %2320  ;;  %v2352_v36 = vrot.slane %v2329_v42, 4 }
 0x90d   :  { %v2354_v37 = vrot.slane %v2321_v32, 4 }
 0x90e   :  { %v2353_v30 = vsel %vm318_vm15, %v2352_v36, %v2321_v32  ;;  %v5262_v32 = vperm.slane %v2268_v20, %v4481_v52 }
 0x90f   :  { %v2355_v51 = vsel %vm318_vm15, %v2329_v42, %v2354_v37  ;;  %v2359_v6 = vperm.slane %v2353_v30, %v4481_v52 }
 0x910   :  { %v2363_v56 = vperm.slane %v2355_v51, %v4481_v52  ;;  %v2286_v51 = vrot.slane %v5255_v54, 4  ;;  %v2284_v16 = vrot.slane %v5262_v32, 4 }
 0x911   :  { %v2364_v24 = vrot.slane %v2359_v6, 4 }
 0x912   :  { %v2376_v13 = vrot.slane %v2363_v56, 4 }
 0x914   :  { %v2327_v23 = vpop.permute.xlu2 %2326  ;;  %v2319_v57 = vpop.permute.xlu0 %2318 }
 0x915   :  { %v2396_v1 = vrot.slane %v2327_v23, 4  ;;  %v2398_v63 = vrot.slane %v2319_v57, 4 }
 0x917   :  { %v2397_v14 = vsel %vm318_vm15, %v2396_v1, %v2319_v57  ;;  %v2399_v7 = vsel %vm318_vm15, %v2327_v23, %v2398_v63  ;;  %v2298_v23 = vrot.slane %v5242_v5, 4 }
 0x918   :  { %v2403_v42 = vperm.slane %v2397_v14, %v4481_v52 }
 0x91a   :  { %v2422_v55 = vrot.slane %v2403_v42, 4 }
 0x923   :  { %v2325_v10 = vpop.permute.xlu1 %2324 }
 0x924   :  { %v2340_v12 = vrot.slane %v2325_v10, 4  ;;  %v2343_v41 = vsel %vm318_vm15, %v2325_v10, %v2342_v3 }
 0x925   :  { %v2351_v26 = vperm.slane %v2343_v41, %v4481_v52 }
 0x926   :  { %v2341_v21 = vsel %vm318_vm15, %v2340_v12, %v2317_v19  ;;  %v2407_v19 = vperm.slane %v2399_v7, %v4481_v52 }
 0x927   :  { %v2347_v18 = vperm.slane %v2341_v21, %v4481_v52  ;;  %v2377_v29 = vsel %vm318_vm15, %v2376_v13, %v2351_v26  ;;  %v2378_v15 = vrot.slane %v2351_v26, 4 }
 0x928   :  { %v2383_v31 = vperm.slane %v2377_v29, %v4498_v2 }
 0x929   :  { %v2365_v33 = vsel %vm318_vm15, %v2364_v24, %v2347_v18  ;;  %v2366_v34 = vrot.slane %v2347_v18, 4  ;;  %v2379_v37 = vsel %vm318_vm15, %v2363_v56, %v2378_v15  ;;  %v2434_v56 = vrot.slane %v2407_v19, 4 }
 0x92a   :  { %v2371_v46 = vperm.slane %v2365_v33, %v4498_v2  ;;  %v2387_v48 = vperm.slane %v2379_v37, %v4498_v2  ;;  %v2392_v43 = vrot.slane %v2383_v31, 4 }
 0x92b   :  { %v2367_v36 = vsel %vm318_vm15, %v2359_v6, %v2366_v34  ;;  %v2323_v47 = vpop.permute.xlu1 %2322 }
 0x92c   :  { %v2375_v59 = vperm.slane %v2367_v36, %v4498_v2  ;;  %v2394_v40 = vrot.slane %v2387_v48, 4  ;;  %v2331_v30 = vpop.permute.xlu0 %2330  ;;  %v2388_v57 = vrot.slane %v2371_v46, 4  ;;  %v2410_v1 = vrot.slane %v2323_v47, 4 }
 0x92d   :  { %v2408_v3 = vrot.slane %v2331_v30, 4  ;;  %v2393_v25 = vsel %vm318_vm15, 0.0, %v2392_v43 }
 0x92e   :  { %v2390_v4 = vrot.slane %v2375_v59, 4  ;;  %v2395_v6 = vsel %vm318_vm15, 0.0, %v2394_v40  ;;  %v2463_v10 = vsel %vm318_vm15, %v2394_v40, %v2383_v31  ;;  %v2411_v41 = vsel %vm318_vm15, %v2331_v30, %v2410_v1 }
 0x92f   :  { %v2467_v45 = vperm.slane %v2463_v10, %v4481_v52  ;;  %v2468_v63 = vrot.slane %v2395_v6, 4  ;;  %v2409_v12 = vsel %vm318_vm15, %v2408_v3, %v2323_v47  ;;  %v2419_v26 = vperm.slane %v2411_v41, %v4481_v52 }
 0x930   :  { %v2391_v44 = vsel %vm318_vm15, 0.0, %v2390_v4  ;;  %v2452_v13 = vsel %vm318_vm15, %v2390_v4, %v2371_v46  ;;  %v2415_v14 = vperm.slane %v2409_v12, %v4481_v52  ;;  %v2389_v20 = vsel %vm318_vm15, 0.0, %v2388_v57 }
 0x931   :  { %v2457_v50 = vrot.slane %v2391_v44, 4  ;;  %v2469_v7 = vsel %vm318_vm15, %v2468_v63, %v2393_v25  ;;  %v2456_v21 = vperm.slane %v2452_v13, %v4481_v52  ;;  %v2432_v15 = vrot.slane %v2419_v26, 4 }
 0x932   :  { %v2473_v24 = vperm.slane %v2469_v7, %v4481_v52  ;;  %v2420_v18 = vrot.slane %v2415_v14, 4  ;;  %v2423_v29 = vsel %vm318_vm15, %v2415_v14, %v2422_v55  ;;  %v2488_v31 = vrot.slane %v2467_v45, 4 }
 0x933   :  { %v2431_v27 = vperm.slane %v2423_v29, %v4498_v2  ;;  %v2435_v33 = vsel %vm318_vm15, %v2419_v26, %v2434_v56  ;;  %v2458_v34 = vsel %vm318_vm15, %v2457_v50, %v2389_v20  ;;  %v2433_v46 = vsel %vm318_vm15, %v2432_v15, %v2407_v19 }
 0x934   :  { %v2421_v37 = vsel %vm318_vm15, %v2420_v18, %v2403_v42  ;;  %v2443_v48 = vperm.slane %v2435_v33, %v4498_v2  ;;  %v2476_v43 = vrot.slane %v2456_v21, 4  ;;  %v2439_v47 = vperm.slane %v2433_v46, %v4498_v2  ;;  %v5417_v28 = vpop.permute.xlu0 %4029 }
 0x935   :  { %v2427_v36 = vperm.slane %v2421_v37, %v4498_v2  ;;  %v2446_v55 = vrot.slane %v2431_v27, 4  ;;  %v2462_v59 = vperm.slane %v2458_v34, %v4481_v52  ;;  %v2486_v40 = vrot.slane %v2473_v24, 4 }
 0x936   :  { %v2450_v30 = vrot.slane %v2443_v48, 4  ;;  %v5304_v56 = vsel %vm318_vm15, %v5262_v32, %v2286_v51  ;;  %v2299_v42 = vsel %vm318_vm15, %v5272_v0, %v2298_v23  ;;  %v2448_v1 = vrot.slane %v2439_v47, 4 }
 0x937   :  { %v2444_v19 = vrot.slane %v2427_v36, 4  ;;  %v2447_v57 = vsel %vm318_vm15, 0.0, %v2446_v55  ;;  %v2489_v3 = vsel %vm318_vm15, %v2473_v24, %v2488_v31  ;;  %v2477_v6 = vsel %vm318_vm15, %v2462_v59, %v2476_v43 }
 0x938   :  { %v2451_v4 = vsel %vm318_vm15, 0.0, %v2450_v30  ;;  %v2517_v25 = vsel %vm318_vm15, %v2450_v30, %v2439_v47  ;;  %v2296_v10 = vrot.slane %v5272_v0, 4  ;;  %v2449_v51 = vsel %vm318_vm15, 0.0, %v2448_v1 }
 0x939   :  { %v2511_v63 = vrot.slane %v2447_v57, 4  ;;  %v2521_v12 = vperm.slane %v2517_v25, %v4481_v52  ;;  %v2522_v23 = vrot.slane %v2451_v4, 4  ;;  %v2445_v41 = vsel %vm318_vm15, 0.0, %v2444_v19 }
 0x93a   :  { %v2506_v44 = vsel %vm318_vm15, %v2446_v55, %v2427_v36  ;;  %v2485_v13 = vperm.slane %v2477_v6, %v4498_v2  ;;  %v2497_v14 = vperm.slane %v2489_v3, %v4498_v2  ;;  %v2474_v50 = vrot.slane %v2462_v59, 4 }
 0x93b   :  { %v2523_v26 = vsel %vm318_vm15, %v2522_v23, %v2449_v51  ;;  %v2542_v20 = vrot.slane %v2521_v12, 4  ;;  %v2487_v0 = vsel %vm318_vm15, %v2486_v40, %v2467_v45  ;;  %v2510_v31 = vperm.slane %v2506_v44, %v4481_v52 }
 0x93c   :  { %v2527_v7 = vperm.slane %v2523_v26, %v4481_v52  ;;  %v2502_v24 = vrot.slane %v2497_v14, 4  ;;  %v2493_v18 = vperm.slane %v2487_v0, %v4498_v2  ;;  %v2504_v29 = vrot.slane %v2485_v13, 4 }
 0x93d   :  { %v2475_v15 = vsel %vm318_vm15, %v2474_v50, %v2456_v21  ;;  %v2512_v27 = vsel %vm318_vm15, %v2511_v63, %v2445_v41  ;;  %v2307_v33 = vperm.slane %v2299_v42, %v4498_v2  ;;  %v2530_v43 = vrot.slane %v2510_v31, 4 }
 0x93e   :  { %v2503_v34 = vsel %vm318_vm15, %v2502_v24, %v2485_v13  ;;  %v2481_v37 = vperm.slane %v2475_v15, %v4498_v2  ;;  %v2498_v46 = vrot.slane %v2493_v18, 4  ;;  %v2505_v45 = vsel %vm318_vm15, %v2497_v14, %v2504_v29 }
 0x93f   :  { %3945 = vmatpush.xpose.msk.msrb.mxu2 %vm1026_vm0, %v2503_v34  ;;  %v2516_v48 = vperm.slane %v2512_v27, %v4481_v52  ;;  %v2543_v21 = vsel %vm318_vm15, %v2527_v7, %v2542_v20  ;;  %v2540_v36 = vrot.slane %v2527_v7, 4  ;;  %v2285_v40 = vsel %vm318_vm15, %v2284_v16, %v5255_v54 }
 0x940   :  { %v2499_v47 = vsel %vm318_vm15, %v2498_v46, %v2481_v37  ;;  %v2500_v55 = vrot.slane %v2481_v37, 4  ;;  %v2551_v59 = vperm.slane %v2543_v21, %v4498_v2  ;;  %v2297_v57 = vsel %vm318_vm15, %v2296_v10, %v5242_v5 }
 0x941   :  { %3941 = vmatpush.xpose.msk.msrb.mxu3 %vm1026_vm0, %v2499_v47  ;;  %v2531_v30 = vsel %vm318_vm15, %v2516_v48, %v2530_v43  ;;  %v2528_v42 = vrot.slane %v2516_v48, 4  ;;  %v2541_v19 = vsel %vm318_vm15, %v2540_v36, %v2521_v12  ;;  %v2291_v4 = vperm.slane %v2285_v40, %v4498_v2 }
 0x942   :  { %3946 = vmatmul.msk.f32.vlgmr.msrb.gmra.mxu2 %vm1026_vm0, %v5203_v9  ;;  %v2501_v1 = vsel %vm318_vm15, %v2493_v18, %v2500_v55  ;;  %v2539_v32 = vperm.slane %v2531_v30, %v4498_v2  ;;  %v2556_v54 = vrot.slane %v2551_v59, 4  ;;  %v2547_v16 = vperm.slane %v2541_v19, %v4498_v2 }
 0x943   :  { %3943 = vmatpush.xpose.msk.msrb.mxu0 %vm1026_vm0, %v2501_v1  ;;  %v2529_v3 = vsel %vm318_vm15, %v2528_v42, %v2510_v31  ;;  %v2295_v10 = vperm.slane %v5304_v56, %v4498_v2  ;;  %v2312_v51 = vrot.slane %v2307_v33, 4  ;;  %v2303_v63 = vperm.slane %v2297_v57, %v4498_v2 }
 0x944   :  { %3942 = vmatmul.msk.f32.vlgmr.msrb.gmra.mxu3 %vm1026_vm0, %v5206_v17  ;;  %v2557_v9 = vsel %vm318_vm15, %v2556_v54, %v2539_v32  ;;  %v2535_v5 = vperm.slane %v2529_v3, %v4498_v2  ;;  %v2552_v25 = vrot.slane %v2547_v16, 4  ;;  %v2558_v6 = vrot.slane %v2539_v32, 4 }
 0x945   :  { %3947 = vmatpush.xpose.msk.msra.mxu3 %vm1026_vm0, %v2505_v45  ;;  %3953 = vmatpush.xpose.msk.msra.mxu2 %vm1026_vm0, %v2557_v9  ;;  %v2310_v41 = vrot.slane %v2291_v4, 4  ;;  %v2313_v56 = vsel %vm318_vm15, %v2312_v51, %v2295_v10  ;;  %v2308_v13 = vrot.slane %v2303_v63, 4  ;;  %v2314_v26 = vrot.slane %v2295_v10, 4 }
 0x946   :  { %3944 = vmatmul.msk.f32.vlgmr.msrb.gmra.mxu0 %vm1026_vm0, %v5209_v53  ;;  %v2553_v12 = vsel %vm318_vm15, %v2552_v25, %v2535_v5  ;;  %v2559_v17 = vsel %vm318_vm15, %v2551_v59, %v2558_v6  ;;  %v2554_v23 = vrot.slane %v2535_v5, 4  ;;  %v4038_v9 = vpack.i.bf16 %v5161_v38, %v5120_v11 }
 0x947   :  { %3949 = vmatpush.xpose.msk.msra.mxu0 %vm1026_vm0, %v2553_v12  ;;  %v2311_v53 = vsel %vm318_vm15, %v2303_v63, %v2310_v41  ;;  %v2309_v14 = vsel %vm318_vm15, %v2308_v13, %v2291_v4  ;;  %v2315_v20 = vsel %vm318_vm15, %v2307_v33, %v2314_v26  ;;  %v4043_v4 = vpack.i.bf16 %v5171_v22, %v5169_v58 }
 0x948   :  { %v2555_v44 = vsel %vm318_vm15, %v2547_v16, %v2554_v23 }
 0x949   :  { %3955 = vmatpush.xpose.msk.msrb.mxu3 %vm1026_vm0, %v2559_v17  ;;  %3951 = vmatpush.xpose.msk.msra.mxu1 %vm1026_vm0, %v2555_v44 }
 0x94a   :  { %3954 = vmatmul.msk.f32.vlgmr.msra.gmra.mxu2 %vm1026_vm0, %v2313_v56 }
 0x94c   :  { %3948 = vmatmul.msk.f32.vlgmr.msra.gmra.mxu3 %vm1026_vm0, %v5200_v8  ;;  %3952 = vmatmul.msk.f32.vlgmr.msra.gmra.mxu1 %vm1026_vm0, %v2311_v53 }
 0x94e   :  { %3950 = vmatmul.msk.f32.vlgmr.msra.gmra.mxu0 %vm1026_vm0, %v2309_v14 }
 0x954   :  { %3956 = vmatmul.msk.f32.vlgmr.msrb.gmra.mxu3 %vm1026_vm0, %v2315_v20 }
 0x9c3   :  { %v2853_v50 = vpop.f32.mrf.mxu0 }
 0x9c4   :  { %v3013_v0 = vmul.f32 0.35355338, %v2853_v50 }
 0x9c5   :  { %v2879_v7 = vpop.f32.mrf.mxu2 }
 0x9c6   :  { %v3014_v24 = vmul.f32 0.35355338, %v2879_v7  ;;  %v3021_v18 = vsel %vm4715_vm1, %v3013_v0, -1e+30 }
 0x9c7   :  { %v2827_v29 = vpop.f32.mrf.mxu3  ;;  %v3031_v8 = vsel %vm1026_vm0, %v3021_v18, -inf }
 0x9c8   :  { %v3012_v15 = vmul.f32 0.35355338, %v2827_v29  ;;  %3032 = vmax.xlane.f32.xlu2 %v3031_v8  ;;  %v3022_v31 = vsel %vm4715_vm1, %v3014_v24, -1e+30 }
 0x9c9   :  { %v3034_v27 = vsel %vm1026_vm0, %v3022_v31, -inf  ;;  %v2957_v47 = vpop.f32.mrf.mxu1 }
 0x9ca   :  { %3035 = vmax.xlane.f32.xlu1 %v3034_v27  ;;  %v3020_v33 = vsel %vm4715_vm1, %v3012_v15, -1e+30  ;;  %v3017_v30 = vmul.f32 0.35355338, %v2957_v47  ;;  %v4031_v47 = vunpack.i.l.bf16 %v5417_v28 }
 0x9cb   :  { %v3028_v34 = vsel %vm1026_vm0, %v3020_v33, -inf  ;;  %v2931_v37 = vpop.f32.mrf.mxu0 }
 0x9cc   :  { %3029 = vmax.xlane.f32.xlu0 %v3028_v34  ;;  %v3016_v46 = vmul.f32 0.35355338, %v2931_v37  ;;  %v3025_v1 = vsel %vm4715_vm1, %v3017_v30, -1e+30 }
 0x9cd   :  { %v2983_v43 = vpop.f32.mrf.mxu2  ;;  %v3043_v16 = vsel %vm1026_vm0, %v3025_v1, -inf }
 0x9ce   :  { %v5391_v45 = vsel %vm4715_vm1, %v3016_v46, -1e+30  ;;  %v3018_v55 = vmul.f32 0.35355338, %v2983_v43 }
 0x9cf   :  { %v2905_v48 = vpop.f32.mrf.mxu3  ;;  %v3040_v21 = vsel %vm1026_vm0, %v5391_v45, -inf }
 0x9d0   :  { %v3015_v36 = vmul.f32 0.35355338, %v2905_v48  ;;  %v3026_v42 = vsel %vm4715_vm1, %v3018_v55, -1e+30 }
 0x9d1   :  { %v3046_v32 = vsel %vm1026_vm0, %v3026_v42, -inf }
 0x9d2   :  { %3041 = vmax.xlane.f32.xlu1 %v3040_v21  ;;  %v3023_v59 = vsel %vm4715_vm1, %v3015_v36, -1e+30  ;;  %v4032_v36 = vunpack.i.h.bf16 %v5417_v28 }
 0x9d3   :  { %v3037_v40 = vsel %vm1026_vm0, %v3023_v59, -inf }
 0x9d4   :  { %3038 = vmax.xlane.f32.xlu2 %v3037_v40 }
 0x9d7   :  { %v3009_v19 = vpop.f32.mrf.mxu3 }
 0x9d8   :  { %v3019_v57 = vmul.f32 0.35355338, %v3009_v19 }
 0x9da   :  { %3047 = vmax.xlane.f32.xlu1 %v3046_v32  ;;  %v3027_v54 = vsel %vm4715_vm1, %v3019_v57, -1e+30 }
 0x9db   :  { %v3049_v3 = vsel %vm1026_vm0, %v3027_v54, -inf }
 0x9dc   :  { %3044 = vmax.xlane.f32.xlu2 %v3043_v16  ;;  %3050 = vmax.xlane.f32.xlu0 %v3049_v3 }
 0x9f0   :  { %4044 = vrot.lane.b32.xlu0 %v4043_v4, %s4208_s17 }
 0x9f3   :  { %4034 = vrot.lane.b32.xlu1 %v4033_v49, %s4208_s17 }
 0x9f4   :  { %4039 = vrot.lane.b32.xlu2 %v4038_v9, %s4208_s17  ;;  %s3854_s17 = sshll.u32 %s4212_s0, 4  ;;  %s3855_s17 = int_to_ptr.vmem [resolvable:$true] %s3854_s17 }
 0xa3b   :  { %v3033_v5 = vpop.xlane.xlu2 %3032 }
 0xa3c   :  { %v3053_v51 = vsub.f32 %v3021_v18, %v3033_v5  ;;  %v2598_v5 = vrot.slane %v4032_v36, 4 }
 0xa3d   :  { %v3036_v25 = vpop.xlane.xlu1 %3035 }
 0xa3e   :  { %v3054_v6 = vsub.f32 %v3022_v31, %v3036_v25  ;;  %v3062_v12 = vmul.f32 1.442695, %v3053_v51  ;;  %v2586_v25 = vrot.slane %v4031_v47, 4 }
 0xa3f   :  { %v3030_v10 = vpop.xlane.xlu0 %3029 }
 0xa40   :  { %v3064_v58 = vmul.f32 1.442695, %v3054_v6  ;;  %v3052_v22 = vsub.f32 %v3020_v33, %v3030_v10 }
 0xa42   :  { %4116 = vpow2.f32 %v3064_v58  ;;  %v3060_v63 = vmul.f32 1.442695, %v3052_v22 }
 0xa44   :  { %4118 = vpow2.f32 %v3060_v63 }
 0xa45   :  { %v3042_v11 = vpop.xlane.xlu1 %3041  ;;  %4120 = vpow2.f32 %v3062_v12 }
 0xa46   :  { %v3056_v0 = vsub.f32 %v5391_v45, %v3042_v11 }
 0xa47   :  { %v3039_v38 = vpop.xlane.xlu2 %3038 }
 0xa48   :  { %v5419_v17 = vpop.eup %4116  ;;  %v3055_v35 = vsub.f32 %v3023_v59, %v3039_v38  ;;  %v3068_v15 = vmul.f32 1.442695, %v3056_v0 }
 0xa49   :  { %v3082_v62 = vsel %vm1026_vm0, %v5419_v17, 0.0 }
 0xa4a   :  { %v5423_v49 = vpop.eup %4118  ;;  %v3066_v23 = vmul.f32 1.442695, %v3055_v35  ;;  %3083 = vadd.xlane.f32.xlu0 %v3082_v62 }
 0xa4b   :  { %v3076_v41 = vsel %vm1026_vm0, %v5423_v49, 0.0  ;;  %v5427_v56 = vpop.eup %4120 }
 0xa4c   :  { %4122 = vpow2.f32 %v3066_v23  ;;  %3077 = vadd.xlane.f32.xlu1 %v3076_v41  ;;  %v3079_v7 = vsel %vm1026_vm0, %v5427_v56, 0.0 }
 0xa4d   :  { %v3048_v44 = vpop.xlane.xlu1 %3047 }
 0xa4e   :  { %v3058_v13 = vsub.f32 %v3026_v42, %v3048_v44 }
 0xa4f   :  { %v3045_v53 = vpop.xlane.xlu2 %3044  ;;  %v3051_v14 = vpop.xlane.xlu0 %3050 }
 0xa50   :  { %v3072_v26 = vmul.f32 1.442695, %v3058_v13  ;;  %v3057_v20 = vsub.f32 %v3025_v1, %v3045_v53  ;;  %v3059_v50 = vsub.f32 %v3027_v54, %v3051_v14 }
 0xa52   :  { %v5432_v24 = vpop.eup %4122  ;;  %4124 = vpow2.f32 %v3072_v26  ;;  %v3070_v18 = vmul.f32 1.442695, %v3057_v20  ;;  %v3074_v29 = vmul.f32 1.442695, %v3059_v50  ;;  %3080 = vadd.xlane.f32.xlu0 %v3079_v7 }
 0xa53   :  { %v3085_v8 = vsel %vm1026_vm0, %v5432_v24, 0.0 }
 0xa54   :  { %4126 = vpow2.f32 %v3070_v18  ;;  %3086 = vadd.xlane.f32.xlu2 %v3085_v8 }
 0xa55   :  { %4128 = vpow2.f32 %v3074_v29 }
 0xa56   :  { %4130 = vpow2.f32 %v3068_v15 }
 0xa57   :  { %v4040_v46 = vpop.permute.xlu2 %4039 }
 0xa58   :  { %v5436_v31 = vpop.eup %4124  ;;  %v4042_v43 = vunpack.i.h.bf16 %v4040_v46  ;;  %v4041_v21 = vunpack.i.l.bf16 %v4040_v46 }
 0xa59   :  { %v3094_v27 = vsel %vm1026_vm0, %v5436_v31, 0.0 }
 0xa5a   :  { %v5440_v33 = vpop.eup %4126  ;;  %v2654_v40 = vrot.slane %v4042_v43, 4  ;;  %v2642_v30 = vrot.slane %v4041_v21, 4 }
 0xa5b   :  { %v5442_v34 = vpop.eup %4128  ;;  %v3091_v37 = vsel %vm1026_vm0, %v5440_v33, 0.0 }
 0xa5c   :  { %3095 = vadd.xlane.f32.xlu2 %v3094_v27  ;;  %3092 = vadd.xlane.f32.xlu0 %v3091_v37  ;;  %v3097_v45 = vsel %vm1026_vm0, %v5442_v34, 0.0  ;;  %v5448_v48 = vpop.eup %4130 }
 0xa5d   :  { %3098 = vadd.xlane.f32.xlu1 %v3097_v45  ;;  %v3088_v59 = vsel %vm1026_vm0, %v5448_v48, 0.0 }
 0xa62   :  { %v4045_v55 = vpop.permute.xlu0 %4044 }
 0xa63   :  { %v4047_v42 = vunpack.i.h.bf16 %v4045_v55  ;;  %v4046_v19 = vunpack.i.l.bf16 %v4045_v55 }
 0xa64   :  { %3089 = vadd.xlane.f32.xlu2 %v3088_v59 }
 0xa65   :  { %v2652_v57 = vrot.slane %v4047_v42, 4  ;;  %v2655_v1 = vsel %vm318_vm15, %v4047_v42, %v2654_v40  ;;  %v2640_v32 = vrot.slane %v4046_v19, 4  ;;  %v2643_v54 = vsel %vm318_vm15, %v4046_v19, %v2642_v30  ;;  %v4035_v16 = vpop.permute.xlu1 %4034 }
 0xa66   :  { %v2663_v3 = vperm.slane %v2655_v1, %v4481_v52  ;;  %v2651_v4 = vperm.slane %v2643_v54, %v4481_v52  ;;  %v4037_v9 = vunpack.i.h.bf16 %v4035_v16  ;;  %v4036_v28 = vunpack.i.l.bf16 %v4035_v16 }
 0xa67   :  { %v2653_v6 = vsel %vm318_vm15, %v2652_v57, %v4042_v43  ;;  %v2641_v10 = vsel %vm318_vm15, %v2640_v32, %v4041_v21 }
 0xa68   :  { %v2659_v51 = vperm.slane %v2653_v6, %v4481_v52  ;;  %v2676_v58 = vrot.slane %v2663_v3, 4  ;;  %v2647_v22 = vperm.slane %v2641_v10, %v4481_v52  ;;  %v2678_v63 = vrot.slane %v2651_v4, 4 }
 0xa69   :  { %v2596_v12 = vrot.slane %v4037_v9, 4  ;;  %v2599_v11 = vsel %vm318_vm15, %v4037_v9, %v2598_v5  ;;  %v2584_v38 = vrot.slane %v4036_v28, 4  ;;  %v2587_v35 = vsel %vm318_vm15, %v4036_v28, %v2586_v25 }
 0xa6a   :  { %v2664_v62 = vrot.slane %v2659_v51, 4  ;;  %v2666_v23 = vrot.slane %v2647_v22, 4  ;;  %v2677_v41 = vsel %vm318_vm15, %v2676_v58, %v2651_v4  ;;  %v2679_v44 = vsel %vm318_vm15, %v2663_v3, %v2678_v63 }
 0xa6b   :  { %v2683_v13 = vperm.slane %v2677_v41, %v4498_v2  ;;  %v2687_v53 = vperm.slane %v2679_v44, %v4498_v2  ;;  %v2597_v14 = vsel %vm318_vm15, %v2596_v12, %v4032_v36  ;;  %v2607_v26 = vperm.slane %v2599_v11, %v4481_v52 }
 0xa6c   :  { %v2665_v20 = vsel %vm318_vm15, %v2664_v62, %v2647_v22  ;;  %v2667_v50 = vsel %vm318_vm15, %v2659_v51, %v2666_v23  ;;  %v2603_v0 = vperm.slane %v2597_v14, %v4481_v52  ;;  %v2585_v7 = vsel %vm318_vm15, %v2584_v38, %v4031_v47 }
 0xa6d   :  { %v2671_v18 = vperm.slane %v2665_v20, %v4498_v2  ;;  %v2675_v29 = vperm.slane %v2667_v50, %v4498_v2  ;;  %v2692_v8 = vrot.slane %v2683_v13, 4  ;;  %v2694_v15 = vrot.slane %v2687_v53, 4 }
 0xa6e   :  { %v2608_v27 = vrot.slane %v2603_v0, 4  ;;  %v2620_v37 = vrot.slane %v2607_v26, 4  ;;  %v2591_v46 = vperm.slane %v2585_v7, %v4481_v52  ;;  %v2595_v45 = vperm.slane %v2587_v35, %v4481_v52 }
 0xa6f   :  { %v2688_v43 = vrot.slane %v2671_v18, 4  ;;  %v2690_v21 = vrot.slane %v2675_v29, 4  ;;  %v2693_v36 = vsel %vm318_vm15, 0.0, %v2692_v8  ;;  %v2695_v55 = vsel %vm318_vm15, 0.0, %v2694_v15 }
 0xa70   :  { %v2761_v47 = vsel %vm318_vm15, %v2694_v15, %v2683_v13  ;;  %v2766_v59 = vrot.slane %v2695_v55, 4  ;;  %v2609_v40 = vsel %vm318_vm15, %v2608_v27, %v2591_v46  ;;  %v2610_v30 = vrot.slane %v2591_v46, 4 }
 0xa71   :  { %v2691_v42 = vsel %vm318_vm15, 0.0, %v2690_v21  ;;  %v2615_v19 = vperm.slane %v2609_v40, %v4498_v2  ;;  %v2621_v57 = vsel %vm318_vm15, %v2620_v37, %v2595_v45  ;;  %v2622_v1 = vrot.slane %v2595_v45, 4 }
 0xa72   :  { %v2755_v32 = vrot.slane %v2691_v42, 4  ;;  %v2611_v54 = vsel %vm318_vm15, %v2603_v0, %v2610_v30  ;;  %v2627_v16 = vperm.slane %v2621_v57, %v4498_v2  ;;  %v2689_v3 = vsel %vm318_vm15, 0.0, %v2688_v43 }
 0xa73   :  { %v2619_v4 = vperm.slane %v2611_v54, %v4498_v2  ;;  %v2623_v9 = vsel %vm318_vm15, %v2607_v26, %v2622_v1  ;;  %v2632_v28 = vrot.slane %v2615_v19, 4  ;;  %v2750_v5 = vsel %vm318_vm15, %v2690_v21, %v2671_v18 }
 0xa74   :  { %v2631_v25 = vperm.slane %v2623_v9, %v4498_v2  ;;  %v2636_v6 = vrot.slane %v2627_v16, 4  ;;  %v2754_v10 = vperm.slane %v2750_v5, %v4481_v52  ;;  %v2756_v51 = vsel %vm318_vm15, %v2755_v32, %v2689_v3 }
 0xa75   :  { %v2634_v58 = vrot.slane %v2619_v4, 4  ;;  %v2633_v22 = vsel %vm318_vm15, 0.0, %v2632_v28  ;;  %v2760_v63 = vperm.slane %v2756_v51, %v4481_v52  ;;  %v2765_v12 = vperm.slane %v2761_v47, %v4481_v52 }
 0xa76   :  { %v2637_v11 = vsel %vm318_vm15, 0.0, %v2636_v6  ;;  %v2638_v38 = vrot.slane %v2631_v25, 4  ;;  %v2767_v35 = vsel %vm318_vm15, %v2766_v59, %v2693_v36  ;;  %v2774_v62 = vrot.slane %v2754_v10, 4 }
 0xa77   :  { %v2635_v23 = vsel %vm318_vm15, 0.0, %v2634_v58  ;;  %v2696_v41 = vsel %vm318_vm15, %v2634_v58, %v2615_v19  ;;  %v2771_v44 = vperm.slane %v2767_v35, %v4481_v52  ;;  %v2786_v13 = vrot.slane %v2765_v12, 4 }
 0xa78   :  { %v2639_v53 = vsel %vm318_vm15, 0.0, %v2638_v38  ;;  %v2701_v14 = vrot.slane %v2635_v23, 4  ;;  %v2707_v26 = vsel %vm318_vm15, %v2638_v38, %v2627_v16  ;;  %v2700_v20 = vperm.slane %v2696_v41, %v4481_v52 }
 0xa79   :  { %v2712_v50 = vrot.slane %v2639_v53, 4  ;;  %v2711_v0 = vperm.slane %v2707_v26, %v4481_v52  ;;  %v2775_v7 = vsel %vm318_vm15, %v2760_v63, %v2774_v62  ;;  %v2787_v18 = vsel %vm318_vm15, %v2771_v44, %v2786_v13 }
 0xa7a   :  { %v2702_v29 = vsel %vm318_vm15, %v2701_v14, %v2633_v22  ;;  %v2720_v8 = vrot.slane %v2700_v20, 4  ;;  %v2783_v15 = vperm.slane %v2775_v7, %v4498_v2  ;;  %v2795_v27 = vperm.slane %v2787_v18, %v4498_v2 }
 0xa7b   :  { %v2706_v37 = vperm.slane %v2702_v29, %v4481_v52  ;;  %v2713_v46 = vsel %vm318_vm15, %v2712_v50, %v2637_v11  ;;  %v2732_v45 = vrot.slane %v2711_v0, 4  ;;  %v2772_v43 = vrot.slane %v2760_v63, 4 }
 0xa7c   :  { %v2717_v21 = vperm.slane %v2713_v46, %v4481_v52  ;;  %v2784_v36 = vrot.slane %v2771_v44, 4  ;;  %v2800_v47 = vrot.slane %v2795_v27, 4  ;;  %v2802_v57 = vrot.slane %v2783_v15, 4 }
 0xa7d   :  { %v2721_v55 = vsel %vm318_vm15, %v2706_v37, %v2720_v8  ;;  %v2718_v59 = vrot.slane %v2706_v37, 4  ;;  %v2773_v40 = vsel %vm318_vm15, %v2772_v43, %v2754_v10 }
 0xa7e   :  { %v2729_v30 = vperm.slane %v2721_v55, %v4498_v2  ;;  %v2733_v42 = vsel %vm318_vm15, %v2717_v21, %v2732_v45  ;;  %v2730_v19 = vrot.slane %v2717_v21, 4  ;;  %v2779_v54 = vperm.slane %v2773_v40, %v4498_v2 }
 0xa7f   :  { %v2741_v1 = vperm.slane %v2733_v42, %v4498_v2  ;;  %v2719_v32 = vsel %vm318_vm15, %v2718_v59, %v2700_v20  ;;  %v2785_v16 = vsel %vm318_vm15, %v2784_v36, %v2765_v12  ;;  %v2803_v12 = vsel %vm318_vm15, %v2795_v27, %v2802_v57 }
 0xa80   :  { %v2725_v3 = vperm.slane %v2719_v32, %v4498_v2  ;;  %v2731_v4 = vsel %vm318_vm15, %v2730_v19, %v2711_v0  ;;  %v2748_v9 = vrot.slane %v2729_v30, 4  ;;  %v2791_v28 = vperm.slane %v2785_v16, %v4498_v2 }
 0xa81   :  { %v2746_v5 = vrot.slane %v2741_v1, 4  ;;  %v2737_v25 = vperm.slane %v2731_v4, %v4498_v2  ;;  %v2798_v6 = vrot.slane %v2779_v54, 4  ;;  %v2801_v11 = vsel %vm318_vm15, %v2800_v47, %v2783_v15 }
 0xa82   :  { %v2749_v10 = vsel %vm318_vm15, %v2741_v1, %v2748_v9  ;;  %v2796_v51 = vrot.slane %v2791_v28, 4  ;;  %v2744_v58 = vrot.slane %v2725_v3, 4 }
 0xa83   :  { %v2747_v22 = vsel %vm318_vm15, %v2746_v5, %v2729_v30  ;;  %v2742_v63 = vrot.slane %v2737_v25, 4  ;;  %3203 = vmatpush.msra.mxu3 %v2749_v10  ;;  %v2799_v62 = vsel %vm318_vm15, %v2791_v28, %v2798_v6 }
 0xa84   :  { %3180 = vmatpush.msrb.mxu2 %v2747_v22  ;;  %v2745_v38 = vsel %vm318_vm15, %v2737_v25, %v2744_v58  ;;  %v2797_v23 = vsel %vm318_vm15, %v2796_v51, %v2779_v54 }
 0xa85   :  { %3295 = vmatpush.msrb.mxu3 %v2803_v12  ;;  %v2743_v35 = vsel %vm318_vm15, %v2742_v63, %v2725_v3  ;;  %3157 = vmatpush.msrb.mxu1 %v2745_v38 }
 0xa86   :  { %3272 = vmatpush.msra.mxu2 %v2801_v11  ;;  %3134 = vmatpush.msrb.mxu0 %v2743_v35 }
 0xa87   :  { %3249 = vmatpush.msra.mxu1 %v2799_v62 }
 0xa88   :  { %3226 = vmatpush.msra.mxu0 %v2797_v23 }
 0xabd   :  { %v3084_v41 = vpop.xlane.xlu0 %3083 }
 0xabe   :  { %4132 = vrcp.f32 %v3084_v41 }
 0xabf   :  { %v3078_v44 = vpop.xlane.xlu1 %3077 }
 0xac0   :  { %4134 = vrcp.f32 %v3078_v44 }
 0xac4   :  { %v4133_v13 = vpop.eup %4132 }
 0xac5   :  { %v3110_v53 = vmul.f32 %v4133_v13, %v5419_v17  ;;  %v3081_v14 = vpop.xlane.xlu0 %3080 }
 0xac6   :  { %v4135_v26 = vpop.eup %4134  ;;  %4136 = vrcp.f32 %v3081_v14 }
 0xac7   :  { %v3108_v20 = vmul.f32 %v4135_v26, %v5423_v49  ;;  %v3087_v50 = vpop.xlane.xlu2 %3086  ;;  %3959 = vmatmul.msk.f32.vlgmr.msrb.gmra.mxu2 %vm1026_vm0, %v3110_v53 }
 0xac8   :  { %4138 = vrcp.f32 %v3087_v50 }
 0xac9   :  { %3957 = vmatmul.msk.f32.vlgmr.msrb.gmra.mxu0 %vm1026_vm0, %v3108_v20 }
 0xacc   :  { %v4137_v0 = vpop.eup %4136 }
 0xacd   :  { %v3109_v7 = vmul.f32 %v4137_v0, %v5427_v56 }
 0xace   :  { %v4139_v18 = vpop.eup %4138 }
 0xacf   :  { %v3111_v29 = vmul.f32 %v4139_v18, %v5432_v24  ;;  %v3096_v8 = vpop.xlane.xlu2 %3095  ;;  %3958 = vmatmul.msk.f32.vlgmr.msrb.gmra.mxu1 %vm1026_vm0, %v3109_v7  ;;  %v3093_v17 = vpop.xlane.xlu0 %3092 }
 0xad0   :  { %4140 = vrcp.f32 %v3096_v8  ;;  %v3099_v15 = vpop.xlane.xlu1 %3098 }
 0xad1   :  { %4142 = vrcp.f32 %v3099_v15  ;;  %3960 = vmatmul.msk.f32.vlgmr.msra.gmra.mxu3 %vm1026_vm0, %v3111_v29 }
 0xad2   :  { %4144 = vrcp.f32 %v3093_v17 }
 0xad6   :  { %v4141_v49 = vpop.eup %4140 }
 0xad7   :  { %v4143_v27 = vpop.eup %4142  ;;  %v3114_v37 = vmul.f32 %v4141_v49, %v5436_v31  ;;  %v3090_v46 = vpop.xlane.xlu2 %3089 }
 0xad8   :  { %v4145_v45 = vpop.eup %4144  ;;  %v3115_v56 = vmul.f32 %v4143_v27, %v5442_v34  ;;  %4146 = vrcp.f32 %v3090_v46 }
 0xad9   :  { %v3113_v24 = vmul.f32 %v4145_v45, %v5440_v33  ;;  %3963 = vmatmul.msk.f32.vlgmr.msra.gmra.mxu2 %vm1026_vm0, %v3114_v37 }
 0xada   :  { %3964 = vmatmul.msk.f32.vlgmr.msrb.gmra.mxu3 %vm1026_vm0, %v3115_v56 }
 0xadb   :  { %3962 = vmatmul.msk.f32.vlgmr.msra.gmra.mxu1 %vm1026_vm0, %v3113_v24 }
 0xade   :  { %v4147_v43 = vpop.eup %4146 }
 0xadf   :  { %v3112_v21 = vmul.f32 %v4147_v43, %v5448_v48 }
 0xae1   :  { %3961 = vmatmul.msk.f32.vlgmr.msra.gmra.mxu0 %vm1026_vm0, %v3112_v21 }
 0xb46   :  { %v3136_v36 = vpop.f32.mrf.mxu0 }
 0xb47   :  { %v3302_v55 = vrot.slane %v3136_v36, 4 }
 0xb4a   :  { %v3182_v31 = vpop.f32.mrf.mxu2 }
 0xb4b   :  { %v3300_v47 = vrot.slane %v3182_v31, 4  ;;  %v3303_v34 = vsel %vm318_vm15, %v3182_v31, %v3302_v55 }
 0xb4c   :  { %v3159_v59 = vpop.f32.mrf.mxu1  ;;  %v3311_v40 = vperm.slane %v3303_v34, %v4481_v52 }
 0xb4d   :  { %v3301_v33 = vsel %vm318_vm15, %v3300_v47, %v3136_v36  ;;  %v3314_v30 = vrot.slane %v3159_v59, 4 }
 0xb4e   :  { %v3307_v42 = vperm.slane %v3301_v33, %v4481_v52  ;;  %v3338_v1 = vrot.slane %v3311_v40, 4 }
 0xb50   :  { %v3326_v16 = vrot.slane %v3307_v42, 4 }
 0xb54   :  { %v3205_v19 = vpop.f32.mrf.mxu3 }
 0xb55   :  { %v3312_v57 = vrot.slane %v3205_v19, 4  ;;  %v3315_v48 = vsel %vm318_vm15, %v3205_v19, %v3314_v30 }
 0xb56   :  { %v3323_v32 = vperm.slane %v3315_v48, %v4481_v52 }
 0xb57   :  { %v3313_v54 = vsel %vm318_vm15, %v3312_v57, %v3159_v59 }
 0xb58   :  { %v3319_v3 = vperm.slane %v3313_v54, %v4481_v52  ;;  %v3336_v4 = vrot.slane %v3323_v32, 4  ;;  %v3339_v9 = vsel %vm318_vm15, %v3323_v32, %v3338_v1  ;;  %v3251_v5 = vpop.f32.mrf.mxu1 }
 0xb59   :  { %v3347_v28 = vperm.slane %v3339_v9, %v4498_v2  ;;  %v3370_v12 = vrot.slane %v3251_v5, 4 }
 0xb5a   :  { %v3324_v25 = vrot.slane %v3319_v3, 4  ;;  %v3327_v6 = vsel %vm318_vm15, %v3319_v3, %v3326_v16  ;;  %v3337_v10 = vsel %vm318_vm15, %v3336_v4, %v3311_v40 }
 0xb5b   :  { %v3335_v51 = vperm.slane %v3327_v6, %v4498_v2  ;;  %v3343_v58 = vperm.slane %v3337_v10, %v4498_v2  ;;  %v3354_v22 = vrot.slane %v3347_v28, 4 }
 0xb5c   :  { %v3325_v63 = vsel %vm318_vm15, %v3324_v25, %v3307_v42  ;;  %v3274_v11 = vpop.f32.mrf.mxu2 }
 0xb5d   :  { %v3331_v38 = vperm.slane %v3325_v63, %v4498_v2  ;;  %v3350_v35 = vrot.slane %v3335_v51, 4  ;;  %v3352_v62 = vrot.slane %v3343_v58, 4  ;;  %v3355_v23 = vsel %vm318_vm15, 0.0, %v3354_v22  ;;  %v3297_v41 = vpop.f32.mrf.mxu3 }
 0xb5e   :  { %v3423_v44 = vsel %vm318_vm15, %v3354_v22, %v3343_v58  ;;  %v3428_v13 = vrot.slane %v3355_v23, 4  ;;  %v3356_v53 = vrot.slane %v3274_v11, 4  ;;  %v3368_v14 = vrot.slane %v3297_v41, 4  ;;  %v3228_v26 = vpop.f32.mrf.mxu0 }
 0xb5f   :  { %v3348_v20 = vrot.slane %v3331_v38, 4  ;;  %v3351_v50 = vsel %vm318_vm15, 0.0, %v3350_v35  ;;  %v3353_v0 = vsel %vm318_vm15, 0.0, %v3352_v62  ;;  %v3427_v7 = vperm.slane %v3423_v44, %v4481_v52 }
 0xb60   :  { %v3417_v18 = vrot.slane %v3351_v50, 4  ;;  %v3369_v29 = vsel %vm318_vm15, %v3368_v14, %v3251_v5  ;;  %v3371_v8 = vsel %vm318_vm15, %v3297_v41, %v3370_v12  ;;  %v3357_v17 = vsel %vm318_vm15, %v3356_v53, %v3228_v26 }
 0xb61   :  { %v3375_v15 = vperm.slane %v3369_v29, %v4481_v52  ;;  %v3379_v49 = vperm.slane %v3371_v8, %v4481_v52  ;;  %v3358_v27 = vrot.slane %v3228_v26, 4  ;;  %v3363_v37 = vperm.slane %v3357_v17, %v4481_v52 }
 0xb62   :  { %v3349_v46 = vsel %vm318_vm15, 0.0, %v3348_v20  ;;  %v3412_v45 = vsel %vm318_vm15, %v3350_v35, %v3331_v38  ;;  %v3429_v56 = vsel %vm318_vm15, %v3428_v13, %v3353_v0  ;;  %v3448_v24 = vrot.slane %v3427_v7, 4 }
 0xb63   :  { %v3380_v43 = vrot.slane %v3375_v15, 4  ;;  %v3392_v21 = vrot.slane %v3379_v49, 4  ;;  %v3359_v36 = vsel %vm318_vm15, %v3274_v11, %v3358_v27  ;;  %v3382_v31 = vrot.slane %v3363_v37, 4 }
 0xb64   :  { %v3367_v55 = vperm.slane %v3359_v36, %v4481_v52  ;;  %v3416_v47 = vperm.slane %v3412_v45, %v4481_v52  ;;  %v3418_v34 = vsel %vm318_vm15, %v3417_v18, %v3349_v46  ;;  %v3433_v59 = vperm.slane %v3429_v56, %v4481_v52 }
 0xb65   :  { %v3381_v33 = vsel %vm318_vm15, %v3380_v43, %v3363_v37  ;;  %v3383_v40 = vsel %vm318_vm15, %v3375_v15, %v3382_v31  ;;  %v3422_v30 = vperm.slane %v3418_v34, %v4481_v52 }
 0xb66   :  { %v3387_v42 = vperm.slane %v3381_v33, %v4498_v2  ;;  %v3391_v19 = vperm.slane %v3383_v40, %v4498_v2  ;;  %v3393_v57 = vsel %vm318_vm15, %v3392_v21, %v3367_v55  ;;  %v3394_v48 = vrot.slane %v3367_v55, 4 }
 0xb67   :  { %v3399_v1 = vperm.slane %v3393_v57, %v4498_v2  ;;  %v3436_v32 = vrot.slane %v3416_v47, 4  ;;  %v3449_v54 = vsel %vm318_vm15, %v3433_v59, %v3448_v24  ;;  %v3434_v16 = vrot.slane %v3422_v30, 4 }
 0xb68   :  { %v3395_v3 = vsel %vm318_vm15, %v3379_v49, %v3394_v48  ;;  %v3404_v4 = vrot.slane %v3387_v42, 4  ;;  %v3406_v9 = vrot.slane %v3391_v19, 4  ;;  %v3457_v28 = vperm.slane %v3449_v54, %v4498_v2  ;;  %v3965_v54 = vld [vmem:[%s5774_s7 + $0x20] sm:$0xff] }
 0xb69   :  { %v3403_v5 = vperm.slane %v3395_v3, %v4498_v2  ;;  %v3437_v25 = vsel %vm318_vm15, %v3422_v30, %v3436_v32  ;;  %v3435_v6 = vsel %vm318_vm15, %v3434_v16, %v3416_v47  ;;  %v3408_v51 = vrot.slane %v3399_v1, 4  ;;  %v3966_v32 = vld [vmem:[%s5774_s7 + $0x28] sm:$0xff] }
 0xb6a   :  { %v3407_v10 = vsel %vm318_vm15, 0.0, %v3406_v9  ;;  %v3466_v58 = vsel %vm318_vm15, %v3406_v9, %v3387_v42  ;;  %v3445_v22 = vperm.slane %v3437_v25, %v4498_v2  ;;  %v3462_v38 = vrot.slane %v3457_v28, 4 }
 0xb6b   :  { %v3410_v63 = vrot.slane %v3403_v5, 4  ;;  %v3470_v12 = vperm.slane %v3466_v58, %v4481_v52  ;;  %v3471_v11 = vrot.slane %v3407_v10, 4  ;;  %v3405_v35 = vsel %vm318_vm15, 0.0, %v3404_v4 }
 0xb6c   :  { %v3464_v62 = vrot.slane %v3445_v22, 4  ;;  %v3441_v23 = vperm.slane %v3435_v6, %v4498_v2  ;;  %v3446_v41 = vrot.slane %v3433_v59, 4  ;;  %v3463_v53 = vsel %vm318_vm15, %v3462_v38, %v3445_v22 }
 0xb6d   :  { %v3411_v44 = vsel %vm318_vm15, 0.0, %v3410_v63  ;;  %v3472_v13 = vsel %vm318_vm15, %v3471_v11, %v3405_v35  ;;  %v3477_v14 = vsel %vm318_vm15, %v3410_v63, %v3399_v1  ;;  %3530 = vrot.lane.b32.xlu2 %v3463_v53, %s4210_s25  ;;  %v3490_v17 = vrot.slane %v3470_v12, 4  ;;  %v3968_v1 = vld [vmem:[%s5774_s7 + $0x38] sm:$0xff]  ;;  %v4059_v63 = vld [vmem:[%s5775_s8 + $0x1] ss:$0 sm:$0xff] }
 0xb6e   :  { %v3465_v26 = vsel %vm318_vm15, %v3457_v28, %v3464_v62  ;;  %v3447_v20 = vsel %vm318_vm15, %v3446_v41, %v3427_v7  ;;  %v3460_v50 = vrot.slane %v3441_v23, 4  ;;  %v3476_v0 = vperm.slane %v3472_v13, %v4481_v52  ;;  %3578 = vmatpush.msrb.mxu0 %v3968_v1 }
 0xb6f   :  { %3538 = vrot.lane.b32.xlu0 %v3465_v26, %s4209_s1  ;;  %v3453_v18 = vperm.slane %v3447_v20, %v4498_v2  ;;  %v3481_v29 = vperm.slane %v3477_v14, %v4481_v52  ;;  %v3482_v8 = vrot.slane %v3411_v44, 4  ;;  %v3409_v15 = vsel %vm318_vm15, 0.0, %v3408_v51  ;;  %v3977_v26 = vld [vmem:[%s5778_s11 + $0x38] sm:$0xff] }
 0xb70   :  { %v3488_v49 = vrot.slane %v3476_v0, 4  ;;  %v3491_v7 = vsel %vm318_vm15, %v3476_v0, %v3490_v17  ;;  %3681 = vmatpush.msrb.mxu1 %v3977_v26 }
 0xb71   :  { %v3458_v27 = vrot.slane %v3453_v18, 4  ;;  %v3461_v37 = vsel %vm318_vm15, %v3453_v18, %v3460_v50  ;;  %v3483_v46 = vsel %vm318_vm15, %v3482_v8, %v3409_v15  ;;  %v3499_v56 = vperm.slane %v3491_v7, %v4498_v2  ;;  %v3975_v50 = vld [vmem:[%s5778_s11 + $0x28] sm:$0xff]  ;;  %v3974_v18 = vld [vmem:[%s5778_s11 + $0x20] sm:$0xff] }
 0xb72   :  { %3522 = vrot.lane.b32.xlu1 %v3461_v37, %s4211_s15  ;;  %v3487_v45 = vperm.slane %v3483_v46, %v4481_v52  ;;  %v3502_v24 = vrot.slane %v3481_v29, 4  ;;  %v3489_v43 = vsel %vm318_vm15, %v3488_v49, %v3470_v12 }
 0xb73   :  { %v3495_v21 = vperm.slane %v3489_v43, %v4498_v2  ;;  %v3459_v36 = vsel %vm318_vm15, %v3458_v27, %v3441_v23  ;;  %v3518_v55 = vrot.slane %v3499_v56, 4 }
 0xb74   :  { %v3503_v31 = vsel %vm318_vm15, %v3487_v45, %v3502_v24  ;;  %v3500_v47 = vrot.slane %v3487_v45, 4 }
 0xb75   :  { %v3511_v34 = vperm.slane %v3503_v31, %v4498_v2  ;;  %v3514_v59 = vrot.slane %v3495_v21, 4 }
 0xb76   :  { %v3501_v33 = vsel %vm318_vm15, %v3500_v47, %v3481_v29 }
 0xb77   :  { %v3519_v52 = vsel %vm318_vm15, %v3511_v34, %v3518_v55  ;;  %v3516_v40 = vrot.slane %v3511_v34, 4  ;;  %v3507_v30 = vperm.slane %v3501_v33, %v4498_v2  ;;  %v3967_v2 = vld [vmem:[%s5774_s7 + $0x30] sm:$0xff] }
 0xb78   :  { %3540 = vrot.lane.b32.xlu2 %v3519_v52, %s4209_s1  ;;  %3579 = vmatpush.msrb.mxu0 %v3967_v2  ;;  %v4060_v52 = vld [vmem:[%s5776_s9 + $0x1] ss:$0 sm:$0xff]  ;;  %s4213_s1 = smov 128  }
 0xb79   :  { %v3517_v42 = vsel %vm318_vm15, %v3516_v40, %v3499_v56  ;;  %v3512_v19 = vrot.slane %v3507_v30, 4  ;;  %v3515_v57 = vsel %vm318_vm15, %v3507_v30, %v3514_v59 }
 0xb7a   :  { %3532 = vrot.lane.b32.xlu0 %v3517_v42, %s4210_s25  ;;  %3524 = vrot.lane.b32.xlu1 %v3515_v57, %s4211_s15 }
 0xb7b   :  { %v3513_v48 = vsel %vm318_vm15, %v3512_v19, %v3495_v21  ;;  %3580 = vmatpush.msrb.mxu0 %v3966_v32  ;;  %v4061_v19 = vld [vmem:[%s5777_s10 + $0x1] ss:$0 sm:$0xff]  ;;  %s5804_s10 = sld [smem:[#allocation12_spill]] }
 0xb7d   :  { %3581 = vmatpush.msrb.mxu0 %v3965_v54 }
 0xbc7   :  { %v3531_v4 = vpop.permute.xlu2 %3530 }
 0xbd2   :  { %v3541_v51 = vpop.permute.xlu2 %3540 }
 0xbe1   :  { %v3539_v16 = vpop.permute.xlu0 %3538 }
 0xbe4   :  { %v3523_v3 = vpop.permute.xlu1 %3522 }
 0xbe5   :  { %v3544_v9 = vsel %vm1026_vm0, %v3459_v36, %v3523_v3 }
 0xbe6   :  { %v3546_v28 = vsel %vm1771_vm2, %v3544_v9, %v3531_v4 }
 0xbe7   :  { %v3548_v5 = vsel %vm1774_vm3, %v3546_v28, %v3539_v16  ;;  %v3988_v28 = vld [vmem:[%s5780_s13 + $0x78] sm:$0xff] }
 0xbe8   :  { %3970 = vmatmul.msk.f32.vlgmr.msrb.gmra.mxu0 %vm194_vm7, %v3548_v5  ;;  %3738 = vmatpush.msrb.mxu2 %v3988_v28  ;;  %v3987_v5 = vld [vmem:[%s5780_s13 + $0x70] sm:$0xff] }
 0xbea   :  { %3739 = vmatpush.msrb.mxu2 %v3987_v5 }
 0xbec   :  { %v3533_v25 = vpop.permute.xlu0 %3532  ;;  %v3525_v6 = vpop.permute.xlu1 %3524 }
 0xbed   :  { %v3545_v10 = vsel %vm1026_vm0, %v3513_v48, %v3525_v6  ;;  %v3985_v6 = vld [vmem:[%s5780_s13 + $0x60] sm:$0xff] }
 0xbee   :  { %v3547_v58 = vsel %vm1771_vm2, %v3545_v10, %v3533_v25  ;;  %v3986_v25 = vld [vmem:[%s5780_s13 + $0x68] sm:$0xff]  ;;  %v3984_v10 = vld [vmem:[%s5780_s13 + $0x58] sm:$0xff] }
 0xbef   :  { %v3549_v22 = vsel %vm1774_vm3, %v3547_v58, %v3541_v51  ;;  %3740 = vmatpush.msrb.mxu2 %v3986_v25  ;;  %v3983_v51 = vld [vmem:[%s5780_s13 + $0x50] sm:$0xff]  ;;  %v3982_v58 = vld [vmem:[%s5780_s13 + $0x48] sm:$0xff] }
 0xbf0   :  { %3971 = vmatmul.msk.f32.gmra.mxu0 %vm194_vm7, %v3549_v22  ;;  %v3981_v22 = vld [vmem:[%s5780_s13 + $0x40] sm:$0xff] }
 0xbf1   :  { %3741 = vmatpush.msrb.mxu2 %v3985_v6 }
 0xbf3   :  { %3742 = vmatpush.msrb.mxu2 %v3984_v10 }
 0xbf5   :  { %3743 = vmatpush.msrb.mxu2 %v3983_v51 }
 0xbf7   :  { %3744 = vmatpush.msrb.mxu2 %v3982_v58 }
 0xbf9   :  { %3745 = vmatpush.msrb.mxu2 %v3981_v22 }
 0xc65   :  { %v3583_v12 = vpop.f32.mrf.mxu0 }
 0xc66   :  { %v3584_v11 = vadd.f32 %v4059_v63, %v3583_v12 }
 0xc68   :  { %v5660_v38 = vadd.f32 %v3584_v11, %v5068_v61 }
 0xc6a   :  { %v3595_v35 = vsel %vm194_vm7, %v5660_v38, 0.0  ;;  %v3603_v62 = vmul.f32 %v5660_v38, %v5660_v38 }
 0xc6b   :  { %3596 = vadd.xlane.f32.xlu1 %v3595_v35 }
 0xc6c   :  { %v3605_v23 = vsel %vm194_vm7, %v3603_v62, 0.0 }
 0xc6d   :  { %3606 = vadd.xlane.f32.xlu0 %v3605_v23  ;;  %v3586_v41 = vpop.f32.mrf.mxu0 }
 0xc6e   :  { %v3587_v44 = vadd.f32 %v4059_v63, %v3586_v41  ;;  %v4062_v63 = vld [vmem:[%s5779_s12 + $0x1] ss:$0 sm:$0xff] }
 0xc70   :  { %v5668_v13 = vadd.f32 %v3587_v44, %v5076_v39  ;;  %v3976_v39 = vld [vmem:[%s5778_s11 + $0x30] sm:$0xff] }
 0xc71   :  { %3682 = vmatpush.msrb.mxu1 %v3976_v39 }
 0xc72   :  { %v3598_v53 = vsel %vm194_vm7, %v5668_v13, 0.0  ;;  %v3604_v61 = vmul.f32 %v5668_v13, %v5668_v13 }
 0xc73   :  { %3599 = vadd.xlane.f32.xlu2 %v3598_v53  ;;  %3683 = vmatpush.msrb.mxu1 %v3975_v50 }
 0xc74   :  { %v3608_v14 = vsel %vm194_vm7, %v3604_v61, 0.0 }
 0xc75   :  { %3609 = vadd.xlane.f32.xlu1 %v3608_v14  ;;  %3684 = vmatpush.msrb.mxu1 %v3974_v18 }
 0xcde   :  { %v3597_v20 = vpop.xlane.xlu1 %3596 }
 0xcdf   :  { %v3601_v0 = vmul.f32 %v3597_v20, %v4418_v60 }
 0xce0   :  { %v3607_v29 = vpop.xlane.xlu0 %3606 }
 0xce1   :  { %v3613_v8 = vmul.f32 %v3601_v0, %v3601_v0  ;;  %v3611_v17 = vmul.f32 %v3607_v29, %v4418_v60  ;;  %v3639_v33 = vsub.f32 %v5660_v38, %v3601_v0 }
 0xce3   :  { %v3615_v15 = vsub.f32 %v3611_v17, %v3613_v8 }
 0xce5   :  { %v3617_v49 = vadd.f32 1e-05, %v3615_v15 }
 0xce6   :  { %v3600_v27 = vpop.xlane.xlu2 %3599 }
 0xce7   :  { %4148 = vrsqrt.f32 %v3617_v49  ;;  %v3602_v37 = vmul.f32 %v3600_v27, %v4418_v60  ;;  %vm3625_vm0 = vweird.f32 %v3617_v49 }
 0xce8   :  { %v3610_v46 = vpop.xlane.xlu1 %3609 }
 0xce9   :  { %v3614_v7 = vmul.f32 %v3602_v37, %v3602_v37  ;;  %v3612_v45 = vmul.f32 %v3610_v46, %v4418_v60  ;;  %v3640_v54 = vsub.f32 %v5668_v13, %v3602_v37  ;;  %v4063_v37 = vld [vmem:[%s5802_s24 + $0x1] ss:$0 sm:$0xff] }
 0xceb   :  { %v3616_v56 = vsub.f32 %v3612_v45, %v3614_v7 }
 0xced   :  { %v4149_v24 = vpop.eup %4148  ;;  %v3618_v43 = vadd.f32 1e-05, %v3616_v56 }
 0xcee   :  { %v3620_v21 = vmul.f32 %v4149_v24, %v3617_v49  ;;  %vm3626_vm15 = vweird.f32 %v4149_v24 }
 0xcef   :  { %4150 = vrsqrt.f32 %v3618_v43  ;;  %vm3627_vm1 = vmor %vm3625_vm0, %vm3626_vm15  ;;  %vm3635_vm3 = vweird.f32 %v3618_v43 }
 0xcf0   :  { %v3621_v36 = vmul.f32 %v4149_v24, %v3620_v21 }
 0xcf2   :  { %v3622_v31 = vmul.f32 0.5, %v3621_v36 }
 0xcf4   :  { %v3623_v55 = vsub.f32 1.5, %v3622_v31 }
 0xcf5   :  { %v4151_v47 = vpop.eup %4150 }
 0xcf6   :  { %v3624_v34 = vmul.f32 %v4149_v24, %v3623_v55  ;;  %v3630_v59 = vmul.f32 %v4151_v47, %v3618_v43  ;;  %vm3636_vm2 = vweird.f32 %v4151_v47 }
 0xcf7   :  { %vm3637_vm8 = vmor %vm3635_vm3, %vm3636_vm2 }
 0xcf8   :  { %v3628_v40 = vsel %vm3627_vm1, %v4149_v24, %v3624_v34  ;;  %v3631_v30 = vmul.f32 %v4151_v47, %v3630_v59  ;;  %v3817_v59 = vld [vmem:[%s5803_s28 + $0x10] sm:$0xff] }
 0xcf9   :  { %v3641_v42 = vmul.f32 %v3639_v33, %v3628_v40  ;;  %v3815_v40 = vld [vmem:[%s5803_s28] sm:$0xff] }
 0xcfa   :  { %v3632_v57 = vmul.f32 0.5, %v3631_v30 }
 0xcfb   :  { %v3646_v48 = vmul.f32 %v4060_v52, %v3641_v42 }
 0xcfc   :  { %v3633_v1 = vsub.f32 1.5, %v3632_v57 }
 0xcfd   :  { %v3651_v2 = vadd.f32 %v4061_v19, %v3646_v48 }
 0xcfe   :  { %v3634_v32 = vmul.f32 %v4151_v47, %v3633_v1 }
 0xcff   :  { %3979 = vmatmul.msk.f32.vlgmr.msrb.gmra.mxu1 %vm194_vm7, %v3651_v2 }
 0xd00   :  { %v3638_v16 = vsel %vm3637_vm8, %v4151_v47, %v3634_v32 }
 0xd01   :  { %v3642_v3 = vmul.f32 %v3640_v54, %v3638_v16 }
 0xd03   :  { %v3647_v4 = vmul.f32 %v4060_v52, %v3642_v3 }
 0xd05   :  { %v3652_v9 = vadd.f32 %v4061_v19, %v3647_v4 }
 0xd07   :  { %3980 = vmatmul.msk.f32.gmra.mxu1 %vm194_vm7, %v3652_v9 }
 0xd7c   :  { %v3686_v12 = vpop.f32.mrf.mxu1 }
 0xd7d   :  { %v3687_v11 = vadd.f32 %v4062_v63, %v3686_v12 }
 0xd7f   :  { %v3694_v35 = vmul.f32 0.044715, %v3687_v11  ;;  %v3692_v18 = vmul.f32 0.5, %v3687_v11 }
 0xd81   :  { %v3696_v62 = vmul.f32 %v3694_v35, %v3687_v11  ;;  %v4065_v35 = vld [vmem:[%s5805_s4] ss:$0 sm:$0xff] }
 0xd83   :  { %v3698_v23 = vmul.f32 %v3696_v62, %v3687_v11 }
 0xd84   :  { %v3689_v41 = vpop.f32.mrf.mxu1 }
 0xd85   :  { %v3700_v44 = vadd.f32 %v3698_v23, %v3687_v11  ;;  %v3690_v53 = vadd.f32 %v4062_v63, %v3689_v41  ;;  %v4064_v63 = vld [vmem:[%s5804_s10] ss:$0 sm:$0xff] }
 0xd87   :  { %v3702_v61 = vmul.f32 0.7978846, %v3700_v44  ;;  %v3695_v14 = vmul.f32 0.044715, %v3690_v53  ;;  %v3693_v15 = vmul.f32 0.5, %v3690_v53 }
 0xd89   :  { %4152 = vtanh.f32 %v3702_v61  ;;  %v3697_v26 = vmul.f32 %v3695_v14, %v3690_v53 }
 0xd8b   :  { %v3699_v39 = vmul.f32 %v3697_v26, %v3690_v53 }
 0xd8d   :  { %v3701_v20 = vadd.f32 %v3699_v39, %v3690_v53 }
 0xd8f   :  { %v4153_v50 = vpop.eup %4152  ;;  %v3703_v0 = vmul.f32 0.7978846, %v3701_v20 }
 0xd90   :  { %v3706_v29 = vadd.f32 1.0, %v4153_v50 }
 0xd91   :  { %4154 = vtanh.f32 %v3703_v0 }
 0xd92   :  { %v3708_v8 = vmul.f32 %v3706_v29, %v3692_v18 }
 0xd94   :  { %3990 = vmatmul.msk.f32.vlgmr.msrb.gmra.mxu2 %vm1943_vm11, %v3708_v8 }
 0xd97   :  { %v4155_v17 = vpop.eup %4154 }
 0xd98   :  { %v3707_v49 = vadd.f32 1.0, %v4155_v17 }
 0xd9a   :  { %v3709_v27 = vmul.f32 %v3707_v49, %v3693_v15 }
 0xd9c   :  { %3991 = vmatmul.msk.f32.gmra.mxu2 %vm1943_vm11, %v3709_v27 }
 0xe17   :  { %v3747_v46 = vpop.f32.mrf.mxu2 }
 0xe18   :  { %v3748_v7 = vadd.f32 %v4063_v37, %v3747_v46 }
 0xe1a   :  { %v3753_v45 = vadd.f32 %v3748_v7, %v5660_v38  ;;  %v3818_v38 = vld [vmem:[%s5803_s28 + $0x18] sm:$0xff] }
 0xe1b   :  { %3837 = vmatpush.msra.mxu3 %v3818_v38 }
 0xe1c   :  { %v3757_v56 = vsel %vm194_vm7, %v3753_v45, 0.0  ;;  %v3765_v24 = vmul.f32 %v3753_v45, %v3753_v45 }
 0xe1d   :  { %3758 = vadd.xlane.f32.xlu0 %v3757_v56  ;;  %3838 = vmatpush.msra.mxu3 %v3817_v59 }
 0xe1e   :  { %v3767_v43 = vsel %vm194_vm7, %v3765_v24, 0.0 }
 0xe1f   :  { %3768 = vadd.xlane.f32.xlu2 %v3767_v43  ;;  %v3750_v21 = vpop.f32.mrf.mxu2 }
 0xe20   :  { %v3751_v36 = vadd.f32 %v4063_v37, %v3750_v21 }
 0xe22   :  { %v3754_v31 = vadd.f32 %v3751_v36, %v5668_v13  ;;  %v3816_v13 = vld [vmem:[%s5803_s28 + $0x8] sm:$0xff] }
 0xe23   :  { %3839 = vmatpush.msra.mxu3 %v3816_v13 }
 0xe24   :  { %v3760_v55 = vsel %vm194_vm7, %v3754_v31, 0.0  ;;  %v3766_v47 = vmul.f32 %v3754_v31, %v3754_v31 }
 0xe25   :  { %3761 = vadd.xlane.f32.xlu1 %v3760_v55  ;;  %3840 = vmatpush.msra.mxu3 %v3815_v40 }
 0xe26   :  { %v3770_v34 = vsel %vm194_vm7, %v3766_v47, 0.0 }
 0xe27   :  { %3771 = vadd.xlane.f32.xlu0 %v3770_v34 }
 0xe90   :  { %v3759_v33 = vpop.xlane.xlu0 %3758 }
 0xe91   :  { %v3763_v52 = vmul.f32 %v3759_v33, %v4418_v60 }
 0xe92   :  { %v3769_v30 = vpop.xlane.xlu2 %3768 }
 0xe93   :  { %v3775_v42 = vmul.f32 %v3763_v52, %v3763_v52  ;;  %v3773_v19 = vmul.f32 %v3769_v30, %v4418_v60  ;;  %v3801_v22 = vsub.f32 %v3753_v45, %v3763_v52 }
 0xe95   :  { %v3777_v57 = vsub.f32 %v3773_v19, %v3775_v42 }
 0xe97   :  { %v3779_v48 = vadd.f32 1e-05, %v3777_v57 }
 0xe98   :  { %v3762_v1 = vpop.xlane.xlu1 %3761 }
 0xe99   :  { %4156 = vrsqrt.f32 %v3779_v48  ;;  %v3764_v2 = vmul.f32 %v3762_v1, %v4418_v60  ;;  %vm3787_vm10 = vweird.f32 %v3779_v48 }
 0xe9a   :  { %v3772_v32 = vpop.xlane.xlu0 %3771 }
 0xe9b   :  { %v3776_v54 = vmul.f32 %v3764_v2, %v3764_v2  ;;  %v3774_v16 = vmul.f32 %v3772_v32, %v4418_v60  ;;  %v3802_v61 = vsub.f32 %v3754_v31, %v3764_v2 }
 0xe9d   :  { %v3778_v3 = vsub.f32 %v3774_v16, %v3776_v54 }
 0xe9f   :  { %v4157_v4 = vpop.eup %4156  ;;  %v3780_v9 = vadd.f32 1e-05, %v3778_v3 }
 0xea0   :  { %v3782_v28 = vmul.f32 %v4157_v4, %v3779_v48  ;;  %vm3788_vm9 = vweird.f32 %v4157_v4 }
 0xea1   :  { %4158 = vrsqrt.f32 %v3780_v9  ;;  %vm3789_vm11 = vmor %vm3787_vm10, %vm3788_vm9  ;;  %vm3797_vm13 = vweird.f32 %v3780_v9 }
 0xea2   :  { %v3783_v5 = vmul.f32 %v4157_v4, %v3782_v28 }
 0xea4   :  { %v3784_v25 = vmul.f32 0.5, %v3783_v5 }
 0xea6   :  { %v3785_v6 = vsub.f32 1.5, %v3784_v25 }
 0xea7   :  { %v4159_v10 = vpop.eup %4158 }
 0xea8   :  { %v3786_v51 = vmul.f32 %v4157_v4, %v3785_v6  ;;  %v3792_v58 = vmul.f32 %v4159_v10, %v3780_v9  ;;  %vm3798_vm12 = vweird.f32 %v4159_v10 }
 0xea9   :  { %vm3799_vm14 = vmor %vm3797_vm13, %vm3798_vm12 }
 0xeaa   :  { %v3790_v60 = vsel %vm3789_vm11, %v4157_v4, %v3786_v51  ;;  %v3793_v12 = vmul.f32 %v4159_v10, %v3792_v58 }
 0xeab   :  { %v3803_v11 = vmul.f32 %v3801_v22, %v3790_v60 }
 0xeac   :  { %v3794_v62 = vmul.f32 0.5, %v3793_v12 }
 0xead   :  { %v3808_v23 = vmul.f32 %v4064_v63, %v3803_v11 }
 0xeae   :  { %v3795_v41 = vsub.f32 1.5, %v3794_v62 }
 0xeaf   :  { %v3813_v44 = vadd.f32 %v4065_v35, %v3808_v23 }
 0xeb0   :  { %v3796_v53 = vmul.f32 %v4159_v10, %v3795_v41 }
 0xeb1   :  { %3992 = vmatmul.msk.f32.vlgmr.msra.gmra.mxu3 %vm194_vm7, %v3813_v44 }
 0xeb2   :  { %v3800_v14 = vsel %vm3799_vm14, %v4159_v10, %v3796_v53 }
 0xeb3   :  { %v3804_v26 = vmul.f32 %v3802_v61, %v3800_v14 }
 0xeb5   :  { %v3809_v39 = vmul.f32 %v4064_v63, %v3804_v26 }
 0xeb7   :  { %v3814_v20 = vadd.f32 %v4065_v35, %v3809_v39 }
 0xeb9   :  { %3993 = vmatmul.msk.f32.gmra.mxu3 %vm194_vm7, %v3814_v20 }
 0xf34   :  { %v3842_v50 = vpop.f32.mrf.mxu3 }
 0xf35   :  { %3848 = vst [vmem:[#allocation5] sm:$0xff] %v3842_v50 }
 0xf3c   :  { %v3845_v0 = vpop.f32.mrf.mxu3 }
 0xf3d   :  { %3849 = vst [vmem:[#allocation5 + $0x8] sm:$0xff] %v3845_v0 }
 0xf3e   :  { %3862 = dma.vmem_to_hbm [thread:$0]  %s3855_s17, 256, %s3857_s22, [#allocation3], %s4213_s1, %s4213_s1, %s4211_s15  }
 0xf3f   :  { %4198 = dma.done.wait [#allocation3], 256  }
 0xf40   :  { %4199 = vsyncadd [#allocation3], 4294967040 }
 0xf41   :  { %3867 = vsyncpa [#allocation3], 1 }
 0xf42   :  { %3868 = vsyncpa [#allocation4], 1 }

</bundles_post_ra>
